<compile_context>
chip_gen: v6e
topology: v6e:2x2x1
jax: 0.10.0
libtpu: 0.0.40
codegen_flags: <defaults>
</compile_context>

<pallas_src>
import math
import functools

import jax
import jax.numpy as jnp
from jax import lax
from jax.experimental import pallas as pl
from jax.experimental.pallas import tpu as pltpu


# ---------------------------------------------------------------------------
# Recurrent kernel: grid = (D, T // TT).  Direction axis is "parallel",
# time-block axis is "arbitrary" (hidden state carried in VMEM scratch).
# ---------------------------------------------------------------------------
def _gru_rec_kernel(x_ref, wih_ref, whh_ref, bc_ref, bhn_ref, h0_ref,
                    y_ref, hn_ref, gx_scr, h_scr,
                    *, time_block, hidden, num_dir):
    d = pl.program_id(0)                 # 0 = forward, 1 = backward direction
    blk = pl.program_id(1)               # time-block index (within direction)
    nblk = pl.num_programs(1)
    TT = time_block
    H = hidden
    B = h_scr.shape[0]

    @pl.when(blk == 0)
    def _():
        h_scr[...] = h0_ref[...]

    # ---- Input projection for the whole time block: ONE big matmul, result
    # stays in VMEM (no gx HBM round trip).  Combined bias bc already holds
    # b_ih(+b_hh for r,z).
    x2d = x_ref[...].reshape(TT * B, x_ref.shape[-1])          # bf16 (TT*B, Hin)
    gx = jnp.dot(x2d, wih_ref[...], preferred_element_type=jnp.float32)
    gx = gx + bc_ref[...]                                      # (TT*B, 3H) f32
    gx_scr[...] = gx.reshape(TT, B, 3 * H)

    w_hh = whh_ref[...]                                        # (H, 3H) bf16
    b_hn = jnp.broadcast_to(bhn_ref[...], (B, H))              # hoisted broadcast

    def run(order):
        # `order` is a static Python list -> fully static gx loads / y stores.
        # TODO(synk): cap/partial-unroll this loop once H grows (vreg pressure).
        h = h_scr[...]
        for t in order:
            gx_t = gx_scr[t]                                   # (B, 3H) f32
            # single fused recurrent matmul (r|z|n fused along N)
            gh = jnp.dot(h.astype(jnp.bfloat16), w_hh,
                         preferred_element_type=jnp.float32)   # (B, 3H)
            rz = jax.nn.sigmoid(gx_t[:, :2 * H] + gh[:, :2 * H])
            r = rz[:, :H]
            z = rz[:, H:]
            n = jnp.tanh(gx_t[:, 2 * H:] + r * (gh[:, 2 * H:] + b_hn))
            h = (1.0 - z) * n + z * h
            y_ref[t] = h.astype(y_ref.dtype)
        h_scr[...] = h

    fwd_order = list(range(TT))
    if num_dir == 1:
        run(fwd_order)
    else:
        @pl.when(d == 0)
        def _():
            run(fwd_order)

        @pl.when(d == 1)
        def _():
            run(fwd_order[::-1])

    @pl.when(blk == nblk - 1)
    def _():
        hn_ref[...] = h_scr[...]


# ---------------------------------------------------------------------------
# Wrapper helpers
# ---------------------------------------------------------------------------
def _vmem_budget_bytes():
    try:
        return int(pltpu.get_tpu_info().vmem_capacity_bytes)   # 64 MiB on v7x
    except Exception:
        return 128 * 1024 * 1024                               # v5e / v6e


def _choose_time_block(T, B, h_in, H, y_bytes, budget):
    """Largest divisor of T that fits the VMEM budget (capped at 32)."""
    # per-time-step VMEM: x block (bf16, double-buffered) + y block
    # (double-buffered) + gx scratch (f32).
    per_t = B * h_in * 2 * 2 + B * H * y_bytes * 2 + B * 3 * H * 4
    cap = int(max(1, min(32, budget // (4 * max(per_t, 1)))))
    tb = 1
    for c in range(1, min(T, cap) + 1):
        if T % c == 0:
            tb = c
    # TODO(synk): for awkward/prime T, zero-pad the forward stream (and mask
    # the backward one) instead of degrading to a tiny TT.
    return tb


def gru_layer_pallas(x_tbh, w_ih, w_hh, b_ih, b_hh, h0_d):
    """One GRU layer, all directions fused into one pallas_call.

    x_tbh: (T, B, H_in)  float   (B already padded to a multiple of 8)
    w_ih:  (D, H_in, 3H) bf16    (gate order r|z|n, transposed for x @ W)
    w_hh:  (D, H, 3H)    bf16
    b_ih:  (D, 1, 3H)    f32
    b_hh:  (D, 1, 3H)    f32
    h0_d:  (D, B, H)     f32
    Returns y: (D, T, B, H) bf16,  hn: (D, B, H) f32
    """
    T, B, H_in = x_tbh.shape
    D, H = w_hh.shape[0], w_hh.shape[1]

    budget = _vmem_budget_bytes()
    y_dtype = jnp.bfloat16
    TT = _choose_time_block(T, B, H_in, H, jnp.dtype(y_dtype).itemsize, budget)
    nblk = T // TT

    # Fold b_hh_r / b_hh_z into the input-projection bias; keep b_hn separate
    # (it sits inside r * (W_hn h + b_hn)).
    b_comb = b_ih.at[..., :2 * H].add(b_hh[..., :2 * H])       # (D, 1, 3H)
    b_hn = b_hh[..., 2 * H:]                                   # (D, 1, H)

    x_bf = x_tbh.astype(jnp.bfloat16)

    def t_blk(di, bi):
        # forward walks time blocks 0..nblk-1, backward walks them in reverse;
        # the reversal lives entirely in the index_map (no HBM flip).
        return bi + di * (nblk - 1 - 2 * bi)

    kernel = functools.partial(_gru_rec_kernel, time_block=TT, hidden=H,
                               num_dir=D)

    y, hn = pl.pallas_call(
        kernel,
        out_shape=(jax.ShapeDtypeStruct((D, T, B, H), y_dtype),
                   jax.ShapeDtypeStruct((D, B, H), jnp.float32)),
        grid=(D, nblk),
        in_specs=[
            pl.BlockSpec((TT, B, H_in),       lambda di, bi: (t_blk(di, bi), 0, 0)),
            pl.BlockSpec((None, H_in, 3 * H), lambda di, bi: (di, 0, 0)),
            pl.BlockSpec((None, H, 3 * H),    lambda di, bi: (di, 0, 0)),
            pl.BlockSpec((None, 1, 3 * H),    lambda di, bi: (di, 0, 0)),
            pl.BlockSpec((None, 1, H),        lambda di, bi: (di, 0, 0)),
            pl.BlockSpec((None, B, H),        lambda di, bi: (di, 0, 0)),
        ],
        out_specs=(
            pl.BlockSpec((None, TT, B, H), lambda di, bi: (di, t_blk(di, bi), 0, 0)),
            pl.BlockSpec((None, B, H),     lambda di, bi: (di, 0, 0)),
        ),
        scratch_shapes=[
            pltpu.VMEM((TT, B, 3 * H), jnp.float32),   # per-block gx
            pltpu.VMEM((B, H), jnp.float32),           # carried hidden state
        ],
        compiler_params=pltpu.CompilerParams(
            dimension_semantics=("parallel", "arbitrary"),     # 2 TCs on v7x
            vmem_limit_bytes=min(int(budget * 0.8), 100 * 1024 * 1024),
        ),
    )(x_bf, w_ih, w_hh, b_comb, b_hn, h0_d)
    return y, hn


# ---------------------------------------------------------------------------
# Parameter init (nn.GRU distribution U(-1/sqrt(H), 1/sqrt(H)); stored
# transposed with gates fused r|z|n; weights bf16 for the MXU, biases f32).
# ---------------------------------------------------------------------------
def init_gru_params(key, config):
    H = config['d_model']
    L = config['n_layer']
    D = 2 if config['bidirectional'] else 1
    k = 1.0 / math.sqrt(H)
    params = []
    for l in range(L):
        in_size = H if l == 0 else D * H
        key, k1, k2, k3, k4 = jax.random.split(key, 5)
        params.append({
            'w_ih': jax.random.uniform(k1, (D, in_size, 3 * H), jnp.float32,
                                       -k, k).astype(jnp.bfloat16),
            'w_hh': jax.random.uniform(k2, (D, H, 3 * H), jnp.float32,
                                       -k, k).astype(jnp.bfloat16),
            'b_ih': jax.random.uniform(k3, (D, 1, 3 * H), jnp.float32, -k, k),
            'b_hh': jax.random.uniform(k4, (D, 1, 3 * H), jnp.float32, -k, k),
        })
    return params


# ---------------------------------------------------------------------------
# VanillaRNN.forward equivalent: x (B, T, d_model) -> (output, h_n)
# ---------------------------------------------------------------------------
def vanilla_rnn_forward(params, config, x, h0=None):
    B, T, _ = x.shape
    H = config['d_model']
    L = config['n_layer']
    D = 2 if config['bidirectional'] else 1
    if h0 is None:
        h0 = jnp.zeros((D * L, B, H), jnp.float32)
    h0 = h0.astype(jnp.float32)

    # pad batch to a multiple of 8 sublanes (layout plumbing only)
    Bp = max(8, ((B + 7) // 8) * 8)
    pad_b = Bp - B
    layer_in = jnp.transpose(x, (1, 0, 2))                      # (T, B, Hin)
    if pad_b:
        layer_in = jnp.pad(layer_in, ((0, 0), (0, pad_b), (0, 0)))
        h0 = jnp.pad(h0, ((0, 0), (0, pad_b), (0, 0)))

    h_n = []
    for l in range(L):
        p = params[l]
        h0_l = h0[l * D:(l + 1) * D]                            # (D, Bp, H)
        y, hn = gru_layer_pallas(layer_in, p['w_ih'], p['w_hh'],
                                 p['b_ih'], p['b_hh'], h0_l)
        layer_in = y[0] if D == 1 else jnp.concatenate([y[0], y[1]], axis=-1)
        h_n.append(hn)
        # TODO(synk): train-mode inter-layer dropout not implemented
        #             (config dropout=0.0 / eval mode).

    output = jnp.transpose(layer_in, (1, 0, 2))[:B].astype(jnp.float32)
    h_n = jnp.concatenate(h_n, axis=0)[:, :B]                   # (D*L, B, H)
    return output, h_n


# ---------------------------------------------------------------------------
# Pure-JAX f32 reference (lax.scan) for correctness check
# ---------------------------------------------------------------------------
def gru_layer_ref(x_tbh, w_ih, w_hh, b_ih, b_hh, h0, reverse):
    H = h0.shape[-1]
    xs = x_tbh[::-1] if reverse else x_tbh

    def step(h, x_t):
        gx = x_t @ w_ih + b_ih
        gh = h @ w_hh + b_hh
        r = jax.nn.sigmoid(gx[:, :H] + gh[:, :H])
        z = jax.nn.sigmoid(gx[:, H:2 * H] + gh[:, H:2 * H])
        n = jnp.tanh(gx[:, 2 * H:] + r * gh[:, 2 * H:])
        h_new = (1.0 - z) * n + z * h
        return h_new, h_new

    hn, ys = lax.scan(step, h0, xs)
    if reverse:
        ys = ys[::-1]
    return ys, hn


def vanilla_rnn_ref(params, config, x, h0=None):
    B, T, _ = x.shape
    H = config['d_model']
    L = config['n_layer']
    D = 2 if config['bidirectional'] else 1
    if h0 is None:
        h0 = jnp.zeros((D * L, B, H), jnp.float32)
    layer_in = jnp.transpose(x, (1, 0, 2)).astype(jnp.float32)
    h_n = []
    for l in range(L):
        p = params[l]
        outs = []
        for d in range(D):
            y, hn = gru_layer_ref(layer_in,
                                  p['w_ih'][d].astype(jnp.float32),
                                  p['w_hh'][d].astype(jnp.float32),
                                  p['b_ih'][d], p['b_hh'][d],
                                  h0[l * D + d], reverse=(d == 1))
            outs.append(y)
            h_n.append(hn)
        layer_in = outs[0] if D == 1 else jnp.concatenate(outs, axis=-1)
    return jnp.transpose(layer_in, (1, 0, 2)), jnp.stack(h_n, axis=0)


if __name__ == "__main__":
    config = {'d_model': 32, 'n_layer': 2, 'dropout': 0.0, 'bidirectional': True}
    B, T = 2, 8

    key = jax.random.PRNGKey(0)
    kp, kx = jax.random.split(key)
    params = init_gru_params(kp, config)
    x = jax.random.normal(kx, (B, T, config['d_model']), jnp.float32)

    fwd = jax.jit(lambda p, xx: vanilla_rnn_forward(p, config, xx))
    out, h_n = fwd(params, x)                  # h0=None path (zeros), as in module
    out = jax.block_until_ready(out)
    h_n = jax.block_until_ready(h_n)

    out_ref, h_n_ref = vanilla_rnn_ref(params, config, x)
    assert out.shape == (B, T, 2 * config['d_model'])
    assert h_n.shape == (2 * config['n_layer'], B, config['d_model'])
    # bf16 matmul operands + bf16 layer-output streaming vs f32 reference
    # -> loose tolerance (functional bugs give O(1e-1..1) errors).
    err_o = float(jnp.max(jnp.abs(out - out_ref)))
    err_h = float(jnp.max(jnp.abs(h_n - h_n_ref)))
    assert err_o < 3e-2, f"output mismatch: max abs err {err_o}"
    assert err_h < 3e-2, f"h_n mismatch: max abs err {err_h}"

    print("KERNEL_OK")
</pallas_src>

<mosaic_0001>
module attributes {stable_mosaic.version = 11 : i64} {
  func.func @_gru_rec_kernel(%arg0: i32, %arg1: i32, %arg2: memref<8x8x64xbf16, #tpu.memory_space<vmem>>, %arg3: memref<1x64x96xbf16, #tpu.memory_space<vmem>>, %arg4: memref<1x32x96xbf16, #tpu.memory_space<vmem>>, %arg5: memref<1x1x96xf32, #tpu.memory_space<vmem>>, %arg6: memref<1x1x32xf32, #tpu.memory_space<vmem>>, %arg7: memref<1x8x32xf32, #tpu.memory_space<vmem>>, %arg8: memref<1x8x8x32xbf16, #tpu.memory_space<vmem>>, %arg9: memref<1x8x32xf32, #tpu.memory_space<vmem>>, %arg10: memref<8x8x96xf32, #tpu.memory_space<vmem>>, %arg11: memref<8x32xf32, #tpu.memory_space<vmem>>) attributes {dimension_semantics = [#tpu.dimension_semantics<parallel>, #tpu.dimension_semantics<arbitrary>], iteration_bounds = array<i64: 2, 1>, scalar_prefetch = 0 : i64, scratch_operands = 2 : i64, tpu.core_type = #tpu.core_type<tc>, window_params = [{transform_indices = @transform_0, window_bounds = array<i64: 8, 8, 64>}, {transform_indices = @transform_1, window_bounds = array<i64: 1, 64, 96>}, {transform_indices = @transform_2, window_bounds = array<i64: 1, 32, 96>}, {transform_indices = @transform_3, window_bounds = array<i64: 1, 1, 96>}, {transform_indices = @transform_4, window_bounds = array<i64: 1, 1, 32>}, {transform_indices = @transform_5, window_bounds = array<i64: 1, 8, 32>}, {transform_indices = @transform_6, window_bounds = array<i64: 1, 8, 8, 32>}, {transform_indices = @transform_7, window_bounds = array<i64: 1, 8, 32>}]} {
    %c0_i32 = arith.constant 0 : i32
    %0 = arith.cmpi eq, %arg1, %c0_i32 : i32
    %1 = arith.extui %0 : i1 to i32
    %c0_i32_0 = arith.constant 0 : i32
    %2 = arith.cmpi ne, %1, %c0_i32_0 : i32
    scf.if %2 {
      %c0_23 = arith.constant 0 : index
      %c0_24 = arith.constant 0 : index
      %c0_25 = arith.constant 0 : index
      %29 = vector.load %arg7[%c0_23, %c0_24, %c0_25] : memref<1x8x32xf32, #tpu.memory_space<vmem>>, vector<1x8x32xf32>
      %30 = vector.shape_cast %29 : vector<1x8x32xf32> to vector<8x32xf32>
      %c0_26 = arith.constant 0 : index
      %c0_27 = arith.constant 0 : index
      %31 = vector.load %arg11[%c0_26, %c0_27] : memref<8x32xf32, #tpu.memory_space<vmem>>, vector<8x32xf32>
      tpu.vector_store %arg11[%c0_26, %c0_27], %30 {strides = array<i32>} : memref<8x32xf32, #tpu.memory_space<vmem>>, vector<8x32xf32>,
    } else {
    }
    %c0 = arith.constant 0 : index
    %c0_1 = arith.constant 0 : index
    %c0_2 = arith.constant 0 : index
    %3 = vector.load %arg2[%c0, %c0_1, %c0_2] : memref<8x8x64xbf16, #tpu.memory_space<vmem>>, vector<8x8x64xbf16>
    %4 = vector.shape_cast %3 : vector<8x8x64xbf16> to vector<64x64xbf16>
    %c0_3 = arith.constant 0 : index
    %c0_4 = arith.constant 0 : index
    %c0_5 = arith.constant 0 : index
    %5 = vector.load %arg3[%c0_3, %c0_4, %c0_5] : memref<1x64x96xbf16, #tpu.memory_space<vmem>>, vector<1x64x96xbf16>
    %6 = vector.shape_cast %5 : vector<1x64x96xbf16> to vector<64x96xbf16>
    %cst = arith.constant dense<0.000000e+00> : vector<64x96xf32>
    %7 = tpu.matmul %4, %6, %cst {dimension_numbers = #tpu.dot_dimension_numbers<[1], [0], [0], [1], [0, 0, 1, 1], [], []>} : vector<64x64xbf16>, vector<64x96xbf16>, vector<64x96xf32> -> vector<64x96xf32>
    %c0_6 = arith.constant 0 : index
    %c0_7 = arith.constant 0 : index
    %c0_8 = arith.constant 0 : index
    %8 = vector.load %arg5[%c0_6, %c0_7, %c0_8] : memref<1x1x96xf32, #tpu.memory_space<vmem>>, vector<1x1x96xf32>
    %9 = vector.shape_cast %8 : vector<1x1x96xf32> to vector<1x96xf32>
    %10 = vector.broadcast %9 : vector<1x96xf32> to vector<64x96xf32>
    %11 = arith.addf %7, %10 : vector<64x96xf32>
    %12 = vector.shape_cast %11 : vector<64x96xf32> to vector<8x8x96xf32>
    %c0_9 = arith.constant 0 : index
    %c0_10 = arith.constant 0 : index
    %c0_11 = arith.constant 0 : index
    %13 = vector.load %arg10[%c0_9, %c0_10, %c0_11] : memref<8x8x96xf32, #tpu.memory_space<vmem>>, vector<8x8x96xf32>
    tpu.vector_store %arg10[%c0_9, %c0_10, %c0_11], %12 {strides = array<i32>} : memref<8x8x96xf32, #tpu.memory_space<vmem>>, vector<8x8x96xf32>,
    %c0_12 = arith.constant 0 : index
    %c0_13 = arith.constant 0 : index
    %c0_14 = arith.constant 0 : index
    %14 = vector.load %arg4[%c0_12, %c0_13, %c0_14] : memref<1x32x96xbf16, #tpu.memory_space<vmem>>, vector<1x32x96xbf16>
    %15 = vector.shape_cast %14 : vector<1x32x96xbf16> to vector<32x96xbf16>
    %c0_15 = arith.constant 0 : index
    %c0_16 = arith.constant 0 : index
    %c0_17 = arith.constant 0 : index
    %16 = vector.load %arg6[%c0_15, %c0_16, %c0_17] : memref<1x1x32xf32, #tpu.memory_space<vmem>>, vector<1x1x32xf32>
    %17 = vector.shape_cast %16 : vector<1x1x32xf32> to vector<1x32xf32>
    %18 = vector.shape_cast %17 : vector<1x32xf32> to vector<1x32xf32>
    %19 = vector.broadcast %18 : vector<1x32xf32> to vector<8x32xf32>
    %c0_i32_18 = arith.constant 0 : i32
    %20 = arith.cmpi eq, %arg0, %c0_i32_18 : i32
    %21 = arith.extui %20 : i1 to i32
    %c0_i32_19 = arith.constant 0 : i32
    %22 = arith.cmpi ne, %21, %c0_i32_19 : i32
    scf.if %22 {
      %c0_23 = arith.constant 0 : index
      %c0_24 = arith.constant 0 : index
      %29 = vector.load %arg11[%c0_23, %c0_24] : memref<8x32xf32, #tpu.memory_space<vmem>>, vector<8x32xf32>
      %c0_25 = arith.constant 0 : index
      %c0_26 = arith.constant 0 : index
      %c0_27 = arith.constant 0 : index
      %30 = vector.load %arg10[%c0_25, %c0_26, %c0_27] : memref<8x8x96xf32, #tpu.memory_space<vmem>>, vector<1x8x96xf32>
      %31 = vector.shape_cast %30 : vector<1x8x96xf32> to vector<8x96xf32>
      %32 = arith.truncf %29 : vector<8x32xf32> to vector<8x32xbf16>
      %cst_28 = arith.constant dense<0.000000e+00> : vector<8x96xf32>
      %33 = tpu.matmul %32, %15, %cst_28 {dimension_numbers = #tpu.dot_dimension_numbers<[1], [0], [0], [1], [0, 0, 1, 1], [], []>} : vector<8x32xbf16>, vector<32x96xbf16>, vector<8x96xf32> -> vector<8x96xf32>
      %34 = vector.extract_strided_slice %31 {offsets = [0, 0], sizes = [8, 64], strides = [1, 1]} : vector<8x96xf32> to vector<8x64xf32>
      %35 = vector.extract_strided_slice %33 {offsets = [0, 0], sizes = [8, 64], strides = [1, 1]} : vector<8x96xf32> to vector<8x64xf32>
      %36 = arith.addf %34, %35 : vector<8x64xf32>
      %37 = arith.negf %36 : vector<8x64xf32>
      %38 = math.exp %37 : vector<8x64xf32>
      %cst_29 = arith.constant 1.000000e+00 : f32
      %39 = vector.broadcast %cst_29 : f32 to vector<8x64xf32>
      %40 = arith.addf %39, %38 : vector<8x64xf32>
      %41 = arith.divf %39, %40 : vector<8x64xf32>
      %42 = vector.extract_strided_slice %41 {offsets = [0, 0], sizes = [8, 32], strides = [1, 1]} : vector<8x64xf32> to vector<8x32xf32>
      %43 = vector.extract_strided_slice %41 {offsets = [0, 32], sizes = [8, 32], strides = [1, 1]} : vector<8x64xf32> to vector<8x32xf32>
      %44 = vector.extract_strided_slice %31 {offsets = [0, 64], sizes = [8, 32], strides = [1, 1]} : vector<8x96xf32> to vector<8x32xf32>
      %45 = vector.extract_strided_slice %33 {offsets = [0, 64], sizes = [8, 32], strides = [1, 1]} : vector<8x96xf32> to vector<8x32xf32>
      %46 = arith.addf %45, %19 : vector<8x32xf32>
      %47 = arith.mulf %42, %46 : vector<8x32xf32>
      %48 = arith.addf %44, %47 : vector<8x32xf32>
      %49 = math.tanh %48 : vector<8x32xf32>
      %cst_30 = arith.constant 1.000000e+00 : f32
      %50 = vector.broadcast %cst_30 : f32 to vector<8x32xf32>
      %51 = arith.subf %50, %43 : vector<8x32xf32>
      %52 = arith.mulf %51, %49 : vector<8x32xf32>
      %53 = arith.mulf %43, %29 : vector<8x32xf32>
      %54 = arith.addf %52, %53 : vector<8x32xf32>
      %55 = arith.truncf %54 : vector<8x32xf32> to vector<8x32xbf16>
      %c0_31 = arith.constant 0 : index
      %c0_32 = arith.constant 0 : index
      %c0_33 = arith.constant 0 : index
      %c0_34 = arith.constant 0 : index
      %56 = vector.load %arg8[%c0_31, %c0_32, %c0_33, %c0_34] : memref<1x8x8x32xbf16, #tpu.memory_space<vmem>>, vector<1x1x8x32xbf16>
      %57 = vector.shape_cast %56 : vector<1x1x8x32xbf16> to vector<8x32xbf16>
      %58 = vector.shape_cast %55 : vector<8x32xbf16> to vector<1x1x8x32xbf16>
      tpu.vector_store %arg8[%c0_31, %c0_32, %c0_33, %c0_34], %58 {strides = array<i32>} : memref<1x8x8x32xbf16, #tpu.memory_space<vmem>>, vector<1x1x8x32xbf16>,
      %c1 = arith.constant 1 : index
      %c0_35 = arith.constant 0 : index
      %c0_36 = arith.constant 0 : index
      %59 = vector.load %arg10[%c1, %c0_35, %c0_36] : memref<8x8x96xf32, #tpu.memory_space<vmem>>, vector<1x8x96xf32>
      %60 = vector.shape_cast %59 : vector<1x8x96xf32> to vector<8x96xf32>
      %61 = arith.truncf %54 : vector<8x32xf32> to vector<8x32xbf16>
      %cst_37 = arith.constant dense<0.000000e+00> : vector<8x96xf32>
      %62 = tpu.matmul %61, %15, %cst_37 {dimension_numbers = #tpu.dot_dimension_numbers<[1], [0], [0], [1], [0, 0, 1, 1], [], []>} : vector<8x32xbf16>, vector<32x96xbf16>, vector<8x96xf32> -> vector<8x96xf32>
      %63 = vector.extract_strided_slice %60 {offsets = [0, 0], sizes = [8, 64], strides = [1, 1]} : vector<8x96xf32> to vector<8x64xf32>
      %64 = vector.extract_strided_slice %62 {offsets = [0, 0], sizes = [8, 64], strides = [1, 1]} : vector<8x96xf32> to vector<8x64xf32>
      %65 = arith.addf %63, %64 : vector<8x64xf32>
      %66 = arith.negf %65 : vector<8x64xf32>
      %67 = math.exp %66 : vector<8x64xf32>
      %cst_38 = arith.constant 1.000000e+00 : f32
      %68 = vector.broadcast %cst_38 : f32 to vector<8x64xf32>
      %69 = arith.addf %68, %67 : vector<8x64xf32>
      %70 = arith.divf %68, %69 : vector<8x64xf32>
      %71 = vector.extract_strided_slice %70 {offsets = [0, 0], sizes = [8, 32], strides = [1, 1]} : vector<8x64xf32> to vector<8x32xf32>
      %72 = vector.extract_strided_slice %70 {offsets = [0, 32], sizes = [8, 32], strides = [1, 1]} : vector<8x64xf32> to vector<8x32xf32>
      %73 = vector.extract_strided_slice %60 {offsets = [0, 64], sizes = [8, 32], strides = [1, 1]} : vector<8x96xf32> to vector<8x32xf32>
      %74 = vector.extract_strided_slice %62 {offsets = [0, 64], sizes = [8, 32], strides = [1, 1]} : vector<8x96xf32> to vector<8x32xf32>
      %75 = arith.addf %74, %19 : vector<8x32xf32>
      %76 = arith.mulf %71, %75 : vector<8x32xf32>
      %77 = arith.addf %73, %76 : vector<8x32xf32>
      %78 = math.tanh %77 : vector<8x32xf32>
      %cst_39 = arith.constant 1.000000e+00 : f32
      %79 = vector.broadcast %cst_39 : f32 to vector<8x32xf32>
      %80 = arith.subf %79, %72 : vector<8x32xf32>
      %81 = arith.mulf %80, %78 : vector<8x32xf32>
      %82 = arith.mulf %72, %54 : vector<8x32xf32>
      %83 = arith.addf %81, %82 : vector<8x32xf32>
      %84 = arith.truncf %83 : vector<8x32xf32> to vector<8x32xbf16>
      %c0_40 = arith.constant 0 : index
      %c1_41 = arith.constant 1 : index
      %c0_42 = arith.constant 0 : index
      %c0_43 = arith.constant 0 : index
      %85 = vector.load %arg8[%c0_40, %c1_41, %c0_42, %c0_43] : memref<1x8x8x32xbf16, #tpu.memory_space<vmem>>, vector<1x1x8x32xbf16>
      %86 = vector.shape_cast %85 : vector<1x1x8x32xbf16> to vector<8x32xbf16>
      %87 = vector.shape_cast %84 : vector<8x32xbf16> to vector<1x1x8x32xbf16>
      tpu.vector_store %arg8[%c0_40, %c1_41, %c0_42, %c0_43], %87 {strides = array<i32>} : memref<1x8x8x32xbf16, #tpu.memory_space<vmem>>, vector<1x1x8x32xbf16>,
      %c2 = arith.constant 2 : index
      %c0_44 = arith.constant 0 : index
      %c0_45 = arith.constant 0 : index
      %88 = vector.load %arg10[%c2, %c0_44, %c0_45] : memref<8x8x96xf32, #tpu.memory_space<vmem>>, vector<1x8x96xf32>
      %89 = vector.shape_cast %88 : vector<1x8x96xf32> to vector<8x96xf32>
      %90 = arith.truncf %83 : vector<8x32xf32> to vector<8x32xbf16>
      %cst_46 = arith.constant dense<0.000000e+00> : vector<8x96xf32>
      %91 = tpu.matmul %90, %15, %cst_46 {dimension_numbers = #tpu.dot_dimension_numbers<[1], [0], [0], [1], [0, 0, 1, 1], [], []>} : vector<8x32xbf16>, vector<32x96xbf16>, vector<8x96xf32> -> vector<8x96xf32>
      %92 = vector.extract_strided_slice %89 {offsets = [0, 0], sizes = [8, 64], strides = [1, 1]} : vector<8x96xf32> to vector<8x64xf32>
      %93 = vector.extract_strided_slice %91 {offsets = [0, 0], sizes = [8, 64], strides = [1, 1]} : vector<8x96xf32> to vector<8x64xf32>
      %94 = arith.addf %92, %93 : vector<8x64xf32>
      %95 = arith.negf %94 : vector<8x64xf32>
      %96 = math.exp %95 : vector<8x64xf32>
      %cst_47 = arith.constant 1.000000e+00 : f32
      %97 = vector.broadcast %cst_47 : f32 to vector<8x64xf32>
      %98 = arith.addf %97, %96 : vector<8x64xf32>
      %99 = arith.divf %97, %98 : vector<8x64xf32>
      %100 = vector.extract_strided_slice %99 {offsets = [0, 0], sizes = [8, 32], strides = [1, 1]} : vector<8x64xf32> to vector<8x32xf32>
      %101 = vector.extract_strided_slice %99 {offsets = [0, 32], sizes = [8, 32], strides = [1, 1]} : vector<8x64xf32> to vector<8x32xf32>
      %102 = vector.extract_strided_slice %89 {offsets = [0, 64], sizes = [8, 32], strides = [1, 1]} : vector<8x96xf32> to vector<8x32xf32>
      %103 = vector.extract_strided_slice %91 {offsets = [0, 64], sizes = [8, 32], strides = [1, 1]} : vector<8x96xf32> to vector<8x32xf32>
      %104 = arith.addf %103, %19 : vector<8x32xf32>
      %105 = arith.mulf %100, %104 : vector<8x32xf32>
      %106 = arith.addf %102, %105 : vector<8x32xf32>
      %107 = math.tanh %106 : vector<8x32xf32>
      %cst_48 = arith.constant 1.000000e+00 : f32
      %108 = vector.broadcast %cst_48 : f32 to vector<8x32xf32>
      %109 = arith.subf %108, %101 : vector<8x32xf32>
      %110 = arith.mulf %109, %107 : vector<8x32xf32>
      %111 = arith.mulf %101, %83 : vector<8x32xf32>
      %112 = arith.addf %110, %111 : vector<8x32xf32>
      %113 = arith.truncf %112 : vector<8x32xf32> to vector<8x32xbf16>
      %c0_49 = arith.constant 0 : index
      %c2_50 = arith.constant 2 : index
      %c0_51 = arith.constant 0 : index
      %c0_52 = arith.constant 0 : index
      %114 = vector.load %arg8[%c0_49, %c2_50, %c0_51, %c0_52] : memref<1x8x8x32xbf16, #tpu.memory_space<vmem>>, vector<1x1x8x32xbf16>
      %115 = vector.shape_cast %114 : vector<1x1x8x32xbf16> to vector<8x32xbf16>
      %116 = vector.shape_cast %113 : vector<8x32xbf16> to vector<1x1x8x32xbf16>
      tpu.vector_store %arg8[%c0_49, %c2_50, %c0_51, %c0_52], %116 {strides = array<i32>} : memref<1x8x8x32xbf16, #tpu.memory_space<vmem>>, vector<1x1x8x32xbf16>,
      %c3 = arith.constant 3 : index
      %c0_53 = arith.constant 0 : index
      %c0_54 = arith.constant 0 : index
      %117 = vector.load %arg10[%c3, %c0_53, %c0_54] : memref<8x8x96xf32, #tpu.memory_space<vmem>>, vector<1x8x96xf32>
      %118 = vector.shape_cast %117 : vector<1x8x96xf32> to vector<8x96xf32>
      %119 = arith.truncf %112 : vector<8x32xf32> to vector<8x32xbf16>
      %cst_55 = arith.constant dense<0.000000e+00> : vector<8x96xf32>
      %120 = tpu.matmul %119, %15, %cst_55 {dimension_numbers = #tpu.dot_dimension_numbers<[1], [0], [0], [1], [0, 0, 1, 1], [], []>} : vector<8x32xbf16>, vector<32x96xbf16>, vector<8x96xf32> -> vector<8x96xf32>
      %121 = vector.extract_strided_slice %118 {offsets = [0, 0], sizes = [8, 64], strides = [1, 1]} : vector<8x96xf32> to vector<8x64xf32>
      %122 = vector.extract_strided_slice %120 {offsets = [0, 0], sizes = [8, 64], strides = [1, 1]} : vector<8x96xf32> to vector<8x64xf32>
      %123 = arith.addf %121, %122 : vector<8x64xf32>
      %124 = arith.negf %123 : vector<8x64xf32>
      %125 = math.exp %124 : vector<8x64xf32>
      %cst_56 = arith.constant 1.000000e+00 : f32
      %126 = vector.broadcast %cst_56 : f32 to vector<8x64xf32>
      %127 = arith.addf %126, %125 : vector<8x64xf32>
      %128 = arith.divf %126, %127 : vector<8x64xf32>
      %129 = vector.extract_strided_slice %128 {offsets = [0, 0], sizes = [8, 32], strides = [1, 1]} : vector<8x64xf32> to vector<8x32xf32>
      %130 = vector.extract_strided_slice %128 {offsets = [0, 32], sizes = [8, 32], strides = [1, 1]} : vector<8x64xf32> to vector<8x32xf32>
      %131 = vector.extract_strided_slice %118 {offsets = [0, 64], sizes = [8, 32], strides = [1, 1]} : vector<8x96xf32> to vector<8x32xf32>
      %132 = vector.extract_strided_slice %120 {offsets = [0, 64], sizes = [8, 32], strides = [1, 1]} : vector<8x96xf32> to vector<8x32xf32>
      %133 = arith.addf %132, %19 : vector<8x32xf32>
      %134 = arith.mulf %129, %133 : vector<8x32xf32>
      %135 = arith.addf %131, %134 : vector<8x32xf32>
      %136 = math.tanh %135 : vector<8x32xf32>
      %cst_57 = arith.constant 1.000000e+00 : f32
      %137 = vector.broadcast %cst_57 : f32 to vector<8x32xf32>
      %138 = arith.subf %137, %130 : vector<8x32xf32>
      %139 = arith.mulf %138, %136 : vector<8x32xf32>
      %140 = arith.mulf %130, %112 : vector<8x32xf32>
      %141 = arith.addf %139, %140 : vector<8x32xf32>
      %142 = arith.truncf %141 : vector<8x32xf32> to vector<8x32xbf16>
      %c0_58 = arith.constant 0 : index
      %c3_59 = arith.constant 3 : index
      %c0_60 = arith.constant 0 : index
      %c0_61 = arith.constant 0 : index
      %143 = vector.load %arg8[%c0_58, %c3_59, %c0_60, %c0_61] : memref<1x8x8x32xbf16, #tpu.memory_space<vmem>>, vector<1x1x8x32xbf16>
      %144 = vector.shape_cast %143 : vector<1x1x8x32xbf16> to vector<8x32xbf16>
      %145 = vector.shape_cast %142 : vector<8x32xbf16> to vector<1x1x8x32xbf16>
      tpu.vector_store %arg8[%c0_58, %c3_59, %c0_60, %c0_61], %145 {strides = array<i32>} : memref<1x8x8x32xbf16, #tpu.memory_space<vmem>>, vector<1x1x8x32xbf16>,
      %c4 = arith.constant 4 : index
      %c0_62 = arith.constant 0 : index
      %c0_63 = arith.constant 0 : index
      %146 = vector.load %arg10[%c4, %c0_62, %c0_63] : memref<8x8x96xf32, #tpu.memory_space<vmem>>, vector<1x8x96xf32>
      %147 = vector.shape_cast %146 : vector<1x8x96xf32> to vector<8x96xf32>
      %148 = arith.truncf %141 : vector<8x32xf32> to vector<8x32xbf16>
      %cst_64 = arith.constant dense<0.000000e+00> : vector<8x96xf32>
      %149 = tpu.matmul %148, %15, %cst_64 {dimension_numbers = #tpu.dot_dimension_numbers<[1], [0], [0], [1], [0, 0, 1, 1], [], []>} : vector<8x32xbf16>, vector<32x96xbf16>, vector<8x96xf32> -> vector<8x96xf32>
      %150 = vector.extract_strided_slice %147 {offsets = [0, 0], sizes = [8, 64], strides = [1, 1]} : vector<8x96xf32> to vector<8x64xf32>
      %151 = vector.extract_strided_slice %149 {offsets = [0, 0], sizes = [8, 64], strides = [1, 1]} : vector<8x96xf32> to vector<8x64xf32>
      %152 = arith.addf %150, %151 : vector<8x64xf32>
      %153 = arith.negf %152 : vector<8x64xf32>
      %154 = math.exp %153 : vector<8x64xf32>
      %cst_65 = arith.constant 1.000000e+00 : f32
      %155 = vector.broadcast %cst_65 : f32 to vector<8x64xf32>
      %156 = arith.addf %155, %154 : vector<8x64xf32>
      %157 = arith.divf %155, %156 : vector<8x64xf32>
      %158 = vector.extract_strided_slice %157 {offsets = [0, 0], sizes = [8, 32], strides = [1, 1]} : vector<8x64xf32> to vector<8x32xf32>
      %159 = vector.extract_strided_slice %157 {offsets = [0, 32], sizes = [8, 32], strides = [1, 1]} : vector<8x64xf32> to vector<8x32xf32>
      %160 = vector.extract_strided_slice %147 {offsets = [0, 64], sizes = [8, 32], strides = [1, 1]} : vector<8x96xf32> to vector<8x32xf32>
      %161 = vector.extract_strided_slice %149 {offsets = [0, 64], sizes = [8, 32], strides = [1, 1]} : vector<8x96xf32> to vector<8x32xf32>
      %162 = arith.addf %161, %19 : vector<8x32xf32>
      %163 = arith.mulf %158, %162 : vector<8x32xf32>
      %164 = arith.addf %160, %163 : vector<8x32xf32>
      %165 = math.tanh %164 : vector<8x32xf32>
      %cst_66 = arith.constant 1.000000e+00 : f32
      %166 = vector.broadcast %cst_66 : f32 to vector<8x32xf32>
      %167 = arith.subf %166, %159 : vector<8x32xf32>
      %168 = arith.mulf %167, %165 : vector<8x32xf32>
      %169 = arith.mulf %159, %141 : vector<8x32xf32>
      %170 = arith.addf %168, %169 : vector<8x32xf32>
      %171 = arith.truncf %170 : vector<8x32xf32> to vector<8x32xbf16>
      %c0_67 = arith.constant 0 : index
      %c4_68 = arith.constant 4 : index
      %c0_69 = arith.constant 0 : index
      %c0_70 = arith.constant 0 : index
      %172 = vector.load %arg8[%c0_67, %c4_68, %c0_69, %c0_70] : memref<1x8x8x32xbf16, #tpu.memory_space<vmem>>, vector<1x1x8x32xbf16>
      %173 = vector.shape_cast %172 : vector<1x1x8x32xbf16> to vector<8x32xbf16>
      %174 = vector.shape_cast %171 : vector<8x32xbf16> to vector<1x1x8x32xbf16>
      tpu.vector_store %arg8[%c0_67, %c4_68, %c0_69, %c0_70], %174 {strides = array<i32>} : memref<1x8x8x32xbf16, #tpu.memory_space<vmem>>, vector<1x1x8x32xbf16>,
      %c5 = arith.constant 5 : index
      %c0_71 = arith.constant 0 : index
      %c0_72 = arith.constant 0 : index
      %175 = vector.load %arg10[%c5, %c0_71, %c0_72] : memref<8x8x96xf32, #tpu.memory_space<vmem>>, vector<1x8x96xf32>
      %176 = vector.shape_cast %175 : vector<1x8x96xf32> to vector<8x96xf32>
      %177 = arith.truncf %170 : vector<8x32xf32> to vector<8x32xbf16>
      %cst_73 = arith.constant dense<0.000000e+00> : vector<8x96xf32>
      %178 = tpu.matmul %177, %15, %cst_73 {dimension_numbers = #tpu.dot_dimension_numbers<[1], [0], [0], [1], [0, 0, 1, 1], [], []>} : vector<8x32xbf16>, vector<32x96xbf16>, vector<8x96xf32> -> vector<8x96xf32>
      %179 = vector.extract_strided_slice %176 {offsets = [0, 0], sizes = [8, 64], strides = [1, 1]} : vector<8x96xf32> to vector<8x64xf32>
      %180 = vector.extract_strided_slice %178 {offsets = [0, 0], sizes = [8, 64], strides = [1, 1]} : vector<8x96xf32> to vector<8x64xf32>
      %181 = arith.addf %179, %180 : vector<8x64xf32>
      %182 = arith.negf %181 : vector<8x64xf32>
      %183 = math.exp %182 : vector<8x64xf32>
      %cst_74 = arith.constant 1.000000e+00 : f32
      %184 = vector.broadcast %cst_74 : f32 to vector<8x64xf32>
      %185 = arith.addf %184, %183 : vector<8x64xf32>
      %186 = arith.divf %184, %185 : vector<8x64xf32>
      %187 = vector.extract_strided_slice %186 {offsets = [0, 0], sizes = [8, 32], strides = [1, 1]} : vector<8x64xf32> to vector<8x32xf32>
      %188 = vector.extract_strided_slice %186 {offsets = [0, 32], sizes = [8, 32], strides = [1, 1]} : vector<8x64xf32> to vector<8x32xf32>
      %189 = vector.extract_strided_slice %176 {offsets = [0, 64], sizes = [8, 32], strides = [1, 1]} : vector<8x96xf32> to vector<8x32xf32>
      %190 = vector.extract_strided_slice %178 {offsets = [0, 64], sizes = [8, 32], strides = [1, 1]} : vector<8x96xf32> to vector<8x32xf32>
      %191 = arith.addf %190, %19 : vector<8x32xf32>
      %192 = arith.mulf %187, %191 : vector<8x32xf32>
      %193 = arith.addf %189, %192 : vector<8x32xf32>
      %194 = math.tanh %193 : vector<8x32xf32>
      %cst_75 = arith.constant 1.000000e+00 : f32
      %195 = vector.broadcast %cst_75 : f32 to vector<8x32xf32>
      %196 = arith.subf %195, %188 : vector<8x32xf32>
      %197 = arith.mulf %196, %194 : vector<8x32xf32>
      %198 = arith.mulf %188, %170 : vector<8x32xf32>
      %199 = arith.addf %197, %198 : vector<8x32xf32>
      %200 = arith.truncf %199 : vector<8x32xf32> to vector<8x32xbf16>
      %c0_76 = arith.constant 0 : index
      %c5_77 = arith.constant 5 : index
      %c0_78 = arith.constant 0 : index
      %c0_79 = arith.constant 0 : index
      %201 = vector.load %arg8[%c0_76, %c5_77, %c0_78, %c0_79] : memref<1x8x8x32xbf16, #tpu.memory_space<vmem>>, vector<1x1x8x32xbf16>
      %202 = vector.shape_cast %201 : vector<1x1x8x32xbf16> to vector<8x32xbf16>
      %203 = vector.shape_cast %200 : vector<8x32xbf16> to vector<1x1x8x32xbf16>
      tpu.vector_store %arg8[%c0_76, %c5_77, %c0_78, %c0_79], %203 {strides = array<i32>} : memref<1x8x8x32xbf16, #tpu.memory_space<vmem>>, vector<1x1x8x32xbf16>,
      %c6 = arith.constant 6 : index
      %c0_80 = arith.constant 0 : index
      %c0_81 = arith.constant 0 : index
      %204 = vector.load %arg10[%c6, %c0_80, %c0_81] : memref<8x8x96xf32, #tpu.memory_space<vmem>>, vector<1x8x96xf32>
      %205 = vector.shape_cast %204 : vector<1x8x96xf32> to vector<8x96xf32>
      %206 = arith.truncf %199 : vector<8x32xf32> to vector<8x32xbf16>
      %cst_82 = arith.constant dense<0.000000e+00> : vector<8x96xf32>
      %207 = tpu.matmul %206, %15, %cst_82 {dimension_numbers = #tpu.dot_dimension_numbers<[1], [0], [0], [1], [0, 0, 1, 1], [], []>} : vector<8x32xbf16>, vector<32x96xbf16>, vector<8x96xf32> -> vector<8x96xf32>
      %208 = vector.extract_strided_slice %205 {offsets = [0, 0], sizes = [8, 64], strides = [1, 1]} : vector<8x96xf32> to vector<8x64xf32>
      %209 = vector.extract_strided_slice %207 {offsets = [0, 0], sizes = [8, 64], strides = [1, 1]} : vector<8x96xf32> to vector<8x64xf32>
      %210 = arith.addf %208, %209 : vector<8x64xf32>
      %211 = arith.negf %210 : vector<8x64xf32>
      %212 = math.exp %211 : vector<8x64xf32>
      %cst_83 = arith.constant 1.000000e+00 : f32
      %213 = vector.broadcast %cst_83 : f32 to vector<8x64xf32>
      %214 = arith.addf %213, %212 : vector<8x64xf32>
      %215 = arith.divf %213, %214 : vector<8x64xf32>
      %216 = vector.extract_strided_slice %215 {offsets = [0, 0], sizes = [8, 32], strides = [1, 1]} : vector<8x64xf32> to vector<8x32xf32>
      %217 = vector.extract_strided_slice %215 {offsets = [0, 32], sizes = [8, 32], strides = [1, 1]} : vector<8x64xf32> to vector<8x32xf32>
      %218 = vector.extract_strided_slice %205 {offsets = [0, 64], sizes = [8, 32], strides = [1, 1]} : vector<8x96xf32> to vector<8x32xf32>
      %219 = vector.extract_strided_slice %207 {offsets = [0, 64], sizes = [8, 32], strides = [1, 1]} : vector<8x96xf32> to vector<8x32xf32>
      %220 = arith.addf %219, %19 : vector<8x32xf32>
      %221 = arith.mulf %216, %220 : vector<8x32xf32>
      %222 = arith.addf %218, %221 : vector<8x32xf32>
      %223 = math.tanh %222 : vector<8x32xf32>
      %cst_84 = arith.constant 1.000000e+00 : f32
      %224 = vector.broadcast %cst_84 : f32 to vector<8x32xf32>
      %225 = arith.subf %224, %217 : vector<8x32xf32>
      %226 = arith.mulf %225, %223 : vector<8x32xf32>
      %227 = arith.mulf %217, %199 : vector<8x32xf32>
      %228 = arith.addf %226, %227 : vector<8x32xf32>
      %229 = arith.truncf %228 : vector<8x32xf32> to vector<8x32xbf16>
      %c0_85 = arith.constant 0 : index
      %c6_86 = arith.constant 6 : index
      %c0_87 = arith.constant 0 : index
      %c0_88 = arith.constant 0 : index
      %230 = vector.load %arg8[%c0_85, %c6_86, %c0_87, %c0_88] : memref<1x8x8x32xbf16, #tpu.memory_space<vmem>>, vector<1x1x8x32xbf16>
      %231 = vector.shape_cast %230 : vector<1x1x8x32xbf16> to vector<8x32xbf16>
      %232 = vector.shape_cast %229 : vector<8x32xbf16> to vector<1x1x8x32xbf16>
      tpu.vector_store %arg8[%c0_85, %c6_86, %c0_87, %c0_88], %232 {strides = array<i32>} : memref<1x8x8x32xbf16, #tpu.memory_space<vmem>>, vector<1x1x8x32xbf16>,
      %c7 = arith.constant 7 : index
      %c0_89 = arith.constant 0 : index
      %c0_90 = arith.constant 0 : index
      %233 = vector.load %arg10[%c7, %c0_89, %c0_90] : memref<8x8x96xf32, #tpu.memory_space<vmem>>, vector<1x8x96xf32>
      %234 = vector.shape_cast %233 : vector<1x8x96xf32> to vector<8x96xf32>
      %235 = arith.truncf %228 : vector<8x32xf32> to vector<8x32xbf16>
      %cst_91 = arith.constant dense<0.000000e+00> : vector<8x96xf32>
      %236 = tpu.matmul %235, %15, %cst_91 {dimension_numbers = #tpu.dot_dimension_numbers<[1], [0], [0], [1], [0, 0, 1, 1], [], []>} : vector<8x32xbf16>, vector<32x96xbf16>, vector<8x96xf32> -> vector<8x96xf32>
      %237 = vector.extract_strided_slice %234 {offsets = [0, 0], sizes = [8, 64], strides = [1, 1]} : vector<8x96xf32> to vector<8x64xf32>
      %238 = vector.extract_strided_slice %236 {offsets = [0, 0], sizes = [8, 64], strides = [1, 1]} : vector<8x96xf32> to vector<8x64xf32>
      %239 = arith.addf %237, %238 : vector<8x64xf32>
      %240 = arith.negf %239 : vector<8x64xf32>
      %241 = math.exp %240 : vector<8x64xf32>
      %cst_92 = arith.constant 1.000000e+00 : f32
      %242 = vector.broadcast %cst_92 : f32 to vector<8x64xf32>
      %243 = arith.addf %242, %241 : vector<8x64xf32>
      %244 = arith.divf %242, %243 : vector<8x64xf32>
      %245 = vector.extract_strided_slice %244 {offsets = [0, 0], sizes = [8, 32], strides = [1, 1]} : vector<8x64xf32> to vector<8x32xf32>
      %246 = vector.extract_strided_slice %244 {offsets = [0, 32], sizes = [8, 32], strides = [1, 1]} : vector<8x64xf32> to vector<8x32xf32>
      %247 = vector.extract_strided_slice %234 {offsets = [0, 64], sizes = [8, 32], strides = [1, 1]} : vector<8x96xf32> to vector<8x32xf32>
      %248 = vector.extract_strided_slice %236 {offsets = [0, 64], sizes = [8, 32], strides = [1, 1]} : vector<8x96xf32> to vector<8x32xf32>
      %249 = arith.addf %248, %19 : vector<8x32xf32>
      %250 = arith.mulf %245, %249 : vector<8x32xf32>
      %251 = arith.addf %247, %250 : vector<8x32xf32>
      %252 = math.tanh %251 : vector<8x32xf32>
      %cst_93 = arith.constant 1.000000e+00 : f32
      %253 = vector.broadcast %cst_93 : f32 to vector<8x32xf32>
      %254 = arith.subf %253, %246 : vector<8x32xf32>
      %255 = arith.mulf %254, %252 : vector<8x32xf32>
      %256 = arith.mulf %246, %228 : vector<8x32xf32>
      %257 = arith.addf %255, %256 : vector<8x32xf32>
      %258 = arith.truncf %257 : vector<8x32xf32> to vector<8x32xbf16>
      %c0_94 = arith.constant 0 : index
      %c7_95 = arith.constant 7 : index
      %c0_96 = arith.constant 0 : index
      %c0_97 = arith.constant 0 : index
      %259 = vector.load %arg8[%c0_94, %c7_95, %c0_96, %c0_97] : memref<1x8x8x32xbf16, #tpu.memory_space<vmem>>, vector<1x1x8x32xbf16>
      %260 = vector.shape_cast %259 : vector<1x1x8x32xbf16> to vector<8x32xbf16>
      %261 = vector.shape_cast %258 : vector<8x32xbf16> to vector<1x1x8x32xbf16>
      tpu.vector_store %arg8[%c0_94, %c7_95, %c0_96, %c0_97], %261 {strides = array<i32>} : memref<1x8x8x32xbf16, #tpu.memory_space<vmem>>, vector<1x1x8x32xbf16>,
      %c0_98 = arith.constant 0 : index
      %c0_99 = arith.constant 0 : index
      %262 = vector.load %arg11[%c0_98, %c0_99] : memref<8x32xf32, #tpu.memory_space<vmem>>, vector<8x32xf32>
      tpu.vector_store %arg11[%c0_98, %c0_99], %257 {strides = array<i32>} : memref<8x32xf32, #tpu.memory_space<vmem>>, vector<8x32xf32>,
    } else {
    }
    %c1_i32 = arith.constant 1 : i32
    %23 = arith.cmpi eq, %arg0, %c1_i32 : i32
    %24 = arith.extui %23 : i1 to i32
    %c0_i32_20 = arith.constant 0 : i32
    %25 = arith.cmpi ne, %24, %c0_i32_20 : i32
    scf.if %25 {
      %c0_23 = arith.constant 0 : index
      %c0_24 = arith.constant 0 : index
      %29 = vector.load %arg11[%c0_23, %c0_24] : memref<8x32xf32, #tpu.memory_space<vmem>>, vector<8x32xf32>
      %c7 = arith.constant 7 : index
      %c0_25 = arith.constant 0 : index
      %c0_26 = arith.constant 0 : index
      %30 = vector.load %arg10[%c7, %c0_25, %c0_26] : memref<8x8x96xf32, #tpu.memory_space<vmem>>, vector<1x8x96xf32>
      %31 = vector.shape_cast %30 : vector<1x8x96xf32> to vector<8x96xf32>
      %32 = arith.truncf %29 : vector<8x32xf32> to vector<8x32xbf16>
      %cst_27 = arith.constant dense<0.000000e+00> : vector<8x96xf32>
      %33 = tpu.matmul %32, %15, %cst_27 {dimension_numbers = #tpu.dot_dimension_numbers<[1], [0], [0], [1], [0, 0, 1, 1], [], []>} : vector<8x32xbf16>, vector<32x96xbf16>, vector<8x96xf32> -> vector<8x96xf32>
      %34 = vector.extract_strided_slice %31 {offsets = [0, 0], sizes = [8, 64], strides = [1, 1]} : vector<8x96xf32> to vector<8x64xf32>
      %35 = vector.extract_strided_slice %33 {offsets = [0, 0], sizes = [8, 64], strides = [1, 1]} : vector<8x96xf32> to vector<8x64xf32>
      %36 = arith.addf %34, %35 : vector<8x64xf32>
      %37 = arith.negf %36 : vector<8x64xf32>
      %38 = math.exp %37 : vector<8x64xf32>
      %cst_28 = arith.constant 1.000000e+00 : f32
      %39 = vector.broadcast %cst_28 : f32 to vector<8x64xf32>
      %40 = arith.addf %39, %38 : vector<8x64xf32>
      %41 = arith.divf %39, %40 : vector<8x64xf32>
      %42 = vector.extract_strided_slice %41 {offsets = [0, 0], sizes = [8, 32], strides = [1, 1]} : vector<8x64xf32> to vector<8x32xf32>
      %43 = vector.extract_strided_slice %41 {offsets = [0, 32], sizes = [8, 32], strides = [1, 1]} : vector<8x64xf32> to vector<8x32xf32>
      %44 = vector.extract_strided_slice %31 {offsets = [0, 64], sizes = [8, 32], strides = [1, 1]} : vector<8x96xf32> to vector<8x32xf32>
      %45 = vector.extract_strided_slice %33 {offsets = [0, 64], sizes = [8, 32], strides = [1, 1]} : vector<8x96xf32> to vector<8x32xf32>
      %46 = arith.addf %45, %19 : vector<8x32xf32>
      %47 = arith.mulf %42, %46 : vector<8x32xf32>
      %48 = arith.addf %44, %47 : vector<8x32xf32>
      %49 = math.tanh %48 : vector<8x32xf32>
      %cst_29 = arith.constant 1.000000e+00 : f32
      %50 = vector.broadcast %cst_29 : f32 to vector<8x32xf32>
      %51 = arith.subf %50, %43 : vector<8x32xf32>
      %52 = arith.mulf %51, %49 : vector<8x32xf32>
      %53 = arith.mulf %43, %29 : vector<8x32xf32>
      %54 = arith.addf %52, %53 : vector<8x32xf32>
      %55 = arith.truncf %54 : vector<8x32xf32> to vector<8x32xbf16>
      %c0_30 = arith.constant 0 : index
      %c7_31 = arith.constant 7 : index
      %c0_32 = arith.constant 0 : index
      %c0_33 = arith.constant 0 : index
      %56 = vector.load %arg8[%c0_30, %c7_31, %c0_32, %c0_33] : memref<1x8x8x32xbf16, #tpu.memory_space<vmem>>, vector<1x1x8x32xbf16>
      %57 = vector.shape_cast %56 : vector<1x1x8x32xbf16> to vector<8x32xbf16>
      %58 = vector.shape_cast %55 : vector<8x32xbf16> to vector<1x1x8x32xbf16>
      tpu.vector_store %arg8[%c0_30, %c7_31, %c0_32, %c0_33], %58 {strides = array<i32>} : memref<1x8x8x32xbf16, #tpu.memory_space<vmem>>, vector<1x1x8x32xbf16>,
      %c6 = arith.constant 6 : index
      %c0_34 = arith.constant 0 : index
      %c0_35 = arith.constant 0 : index
      %59 = vector.load %arg10[%c6, %c0_34, %c0_35] : memref<8x8x96xf32, #tpu.memory_space<vmem>>, vector<1x8x96xf32>
      %60 = vector.shape_cast %59 : vector<1x8x96xf32> to vector<8x96xf32>
      %61 = arith.truncf %54 : vector<8x32xf32> to vector<8x32xbf16>
      %cst_36 = arith.constant dense<0.000000e+00> : vector<8x96xf32>
      %62 = tpu.matmul %61, %15, %cst_36 {dimension_numbers = #tpu.dot_dimension_numbers<[1], [0], [0], [1], [0, 0, 1, 1], [], []>} : vector<8x32xbf16>, vector<32x96xbf16>, vector<8x96xf32> -> vector<8x96xf32>
      %63 = vector.extract_strided_slice %60 {offsets = [0, 0], sizes = [8, 64], strides = [1, 1]} : vector<8x96xf32> to vector<8x64xf32>
      %64 = vector.extract_strided_slice %62 {offsets = [0, 0], sizes = [8, 64], strides = [1, 1]} : vector<8x96xf32> to vector<8x64xf32>
      %65 = arith.addf %63, %64 : vector<8x64xf32>
      %66 = arith.negf %65 : vector<8x64xf32>
      %67 = math.exp %66 : vector<8x64xf32>
      %cst_37 = arith.constant 1.000000e+00 : f32
      %68 = vector.broadcast %cst_37 : f32 to vector<8x64xf32>
      %69 = arith.addf %68, %67 : vector<8x64xf32>
      %70 = arith.divf %68, %69 : vector<8x64xf32>
      %71 = vector.extract_strided_slice %70 {offsets = [0, 0], sizes = [8, 32], strides = [1, 1]} : vector<8x64xf32> to vector<8x32xf32>
      %72 = vector.extract_strided_slice %70 {offsets = [0, 32], sizes = [8, 32], strides = [1, 1]} : vector<8x64xf32> to vector<8x32xf32>
      %73 = vector.extract_strided_slice %60 {offsets = [0, 64], sizes = [8, 32], strides = [1, 1]} : vector<8x96xf32> to vector<8x32xf32>
      %74 = vector.extract_strided_slice %62 {offsets = [0, 64], sizes = [8, 32], strides = [1, 1]} : vector<8x96xf32> to vector<8x32xf32>
      %75 = arith.addf %74, %19 : vector<8x32xf32>
      %76 = arith.mulf %71, %75 : vector<8x32xf32>
      %77 = arith.addf %73, %76 : vector<8x32xf32>
      %78 = math.tanh %77 : vector<8x32xf32>
      %cst_38 = arith.constant 1.000000e+00 : f32
      %79 = vector.broadcast %cst_38 : f32 to vector<8x32xf32>
      %80 = arith.subf %79, %72 : vector<8x32xf32>
      %81 = arith.mulf %80, %78 : vector<8x32xf32>
      %82 = arith.mulf %72, %54 : vector<8x32xf32>
      %83 = arith.addf %81, %82 : vector<8x32xf32>
      %84 = arith.truncf %83 : vector<8x32xf32> to vector<8x32xbf16>
      %c0_39 = arith.constant 0 : index
      %c6_40 = arith.constant 6 : index
      %c0_41 = arith.constant 0 : index
      %c0_42 = arith.constant 0 : index
      %85 = vector.load %arg8[%c0_39, %c6_40, %c0_41, %c0_42] : memref<1x8x8x32xbf16, #tpu.memory_space<vmem>>, vector<1x1x8x32xbf16>
      %86 = vector.shape_cast %85 : vector<1x1x8x32xbf16> to vector<8x32xbf16>
      %87 = vector.shape_cast %84 : vector<8x32xbf16> to vector<1x1x8x32xbf16>
      tpu.vector_store %arg8[%c0_39, %c6_40, %c0_41, %c0_42], %87 {strides = array<i32>} : memref<1x8x8x32xbf16, #tpu.memory_space<vmem>>, vector<1x1x8x32xbf16>,
      %c5 = arith.constant 5 : index
      %c0_43 = arith.constant 0 : index
      %c0_44 = arith.constant 0 : index
      %88 = vector.load %arg10[%c5, %c0_43, %c0_44] : memref<8x8x96xf32, #tpu.memory_space<vmem>>, vector<1x8x96xf32>
      %89 = vector.shape_cast %88 : vector<1x8x96xf32> to vector<8x96xf32>
      %90 = arith.truncf %83 : vector<8x32xf32> to vector<8x32xbf16>
      %cst_45 = arith.constant dense<0.000000e+00> : vector<8x96xf32>
      %91 = tpu.matmul %90, %15, %cst_45 {dimension_numbers = #tpu.dot_dimension_numbers<[1], [0], [0], [1], [0, 0, 1, 1], [], []>} : vector<8x32xbf16>, vector<32x96xbf16>, vector<8x96xf32> -> vector<8x96xf32>
      %92 = vector.extract_strided_slice %89 {offsets = [0, 0], sizes = [8, 64], strides = [1, 1]} : vector<8x96xf32> to vector<8x64xf32>
      %93 = vector.extract_strided_slice %91 {offsets = [0, 0], sizes = [8, 64], strides = [1, 1]} : vector<8x96xf32> to vector<8x64xf32>
      %94 = arith.addf %92, %93 : vector<8x64xf32>
      %95 = arith.negf %94 : vector<8x64xf32>
      %96 = math.exp %95 : vector<8x64xf32>
      %cst_46 = arith.constant 1.000000e+00 : f32
      %97 = vector.broadcast %cst_46 : f32 to vector<8x64xf32>
      %98 = arith.addf %97, %96 : vector<8x64xf32>
      %99 = arith.divf %97, %98 : vector<8x64xf32>
      %100 = vector.extract_strided_slice %99 {offsets = [0, 0], sizes = [8, 32], strides = [1, 1]} : vector<8x64xf32> to vector<8x32xf32>
      %101 = vector.extract_strided_slice %99 {offsets = [0, 32], sizes = [8, 32], strides = [1, 1]} : vector<8x64xf32> to vector<8x32xf32>
      %102 = vector.extract_strided_slice %89 {offsets = [0, 64], sizes = [8, 32], strides = [1, 1]} : vector<8x96xf32> to vector<8x32xf32>
      %103 = vector.extract_strided_slice %91 {offsets = [0, 64], sizes = [8, 32], strides = [1, 1]} : vector<8x96xf32> to vector<8x32xf32>
      %104 = arith.addf %103, %19 : vector<8x32xf32>
      %105 = arith.mulf %100, %104 : vector<8x32xf32>
      %106 = arith.addf %102, %105 : vector<8x32xf32>
      %107 = math.tanh %106 : vector<8x32xf32>
      %cst_47 = arith.constant 1.000000e+00 : f32
      %108 = vector.broadcast %cst_47 : f32 to vector<8x32xf32>
      %109 = arith.subf %108, %101 : vector<8x32xf32>
      %110 = arith.mulf %109, %107 : vector<8x32xf32>
      %111 = arith.mulf %101, %83 : vector<8x32xf32>
      %112 = arith.addf %110, %111 : vector<8x32xf32>
      %113 = arith.truncf %112 : vector<8x32xf32> to vector<8x32xbf16>
      %c0_48 = arith.constant 0 : index
      %c5_49 = arith.constant 5 : index
      %c0_50 = arith.constant 0 : index
      %c0_51 = arith.constant 0 : index
      %114 = vector.load %arg8[%c0_48, %c5_49, %c0_50, %c0_51] : memref<1x8x8x32xbf16, #tpu.memory_space<vmem>>, vector<1x1x8x32xbf16>
      %115 = vector.shape_cast %114 : vector<1x1x8x32xbf16> to vector<8x32xbf16>
      %116 = vector.shape_cast %113 : vector<8x32xbf16> to vector<1x1x8x32xbf16>
      tpu.vector_store %arg8[%c0_48, %c5_49, %c0_50, %c0_51], %116 {strides = array<i32>} : memref<1x8x8x32xbf16, #tpu.memory_space<vmem>>, vector<1x1x8x32xbf16>,
      %c4 = arith.constant 4 : index
      %c0_52 = arith.constant 0 : index
      %c0_53 = arith.constant 0 : index
      %117 = vector.load %arg10[%c4, %c0_52, %c0_53] : memref<8x8x96xf32, #tpu.memory_space<vmem>>, vector<1x8x96xf32>
      %118 = vector.shape_cast %117 : vector<1x8x96xf32> to vector<8x96xf32>
      %119 = arith.truncf %112 : vector<8x32xf32> to vector<8x32xbf16>
      %cst_54 = arith.constant dense<0.000000e+00> : vector<8x96xf32>
      %120 = tpu.matmul %119, %15, %cst_54 {dimension_numbers = #tpu.dot_dimension_numbers<[1], [0], [0], [1], [0, 0, 1, 1], [], []>} : vector<8x32xbf16>, vector<32x96xbf16>, vector<8x96xf32> -> vector<8x96xf32>
      %121 = vector.extract_strided_slice %118 {offsets = [0, 0], sizes = [8, 64], strides = [1, 1]} : vector<8x96xf32> to vector<8x64xf32>
      %122 = vector.extract_strided_slice %120 {offsets = [0, 0], sizes = [8, 64], strides = [1, 1]} : vector<8x96xf32> to vector<8x64xf32>
      %123 = arith.addf %121, %122 : vector<8x64xf32>
      %124 = arith.negf %123 : vector<8x64xf32>
      %125 = math.exp %124 : vector<8x64xf32>
      %cst_55 = arith.constant 1.000000e+00 : f32
      %126 = vector.broadcast %cst_55 : f32 to vector<8x64xf32>
      %127 = arith.addf %126, %125 : vector<8x64xf32>
      %128 = arith.divf %126, %127 : vector<8x64xf32>
      %129 = vector.extract_strided_slice %128 {offsets = [0, 0], sizes = [8, 32], strides = [1, 1]} : vector<8x64xf32> to vector<8x32xf32>
      %130 = vector.extract_strided_slice %128 {offsets = [0, 32], sizes = [8, 32], strides = [1, 1]} : vector<8x64xf32> to vector<8x32xf32>
      %131 = vector.extract_strided_slice %118 {offsets = [0, 64], sizes = [8, 32], strides = [1, 1]} : vector<8x96xf32> to vector<8x32xf32>
      %132 = vector.extract_strided_slice %120 {offsets = [0, 64], sizes = [8, 32], strides = [1, 1]} : vector<8x96xf32> to vector<8x32xf32>
      %133 = arith.addf %132, %19 : vector<8x32xf32>
      %134 = arith.mulf %129, %133 : vector<8x32xf32>
      %135 = arith.addf %131, %134 : vector<8x32xf32>
      %136 = math.tanh %135 : vector<8x32xf32>
      %cst_56 = arith.constant 1.000000e+00 : f32
      %137 = vector.broadcast %cst_56 : f32 to vector<8x32xf32>
      %138 = arith.subf %137, %130 : vector<8x32xf32>
      %139 = arith.mulf %138, %136 : vector<8x32xf32>
      %140 = arith.mulf %130, %112 : vector<8x32xf32>
      %141 = arith.addf %139, %140 : vector<8x32xf32>
      %142 = arith.truncf %141 : vector<8x32xf32> to vector<8x32xbf16>
      %c0_57 = arith.constant 0 : index
      %c4_58 = arith.constant 4 : index
      %c0_59 = arith.constant 0 : index
      %c0_60 = arith.constant 0 : index
      %143 = vector.load %arg8[%c0_57, %c4_58, %c0_59, %c0_60] : memref<1x8x8x32xbf16, #tpu.memory_space<vmem>>, vector<1x1x8x32xbf16>
      %144 = vector.shape_cast %143 : vector<1x1x8x32xbf16> to vector<8x32xbf16>
      %145 = vector.shape_cast %142 : vector<8x32xbf16> to vector<1x1x8x32xbf16>
      tpu.vector_store %arg8[%c0_57, %c4_58, %c0_59, %c0_60], %145 {strides = array<i32>} : memref<1x8x8x32xbf16, #tpu.memory_space<vmem>>, vector<1x1x8x32xbf16>,
      %c3 = arith.constant 3 : index
      %c0_61 = arith.constant 0 : index
      %c0_62 = arith.constant 0 : index
      %146 = vector.load %arg10[%c3, %c0_61, %c0_62] : memref<8x8x96xf32, #tpu.memory_space<vmem>>, vector<1x8x96xf32>
      %147 = vector.shape_cast %146 : vector<1x8x96xf32> to vector<8x96xf32>
      %148 = arith.truncf %141 : vector<8x32xf32> to vector<8x32xbf16>
      %cst_63 = arith.constant dense<0.000000e+00> : vector<8x96xf32>
      %149 = tpu.matmul %148, %15, %cst_63 {dimension_numbers = #tpu.dot_dimension_numbers<[1], [0], [0], [1], [0, 0, 1, 1], [], []>} : vector<8x32xbf16>, vector<32x96xbf16>, vector<8x96xf32> -> vector<8x96xf32>
      %150 = vector.extract_strided_slice %147 {offsets = [0, 0], sizes = [8, 64], strides = [1, 1]} : vector<8x96xf32> to vector<8x64xf32>
      %151 = vector.extract_strided_slice %149 {offsets = [0, 0], sizes = [8, 64], strides = [1, 1]} : vector<8x96xf32> to vector<8x64xf32>
      %152 = arith.addf %150, %151 : vector<8x64xf32>
      %153 = arith.negf %152 : vector<8x64xf32>
      %154 = math.exp %153 : vector<8x64xf32>
      %cst_64 = arith.constant 1.000000e+00 : f32
      %155 = vector.broadcast %cst_64 : f32 to vector<8x64xf32>
      %156 = arith.addf %155, %154 : vector<8x64xf32>
      %157 = arith.divf %155, %156 : vector<8x64xf32>
      %158 = vector.extract_strided_slice %157 {offsets = [0, 0], sizes = [8, 32], strides = [1, 1]} : vector<8x64xf32> to vector<8x32xf32>
      %159 = vector.extract_strided_slice %157 {offsets = [0, 32], sizes = [8, 32], strides = [1, 1]} : vector<8x64xf32> to vector<8x32xf32>
      %160 = vector.extract_strided_slice %147 {offsets = [0, 64], sizes = [8, 32], strides = [1, 1]} : vector<8x96xf32> to vector<8x32xf32>
      %161 = vector.extract_strided_slice %149 {offsets = [0, 64], sizes = [8, 32], strides = [1, 1]} : vector<8x96xf32> to vector<8x32xf32>
      %162 = arith.addf %161, %19 : vector<8x32xf32>
      %163 = arith.mulf %158, %162 : vector<8x32xf32>
      %164 = arith.addf %160, %163 : vector<8x32xf32>
      %165 = math.tanh %164 : vector<8x32xf32>
      %cst_65 = arith.constant 1.000000e+00 : f32
      %166 = vector.broadcast %cst_65 : f32 to vector<8x32xf32>
      %167 = arith.subf %166, %159 : vector<8x32xf32>
      %168 = arith.mulf %167, %165 : vector<8x32xf32>
      %169 = arith.mulf %159, %141 : vector<8x32xf32>
      %170 = arith.addf %168, %169 : vector<8x32xf32>
      %171 = arith.truncf %170 : vector<8x32xf32> to vector<8x32xbf16>
      %c0_66 = arith.constant 0 : index
      %c3_67 = arith.constant 3 : index
      %c0_68 = arith.constant 0 : index
      %c0_69 = arith.constant 0 : index
      %172 = vector.load %arg8[%c0_66, %c3_67, %c0_68, %c0_69] : memref<1x8x8x32xbf16, #tpu.memory_space<vmem>>, vector<1x1x8x32xbf16>
      %173 = vector.shape_cast %172 : vector<1x1x8x32xbf16> to vector<8x32xbf16>
      %174 = vector.shape_cast %171 : vector<8x32xbf16> to vector<1x1x8x32xbf16>
      tpu.vector_store %arg8[%c0_66, %c3_67, %c0_68, %c0_69], %174 {strides = array<i32>} : memref<1x8x8x32xbf16, #tpu.memory_space<vmem>>, vector<1x1x8x32xbf16>,
      %c2 = arith.constant 2 : index
      %c0_70 = arith.constant 0 : index
      %c0_71 = arith.constant 0 : index
      %175 = vector.load %arg10[%c2, %c0_70, %c0_71] : memref<8x8x96xf32, #tpu.memory_space<vmem>>, vector<1x8x96xf32>
      %176 = vector.shape_cast %175 : vector<1x8x96xf32> to vector<8x96xf32>
      %177 = arith.truncf %170 : vector<8x32xf32> to vector<8x32xbf16>
      %cst_72 = arith.constant dense<0.000000e+00> : vector<8x96xf32>
      %178 = tpu.matmul %177, %15, %cst_72 {dimension_numbers = #tpu.dot_dimension_numbers<[1], [0], [0], [1], [0, 0, 1, 1], [], []>} : vector<8x32xbf16>, vector<32x96xbf16>, vector<8x96xf32> -> vector<8x96xf32>
      %179 = vector.extract_strided_slice %176 {offsets = [0, 0], sizes = [8, 64], strides = [1, 1]} : vector<8x96xf32> to vector<8x64xf32>
      %180 = vector.extract_strided_slice %178 {offsets = [0, 0], sizes = [8, 64], strides = [1, 1]} : vector<8x96xf32> to vector<8x64xf32>
      %181 = arith.addf %179, %180 : vector<8x64xf32>
      %182 = arith.negf %181 : vector<8x64xf32>
      %183 = math.exp %182 : vector<8x64xf32>
      %cst_73 = arith.constant 1.000000e+00 : f32
      %184 = vector.broadcast %cst_73 : f32 to vector<8x64xf32>
      %185 = arith.addf %184, %183 : vector<8x64xf32>
      %186 = arith.divf %184, %185 : vector<8x64xf32>
      %187 = vector.extract_strided_slice %186 {offsets = [0, 0], sizes = [8, 32], strides = [1, 1]} : vector<8x64xf32> to vector<8x32xf32>
      %188 = vector.extract_strided_slice %186 {offsets = [0, 32], sizes = [8, 32], strides = [1, 1]} : vector<8x64xf32> to vector<8x32xf32>
      %189 = vector.extract_strided_slice %176 {offsets = [0, 64], sizes = [8, 32], strides = [1, 1]} : vector<8x96xf32> to vector<8x32xf32>
      %190 = vector.extract_strided_slice %178 {offsets = [0, 64], sizes = [8, 32], strides = [1, 1]} : vector<8x96xf32> to vector<8x32xf32>
      %191 = arith.addf %190, %19 : vector<8x32xf32>
      %192 = arith.mulf %187, %191 : vector<8x32xf32>
      %193 = arith.addf %189, %192 : vector<8x32xf32>
      %194 = math.tanh %193 : vector<8x32xf32>
      %cst_74 = arith.constant 1.000000e+00 : f32
      %195 = vector.broadcast %cst_74 : f32 to vector<8x32xf32>
      %196 = arith.subf %195, %188 : vector<8x32xf32>
      %197 = arith.mulf %196, %194 : vector<8x32xf32>
      %198 = arith.mulf %188, %170 : vector<8x32xf32>
      %199 = arith.addf %197, %198 : vector<8x32xf32>
      %200 = arith.truncf %199 : vector<8x32xf32> to vector<8x32xbf16>
      %c0_75 = arith.constant 0 : index
      %c2_76 = arith.constant 2 : index
      %c0_77 = arith.constant 0 : index
      %c0_78 = arith.constant 0 : index
      %201 = vector.load %arg8[%c0_75, %c2_76, %c0_77, %c0_78] : memref<1x8x8x32xbf16, #tpu.memory_space<vmem>>, vector<1x1x8x32xbf16>
      %202 = vector.shape_cast %201 : vector<1x1x8x32xbf16> to vector<8x32xbf16>
      %203 = vector.shape_cast %200 : vector<8x32xbf16> to vector<1x1x8x32xbf16>
      tpu.vector_store %arg8[%c0_75, %c2_76, %c0_77, %c0_78], %203 {strides = array<i32>} : memref<1x8x8x32xbf16, #tpu.memory_space<vmem>>, vector<1x1x8x32xbf16>,
      %c1 = arith.constant 1 : index
      %c0_79 = arith.constant 0 : index
      %c0_80 = arith.constant 0 : index
      %204 = vector.load %arg10[%c1, %c0_79, %c0_80] : memref<8x8x96xf32, #tpu.memory_space<vmem>>, vector<1x8x96xf32>
      %205 = vector.shape_cast %204 : vector<1x8x96xf32> to vector<8x96xf32>
      %206 = arith.truncf %199 : vector<8x32xf32> to vector<8x32xbf16>
      %cst_81 = arith.constant dense<0.000000e+00> : vector<8x96xf32>
      %207 = tpu.matmul %206, %15, %cst_81 {dimension_numbers = #tpu.dot_dimension_numbers<[1], [0], [0], [1], [0, 0, 1, 1], [], []>} : vector<8x32xbf16>, vector<32x96xbf16>, vector<8x96xf32> -> vector<8x96xf32>
      %208 = vector.extract_strided_slice %205 {offsets = [0, 0], sizes = [8, 64], strides = [1, 1]} : vector<8x96xf32> to vector<8x64xf32>
      %209 = vector.extract_strided_slice %207 {offsets = [0, 0], sizes = [8, 64], strides = [1, 1]} : vector<8x96xf32> to vector<8x64xf32>
      %210 = arith.addf %208, %209 : vector<8x64xf32>
      %211 = arith.negf %210 : vector<8x64xf32>
      %212 = math.exp %211 : vector<8x64xf32>
      %cst_82 = arith.constant 1.000000e+00 : f32
      %213 = vector.broadcast %cst_82 : f32 to vector<8x64xf32>
      %214 = arith.addf %213, %212 : vector<8x64xf32>
      %215 = arith.divf %213, %214 : vector<8x64xf32>
      %216 = vector.extract_strided_slice %215 {offsets = [0, 0], sizes = [8, 32], strides = [1, 1]} : vector<8x64xf32> to vector<8x32xf32>
      %217 = vector.extract_strided_slice %215 {offsets = [0, 32], sizes = [8, 32], strides = [1, 1]} : vector<8x64xf32> to vector<8x32xf32>
      %218 = vector.extract_strided_slice %205 {offsets = [0, 64], sizes = [8, 32], strides = [1, 1]} : vector<8x96xf32> to vector<8x32xf32>
      %219 = vector.extract_strided_slice %207 {offsets = [0, 64], sizes = [8, 32], strides = [1, 1]} : vector<8x96xf32> to vector<8x32xf32>
      %220 = arith.addf %219, %19 : vector<8x32xf32>
      %221 = arith.mulf %216, %220 : vector<8x32xf32>
      %222 = arith.addf %218, %221 : vector<8x32xf32>
      %223 = math.tanh %222 : vector<8x32xf32>
      %cst_83 = arith.constant 1.000000e+00 : f32
      %224 = vector.broadcast %cst_83 : f32 to vector<8x32xf32>
      %225 = arith.subf %224, %217 : vector<8x32xf32>
      %226 = arith.mulf %225, %223 : vector<8x32xf32>
      %227 = arith.mulf %217, %199 : vector<8x32xf32>
      %228 = arith.addf %226, %227 : vector<8x32xf32>
      %229 = arith.truncf %228 : vector<8x32xf32> to vector<8x32xbf16>
      %c0_84 = arith.constant 0 : index
      %c1_85 = arith.constant 1 : index
      %c0_86 = arith.constant 0 : index
      %c0_87 = arith.constant 0 : index
      %230 = vector.load %arg8[%c0_84, %c1_85, %c0_86, %c0_87] : memref<1x8x8x32xbf16, #tpu.memory_space<vmem>>, vector<1x1x8x32xbf16>
      %231 = vector.shape_cast %230 : vector<1x1x8x32xbf16> to vector<8x32xbf16>
      %232 = vector.shape_cast %229 : vector<8x32xbf16> to vector<1x1x8x32xbf16>
      tpu.vector_store %arg8[%c0_84, %c1_85, %c0_86, %c0_87], %232 {strides = array<i32>} : memref<1x8x8x32xbf16, #tpu.memory_space<vmem>>, vector<1x1x8x32xbf16>,
      %c0_88 = arith.constant 0 : index
      %c0_89 = arith.constant 0 : index
      %c0_90 = arith.constant 0 : index
      %233 = vector.load %arg10[%c0_88, %c0_89, %c0_90] : memref<8x8x96xf32, #tpu.memory_space<vmem>>, vector<1x8x96xf32>
      %234 = vector.shape_cast %233 : vector<1x8x96xf32> to vector<8x96xf32>
      %235 = arith.truncf %228 : vector<8x32xf32> to vector<8x32xbf16>
      %cst_91 = arith.constant dense<0.000000e+00> : vector<8x96xf32>
      %236 = tpu.matmul %235, %15, %cst_91 {dimension_numbers = #tpu.dot_dimension_numbers<[1], [0], [0], [1], [0, 0, 1, 1], [], []>} : vector<8x32xbf16>, vector<32x96xbf16>, vector<8x96xf32> -> vector<8x96xf32>
      %237 = vector.extract_strided_slice %234 {offsets = [0, 0], sizes = [8, 64], strides = [1, 1]} : vector<8x96xf32> to vector<8x64xf32>
      %238 = vector.extract_strided_slice %236 {offsets = [0, 0], sizes = [8, 64], strides = [1, 1]} : vector<8x96xf32> to vector<8x64xf32>
      %239 = arith.addf %237, %238 : vector<8x64xf32>
      %240 = arith.negf %239 : vector<8x64xf32>
      %241 = math.exp %240 : vector<8x64xf32>
      %cst_92 = arith.constant 1.000000e+00 : f32
      %242 = vector.broadcast %cst_92 : f32 to vector<8x64xf32>
      %243 = arith.addf %242, %241 : vector<8x64xf32>
      %244 = arith.divf %242, %243 : vector<8x64xf32>
      %245 = vector.extract_strided_slice %244 {offsets = [0, 0], sizes = [8, 32], strides = [1, 1]} : vector<8x64xf32> to vector<8x32xf32>
      %246 = vector.extract_strided_slice %244 {offsets = [0, 32], sizes = [8, 32], strides = [1, 1]} : vector<8x64xf32> to vector<8x32xf32>
      %247 = vector.extract_strided_slice %234 {offsets = [0, 64], sizes = [8, 32], strides = [1, 1]} : vector<8x96xf32> to vector<8x32xf32>
      %248 = vector.extract_strided_slice %236 {offsets = [0, 64], sizes = [8, 32], strides = [1, 1]} : vector<8x96xf32> to vector<8x32xf32>
      %249 = arith.addf %248, %19 : vector<8x32xf32>
      %250 = arith.mulf %245, %249 : vector<8x32xf32>
      %251 = arith.addf %247, %250 : vector<8x32xf32>
      %252 = math.tanh %251 : vector<8x32xf32>
      %cst_93 = arith.constant 1.000000e+00 : f32
      %253 = vector.broadcast %cst_93 : f32 to vector<8x32xf32>
      %254 = arith.subf %253, %246 : vector<8x32xf32>
      %255 = arith.mulf %254, %252 : vector<8x32xf32>
      %256 = arith.mulf %246, %228 : vector<8x32xf32>
      %257 = arith.addf %255, %256 : vector<8x32xf32>
      %258 = arith.truncf %257 : vector<8x32xf32> to vector<8x32xbf16>
      %c0_94 = arith.constant 0 : index
      %c0_95 = arith.constant 0 : index
      %c0_96 = arith.constant 0 : index
      %c0_97 = arith.constant 0 : index
      %259 = vector.load %arg8[%c0_94, %c0_95, %c0_96, %c0_97] : memref<1x8x8x32xbf16, #tpu.memory_space<vmem>>, vector<1x1x8x32xbf16>
      %260 = vector.shape_cast %259 : vector<1x1x8x32xbf16> to vector<8x32xbf16>
      %261 = vector.shape_cast %258 : vector<8x32xbf16> to vector<1x1x8x32xbf16>
      tpu.vector_store %arg8[%c0_94, %c0_95, %c0_96, %c0_97], %261 {strides = array<i32>} : memref<1x8x8x32xbf16, #tpu.memory_space<vmem>>, vector<1x1x8x32xbf16>,
      %c0_98 = arith.constant 0 : index
      %c0_99 = arith.constant 0 : index
      %262 = vector.load %arg11[%c0_98, %c0_99] : memref<8x32xf32, #tpu.memory_space<vmem>>, vector<8x32xf32>
      tpu.vector_store %arg11[%c0_98, %c0_99], %257 {strides = array<i32>} : memref<8x32xf32, #tpu.memory_space<vmem>>, vector<8x32xf32>,
    } else {
    }
    %c0_i32_21 = arith.constant 0 : i32
    %26 = arith.cmpi eq, %arg1, %c0_i32_21 : i32
    %27 = arith.extui %26 : i1 to i32
    %c0_i32_22 = arith.constant 0 : i32
    %28 = arith.cmpi ne, %27, %c0_i32_22 : i32
    scf.if %28 {
      %c0_23 = arith.constant 0 : index
      %c0_24 = arith.constant 0 : index
      %29 = vector.load %arg11[%c0_23, %c0_24] : memref<8x32xf32, #tpu.memory_space<vmem>>, vector<8x32xf32>
      %c0_25 = arith.constant 0 : index
      %c0_26 = arith.constant 0 : index
      %c0_27 = arith.constant 0 : index
      %30 = vector.load %arg9[%c0_25, %c0_26, %c0_27] : memref<1x8x32xf32, #tpu.memory_space<vmem>>, vector<1x8x32xf32>
      %31 = vector.shape_cast %30 : vector<1x8x32xf32> to vector<8x32xf32>
      %32 = vector.shape_cast %29 : vector<8x32xf32> to vector<1x8x32xf32>
      tpu.vector_store %arg9[%c0_25, %c0_26, %c0_27], %32 {strides = array<i32>} : memref<1x8x32xf32, #tpu.memory_space<vmem>>, vector<1x8x32xf32>,
    } else {
    }
    return
  }
  func.func @transform_0(%arg0: i32, %arg1: i32) -> (i32, i32, i32) {
    %c2_i32 = arith.constant 2 : i32
    %0 = arith.muli %c2_i32, %arg1 : i32
    %c0_i32 = arith.constant 0 : i32
    %1 = arith.subi %c0_i32, %0 : i32
    %2 = arith.muli %arg0, %1 : i32
    %3 = arith.addi %arg1, %2 : i32
    %c0_i32_0 = arith.constant 0 : i32
    %c0_i32_1 = arith.constant 0 : i32
    %c0_i32_2 = arith.constant 0 : i32
    return %3, %c0_i32_0, %c0_i32_1 : i32, i32, i32
  }
  func.func @transform_1(%arg0: i32, %arg1: i32) -> (i32, i32, i32) {
    %c0_i32 = arith.constant 0 : i32
    %c0_i32_0 = arith.constant 0 : i32
    %c0_i32_1 = arith.constant 0 : i32
    return %arg0, %c0_i32, %c0_i32_0 : i32, i32, i32
  }
  func.func @transform_2(%arg0: i32, %arg1: i32) -> (i32, i32, i32) {
    %c0_i32 = arith.constant 0 : i32
    %c0_i32_0 = arith.constant 0 : i32
    %c0_i32_1 = arith.constant 0 : i32
    return %arg0, %c0_i32, %c0_i32_0 : i32, i32, i32
  }
  func.func @transform_3(%arg0: i32, %arg1: i32) -> (i32, i32, i32) {
    %c0_i32 = arith.constant 0 : i32
    %c0_i32_0 = arith.constant 0 : i32
    %c0_i32_1 = arith.constant 0 : i32
    return %arg0, %c0_i32, %c0_i32_0 : i32, i32, i32
  }
  func.func @transform_4(%arg0: i32, %arg1: i32) -> (i32, i32, i32) {
    %c0_i32 = arith.constant 0 : i32
    %c0_i32_0 = arith.constant 0 : i32
    %c0_i32_1 = arith.constant 0 : i32
    return %arg0, %c0_i32, %c0_i32_0 : i32, i32, i32
  }
  func.func @transform_5(%arg0: i32, %arg1: i32) -> (i32, i32, i32) {
    %c0_i32 = arith.constant 0 : i32
    %c0_i32_0 = arith.constant 0 : i32
    %c0_i32_1 = arith.constant 0 : i32
    return %arg0, %c0_i32, %c0_i32_0 : i32, i32, i32
  }
  func.func @transform_6(%arg0: i32, %arg1: i32) -> (i32, i32, i32, i32) {
    %c2_i32 = arith.constant 2 : i32
    %0 = arith.muli %c2_i32, %arg1 : i32
    %c0_i32 = arith.constant 0 : i32
    %1 = arith.subi %c0_i32, %0 : i32
    %2 = arith.muli %arg0, %1 : i32
    %3 = arith.addi %arg1, %2 : i32
    %c0_i32_0 = arith.constant 0 : i32
    %c0_i32_1 = arith.constant 0 : i32
    %c0_i32_2 = arith.constant 0 : i32
    return %arg0, %3, %c0_i32_0, %c0_i32_1 : i32, i32, i32, i32
  }
  func.func @transform_7(%arg0: i32, %arg1: i32) -> (i32, i32, i32) {
    %c0_i32 = arith.constant 0 : i32
    %c0_i32_0 = arith.constant 0 : i32
    %c0_i32_1 = arith.constant 0 : i32
    return %arg0, %c0_i32, %c0_i32_0 : i32, i32, i32
  }
}

module attributes {stable_mosaic.version = 11 : i64} {
  func.func @_gru_rec_kernel(%arg0: i32, %arg1: i32, %arg2: memref<8x8x32xbf16, #tpu.memory_space<vmem>>, %arg3: memref<1x32x96xbf16, #tpu.memory_space<vmem>>, %arg4: memref<1x32x96xbf16, #tpu.memory_space<vmem>>, %arg5: memref<1x1x96xf32, #tpu.memory_space<vmem>>, %arg6: memref<1x1x32xf32, #tpu.memory_space<vmem>>, %arg7: memref<1x8x32xf32, #tpu.memory_space<vmem>>, %arg8: memref<1x8x8x32xbf16, #tpu.memory_space<vmem>>, %arg9: memref<1x8x32xf32, #tpu.memory_space<vmem>>, %arg10: memref<8x8x96xf32, #tpu.memory_space<vmem>>, %arg11: memref<8x32xf32, #tpu.memory_space<vmem>>) attributes {dimension_semantics = [#tpu.dimension_semantics<parallel>, #tpu.dimension_semantics<arbitrary>], iteration_bounds = array<i64: 2, 1>, scalar_prefetch = 0 : i64, scratch_operands = 2 : i64, tpu.core_type = #tpu.core_type<tc>, window_params = [{transform_indices = @transform_0, window_bounds = array<i64: 8, 8, 32>}, {transform_indices = @transform_1, window_bounds = array<i64: 1, 32, 96>}, {transform_indices = @transform_2, window_bounds = array<i64: 1, 32, 96>}, {transform_indices = @transform_3, window_bounds = array<i64: 1, 1, 96>}, {transform_indices = @transform_4, window_bounds = array<i64: 1, 1, 32>}, {transform_indices = @transform_5, window_bounds = array<i64: 1, 8, 32>}, {transform_indices = @transform_6, window_bounds = array<i64: 1, 8, 8, 32>}, {transform_indices = @transform_7, window_bounds = array<i64: 1, 8, 32>}]} {
    %c0_i32 = arith.constant 0 : i32
    %0 = arith.cmpi eq, %arg1, %c0_i32 : i32
    %1 = arith.extui %0 : i1 to i32
    %c0_i32_0 = arith.constant 0 : i32
    %2 = arith.cmpi ne, %1, %c0_i32_0 : i32
    scf.if %2 {
      %c0_23 = arith.constant 0 : index
      %c0_24 = arith.constant 0 : index
      %c0_25 = arith.constant 0 : index
      %29 = vector.load %arg7[%c0_23, %c0_24, %c0_25] : memref<1x8x32xf32, #tpu.memory_space<vmem>>, vector<1x8x32xf32>
      %30 = vector.shape_cast %29 : vector<1x8x32xf32> to vector<8x32xf32>
      %c0_26 = arith.constant 0 : index
      %c0_27 = arith.constant 0 : index
      %31 = vector.load %arg11[%c0_26, %c0_27] : memref<8x32xf32, #tpu.memory_space<vmem>>, vector<8x32xf32>
      tpu.vector_store %arg11[%c0_26, %c0_27], %30 {strides = array<i32>} : memref<8x32xf32, #tpu.memory_space<vmem>>, vector<8x32xf32>,
    } else {
    }
    %c0 = arith.constant 0 : index
    %c0_1 = arith.constant 0 : index
    %c0_2 = arith.constant 0 : index
    %3 = vector.load %arg2[%c0, %c0_1, %c0_2] : memref<8x8x32xbf16, #tpu.memory_space<vmem>>, vector<8x8x32xbf16>
    %4 = vector.shape_cast %3 : vector<8x8x32xbf16> to vector<64x32xbf16>
    %c0_3 = arith.constant 0 : index
    %c0_4 = arith.constant 0 : index
    %c0_5 = arith.constant 0 : index
    %5 = vector.load %arg3[%c0_3, %c0_4, %c0_5] : memref<1x32x96xbf16, #tpu.memory_space<vmem>>, vector<1x32x96xbf16>
    %6 = vector.shape_cast %5 : vector<1x32x96xbf16> to vector<32x96xbf16>
    %cst = arith.constant dense<0.000000e+00> : vector<64x96xf32>
    %7 = tpu.matmul %4, %6, %cst {dimension_numbers = #tpu.dot_dimension_numbers<[1], [0], [0], [1], [0, 0, 1, 1], [], []>} : vector<64x32xbf16>, vector<32x96xbf16>, vector<64x96xf32> -> vector<64x96xf32>
    %c0_6 = arith.constant 0 : index
    %c0_7 = arith.constant 0 : index
    %c0_8 = arith.constant 0 : index
    %8 = vector.load %arg5[%c0_6, %c0_7, %c0_8] : memref<1x1x96xf32, #tpu.memory_space<vmem>>, vector<1x1x96xf32>
    %9 = vector.shape_cast %8 : vector<1x1x96xf32> to vector<1x96xf32>
    %10 = vector.broadcast %9 : vector<1x96xf32> to vector<64x96xf32>
    %11 = arith.addf %7, %10 : vector<64x96xf32>
    %12 = vector.shape_cast %11 : vector<64x96xf32> to vector<8x8x96xf32>
    %c0_9 = arith.constant 0 : index
    %c0_10 = arith.constant 0 : index
    %c0_11 = arith.constant 0 : index
    %13 = vector.load %arg10[%c0_9, %c0_10, %c0_11] : memref<8x8x96xf32, #tpu.memory_space<vmem>>, vector<8x8x96xf32>
    tpu.vector_store %arg10[%c0_9, %c0_10, %c0_11], %12 {strides = array<i32>} : memref<8x8x96xf32, #tpu.memory_space<vmem>>, vector<8x8x96xf32>,
    %c0_12 = arith.constant 0 : index
    %c0_13 = arith.constant 0 : index
    %c0_14 = arith.constant 0 : index
    %14 = vector.load %arg4[%c0_12, %c0_13, %c0_14] : memref<1x32x96xbf16, #tpu.memory_space<vmem>>, vector<1x32x96xbf16>
    %15 = vector.shape_cast %14 : vector<1x32x96xbf16> to vector<32x96xbf16>
    %c0_15 = arith.constant 0 : index
    %c0_16 = arith.constant 0 : index
    %c0_17 = arith.constant 0 : index
    %16 = vector.load %arg6[%c0_15, %c0_16, %c0_17] : memref<1x1x32xf32, #tpu.memory_space<vmem>>, vector<1x1x32xf32>
    %17 = vector.shape_cast %16 : vector<1x1x32xf32> to vector<1x32xf32>
    %18 = vector.shape_cast %17 : vector<1x32xf32> to vector<1x32xf32>
    %19 = vector.broadcast %18 : vector<1x32xf32> to vector<8x32xf32>
    %c0_i32_18 = arith.constant 0 : i32
    %20 = arith.cmpi eq, %arg0, %c0_i32_18 : i32
    %21 = arith.extui %20 : i1 to i32
    %c0_i32_19 = arith.constant 0 : i32
    %22 = arith.cmpi ne, %21, %c0_i32_19 : i32
    scf.if %22 {
      %c0_23 = arith.constant 0 : index
      %c0_24 = arith.constant 0 : index
      %29 = vector.load %arg11[%c0_23, %c0_24] : memref<8x32xf32, #tpu.memory_space<vmem>>, vector<8x32xf32>
      %c0_25 = arith.constant 0 : index
      %c0_26 = arith.constant 0 : index
      %c0_27 = arith.constant 0 : index
      %30 = vector.load %arg10[%c0_25, %c0_26, %c0_27] : memref<8x8x96xf32, #tpu.memory_space<vmem>>, vector<1x8x96xf32>
      %31 = vector.shape_cast %30 : vector<1x8x96xf32> to vector<8x96xf32>
      %32 = arith.truncf %29 : vector<8x32xf32> to vector<8x32xbf16>
      %cst_28 = arith.constant dense<0.000000e+00> : vector<8x96xf32>
      %33 = tpu.matmul %32, %15, %cst_28 {dimension_numbers = #tpu.dot_dimension_numbers<[1], [0], [0], [1], [0, 0, 1, 1], [], []>} : vector<8x32xbf16>, vector<32x96xbf16>, vector<8x96xf32> -> vector<8x96xf32>
      %34 = vector.extract_strided_slice %31 {offsets = [0, 0], sizes = [8, 64], strides = [1, 1]} : vector<8x96xf32> to vector<8x64xf32>
      %35 = vector.extract_strided_slice %33 {offsets = [0, 0], sizes = [8, 64], strides = [1, 1]} : vector<8x96xf32> to vector<8x64xf32>
      %36 = arith.addf %34, %35 : vector<8x64xf32>
      %37 = arith.negf %36 : vector<8x64xf32>
      %38 = math.exp %37 : vector<8x64xf32>
      %cst_29 = arith.constant 1.000000e+00 : f32
      %39 = vector.broadcast %cst_29 : f32 to vector<8x64xf32>
      %40 = arith.addf %39, %38 : vector<8x64xf32>
      %41 = arith.divf %39, %40 : vector<8x64xf32>
      %42 = vector.extract_strided_slice %41 {offsets = [0, 0], sizes = [8, 32], strides = [1, 1]} : vector<8x64xf32> to vector<8x32xf32>
      %43 = vector.extract_strided_slice %41 {offsets = [0, 32], sizes = [8, 32], strides = [1, 1]} : vector<8x64xf32> to vector<8x32xf32>
      %44 = vector.extract_strided_slice %31 {offsets = [0, 64], sizes = [8, 32], strides = [1, 1]} : vector<8x96xf32> to vector<8x32xf32>
      %45 = vector.extract_strided_slice %33 {offsets = [0, 64], sizes = [8, 32], strides = [1, 1]} : vector<8x96xf32> to vector<8x32xf32>
      %46 = arith.addf %45, %19 : vector<8x32xf32>
      %47 = arith.mulf %42, %46 : vector<8x32xf32>
      %48 = arith.addf %44, %47 : vector<8x32xf32>
      %49 = math.tanh %48 : vector<8x32xf32>
      %cst_30 = arith.constant 1.000000e+00 : f32
      %50 = vector.broadcast %cst_30 : f32 to vector<8x32xf32>
      %51 = arith.subf %50, %43 : vector<8x32xf32>
      %52 = arith.mulf %51, %49 : vector<8x32xf32>
      %53 = arith.mulf %43, %29 : vector<8x32xf32>
      %54 = arith.addf %52, %53 : vector<8x32xf32>
      %55 = arith.truncf %54 : vector<8x32xf32> to vector<8x32xbf16>
      %c0_31 = arith.constant 0 : index
      %c0_32 = arith.constant 0 : index
      %c0_33 = arith.constant 0 : index
      %c0_34 = arith.constant 0 : index
      %56 = vector.load %arg8[%c0_31, %c0_32, %c0_33, %c0_34] : memref<1x8x8x32xbf16, #tpu.memory_space<vmem>>, vector<1x1x8x32xbf16>
      %57 = vector.shape_cast %56 : vector<1x1x8x32xbf16> to vector<8x32xbf16>
      %58 = vector.shape_cast %55 : vector<8x32xbf16> to vector<1x1x8x32xbf16>
      tpu.vector_store %arg8[%c0_31, %c0_32, %c0_33, %c0_34], %58 {strides = array<i32>} : memref<1x8x8x32xbf16, #tpu.memory_space<vmem>>, vector<1x1x8x32xbf16>,
      %c1 = arith.constant 1 : index
      %c0_35 = arith.constant 0 : index
      %c0_36 = arith.constant 0 : index
      %59 = vector.load %arg10[%c1, %c0_35, %c0_36] : memref<8x8x96xf32, #tpu.memory_space<vmem>>, vector<1x8x96xf32>
      %60 = vector.shape_cast %59 : vector<1x8x96xf32> to vector<8x96xf32>
      %61 = arith.truncf %54 : vector<8x32xf32> to vector<8x32xbf16>
      %cst_37 = arith.constant dense<0.000000e+00> : vector<8x96xf32>
      %62 = tpu.matmul %61, %15, %cst_37 {dimension_numbers = #tpu.dot_dimension_numbers<[1], [0], [0], [1], [0, 0, 1, 1], [], []>} : vector<8x32xbf16>, vector<32x96xbf16>, vector<8x96xf32> -> vector<8x96xf32>
      %63 = vector.extract_strided_slice %60 {offsets = [0, 0], sizes = [8, 64], strides = [1, 1]} : vector<8x96xf32> to vector<8x64xf32>
      %64 = vector.extract_strided_slice %62 {offsets = [0, 0], sizes = [8, 64], strides = [1, 1]} : vector<8x96xf32> to vector<8x64xf32>
      %65 = arith.addf %63, %64 : vector<8x64xf32>
      %66 = arith.negf %65 : vector<8x64xf32>
      %67 = math.exp %66 : vector<8x64xf32>
      %cst_38 = arith.constant 1.000000e+00 : f32
      %68 = vector.broadcast %cst_38 : f32 to vector<8x64xf32>
      %69 = arith.addf %68, %67 : vector<8x64xf32>
      %70 = arith.divf %68, %69 : vector<8x64xf32>
      %71 = vector.extract_strided_slice %70 {offsets = [0, 0], sizes = [8, 32], strides = [1, 1]} : vector<8x64xf32> to vector<8x32xf32>
      %72 = vector.extract_strided_slice %70 {offsets = [0, 32], sizes = [8, 32], strides = [1, 1]} : vector<8x64xf32> to vector<8x32xf32>
      %73 = vector.extract_strided_slice %60 {offsets = [0, 64], sizes = [8, 32], strides = [1, 1]} : vector<8x96xf32> to vector<8x32xf32>
      %74 = vector.extract_strided_slice %62 {offsets = [0, 64], sizes = [8, 32], strides = [1, 1]} : vector<8x96xf32> to vector<8x32xf32>
      %75 = arith.addf %74, %19 : vector<8x32xf32>
      %76 = arith.mulf %71, %75 : vector<8x32xf32>
      %77 = arith.addf %73, %76 : vector<8x32xf32>
      %78 = math.tanh %77 : vector<8x32xf32>
      %cst_39 = arith.constant 1.000000e+00 : f32
      %79 = vector.broadcast %cst_39 : f32 to vector<8x32xf32>
      %80 = arith.subf %79, %72 : vector<8x32xf32>
      %81 = arith.mulf %80, %78 : vector<8x32xf32>
      %82 = arith.mulf %72, %54 : vector<8x32xf32>
      %83 = arith.addf %81, %82 : vector<8x32xf32>
      %84 = arith.truncf %83 : vector<8x32xf32> to vector<8x32xbf16>
      %c0_40 = arith.constant 0 : index
      %c1_41 = arith.constant 1 : index
      %c0_42 = arith.constant 0 : index
      %c0_43 = arith.constant 0 : index
      %85 = vector.load %arg8[%c0_40, %c1_41, %c0_42, %c0_43] : memref<1x8x8x32xbf16, #tpu.memory_space<vmem>>, vector<1x1x8x32xbf16>
      %86 = vector.shape_cast %85 : vector<1x1x8x32xbf16> to vector<8x32xbf16>
      %87 = vector.shape_cast %84 : vector<8x32xbf16> to vector<1x1x8x32xbf16>
      tpu.vector_store %arg8[%c0_40, %c1_41, %c0_42, %c0_43], %87 {strides = array<i32>} : memref<1x8x8x32xbf16, #tpu.memory_space<vmem>>, vector<1x1x8x32xbf16>,
      %c2 = arith.constant 2 : index
      %c0_44 = arith.constant 0 : index
      %c0_45 = arith.constant 0 : index
      %88 = vector.load %arg10[%c2, %c0_44, %c0_45] : memref<8x8x96xf32, #tpu.memory_space<vmem>>, vector<1x8x96xf32>
      %89 = vector.shape_cast %88 : vector<1x8x96xf32> to vector<8x96xf32>
      %90 = arith.truncf %83 : vector<8x32xf32> to vector<8x32xbf16>
      %cst_46 = arith.constant dense<0.000000e+00> : vector<8x96xf32>
      %91 = tpu.matmul %90, %15, %cst_46 {dimension_numbers = #tpu.dot_dimension_numbers<[1], [0], [0], [1], [0, 0, 1, 1], [], []>} : vector<8x32xbf16>, vector<32x96xbf16>, vector<8x96xf32> -> vector<8x96xf32>
      %92 = vector.extract_strided_slice %89 {offsets = [0, 0], sizes = [8, 64], strides = [1, 1]} : vector<8x96xf32> to vector<8x64xf32>
      %93 = vector.extract_strided_slice %91 {offsets = [0, 0], sizes = [8, 64], strides = [1, 1]} : vector<8x96xf32> to vector<8x64xf32>
      %94 = arith.addf %92, %93 : vector<8x64xf32>
      %95 = arith.negf %94 : vector<8x64xf32>
      %96 = math.exp %95 : vector<8x64xf32>
      %cst_47 = arith.constant 1.000000e+00 : f32
      %97 = vector.broadcast %cst_47 : f32 to vector<8x64xf32>
      %98 = arith.addf %97, %96 : vector<8x64xf32>
      %99 = arith.divf %97, %98 : vector<8x64xf32>
      %100 = vector.extract_strided_slice %99 {offsets = [0, 0], sizes = [8, 32], strides = [1, 1]} : vector<8x64xf32> to vector<8x32xf32>
      %101 = vector.extract_strided_slice %99 {offsets = [0, 32], sizes = [8, 32], strides = [1, 1]} : vector<8x64xf32> to vector<8x32xf32>
      %102 = vector.extract_strided_slice %89 {offsets = [0, 64], sizes = [8, 32], strides = [1, 1]} : vector<8x96xf32> to vector<8x32xf32>
      %103 = vector.extract_strided_slice %91 {offsets = [0, 64], sizes = [8, 32], strides = [1, 1]} : vector<8x96xf32> to vector<8x32xf32>
      %104 = arith.addf %103, %19 : vector<8x32xf32>
      %105 = arith.mulf %100, %104 : vector<8x32xf32>
      %106 = arith.addf %102, %105 : vector<8x32xf32>
      %107 = math.tanh %106 : vector<8x32xf32>
      %cst_48 = arith.constant 1.000000e+00 : f32
      %108 = vector.broadcast %cst_48 : f32 to vector<8x32xf32>
      %109 = arith.subf %108, %101 : vector<8x32xf32>
      %110 = arith.mulf %109, %107 : vector<8x32xf32>
      %111 = arith.mulf %101, %83 : vector<8x32xf32>
      %112 = arith.addf %110, %111 : vector<8x32xf32>
      %113 = arith.truncf %112 : vector<8x32xf32> to vector<8x32xbf16>
      %c0_49 = arith.constant 0 : index
      %c2_50 = arith.constant 2 : index
      %c0_51 = arith.constant 0 : index
      %c0_52 = arith.constant 0 : index
      %114 = vector.load %arg8[%c0_49, %c2_50, %c0_51, %c0_52] : memref<1x8x8x32xbf16, #tpu.memory_space<vmem>>, vector<1x1x8x32xbf16>
      %115 = vector.shape_cast %114 : vector<1x1x8x32xbf16> to vector<8x32xbf16>
      %116 = vector.shape_cast %113 : vector<8x32xbf16> to vector<1x1x8x32xbf16>
      tpu.vector_store %arg8[%c0_49, %c2_50, %c0_51, %c0_52], %116 {strides = array<i32>} : memref<1x8x8x32xbf16, #tpu.memory_space<vmem>>, vector<1x1x8x32xbf16>,
      %c3 = arith.constant 3 : index
      %c0_53 = arith.constant 0 : index
      %c0_54 = arith.constant 0 : index
      %117 = vector.load %arg10[%c3, %c0_53, %c0_54] : memref<8x8x96xf32, #tpu.memory_space<vmem>>, vector<1x8x96xf32>
      %118 = vector.shape_cast %117 : vector<1x8x96xf32> to vector<8x96xf32>
      %119 = arith.truncf %112 : vector<8x32xf32> to vector<8x32xbf16>
      %cst_55 = arith.constant dense<0.000000e+00> : vector<8x96xf32>
      %120 = tpu.matmul %119, %15, %cst_55 {dimension_numbers = #tpu.dot_dimension_numbers<[1], [0], [0], [1], [0, 0, 1, 1], [], []>} : vector<8x32xbf16>, vector<32x96xbf16>, vector<8x96xf32> -> vector<8x96xf32>
      %121 = vector.extract_strided_slice %118 {offsets = [0, 0], sizes = [8, 64], strides = [1, 1]} : vector<8x96xf32> to vector<8x64xf32>
      %122 = vector.extract_strided_slice %120 {offsets = [0, 0], sizes = [8, 64], strides = [1, 1]} : vector<8x96xf32> to vector<8x64xf32>
      %123 = arith.addf %121, %122 : vector<8x64xf32>
      %124 = arith.negf %123 : vector<8x64xf32>
      %125 = math.exp %124 : vector<8x64xf32>
      %cst_56 = arith.constant 1.000000e+00 : f32
      %126 = vector.broadcast %cst_56 : f32 to vector<8x64xf32>
      %127 = arith.addf %126, %125 : vector<8x64xf32>
      %128 = arith.divf %126, %127 : vector<8x64xf32>
      %129 = vector.extract_strided_slice %128 {offsets = [0, 0], sizes = [8, 32], strides = [1, 1]} : vector<8x64xf32> to vector<8x32xf32>
      %130 = vector.extract_strided_slice %128 {offsets = [0, 32], sizes = [8, 32], strides = [1, 1]} : vector<8x64xf32> to vector<8x32xf32>
      %131 = vector.extract_strided_slice %118 {offsets = [0, 64], sizes = [8, 32], strides = [1, 1]} : vector<8x96xf32> to vector<8x32xf32>
      %132 = vector.extract_strided_slice %120 {offsets = [0, 64], sizes = [8, 32], strides = [1, 1]} : vector<8x96xf32> to vector<8x32xf32>
      %133 = arith.addf %132, %19 : vector<8x32xf32>
      %134 = arith.mulf %129, %133 : vector<8x32xf32>
      %135 = arith.addf %131, %134 : vector<8x32xf32>
      %136 = math.tanh %135 : vector<8x32xf32>
      %cst_57 = arith.constant 1.000000e+00 : f32
      %137 = vector.broadcast %cst_57 : f32 to vector<8x32xf32>
      %138 = arith.subf %137, %130 : vector<8x32xf32>
      %139 = arith.mulf %138, %136 : vector<8x32xf32>
      %140 = arith.mulf %130, %112 : vector<8x32xf32>
      %141 = arith.addf %139, %140 : vector<8x32xf32>
      %142 = arith.truncf %141 : vector<8x32xf32> to vector<8x32xbf16>
      %c0_58 = arith.constant 0 : index
      %c3_59 = arith.constant 3 : index
      %c0_60 = arith.constant 0 : index
      %c0_61 = arith.constant 0 : index
      %143 = vector.load %arg8[%c0_58, %c3_59, %c0_60, %c0_61] : memref<1x8x8x32xbf16, #tpu.memory_space<vmem>>, vector<1x1x8x32xbf16>
      %144 = vector.shape_cast %143 : vector<1x1x8x32xbf16> to vector<8x32xbf16>
      %145 = vector.shape_cast %142 : vector<8x32xbf16> to vector<1x1x8x32xbf16>
      tpu.vector_store %arg8[%c0_58, %c3_59, %c0_60, %c0_61], %145 {strides = array<i32>} : memref<1x8x8x32xbf16, #tpu.memory_space<vmem>>, vector<1x1x8x32xbf16>,
      %c4 = arith.constant 4 : index
      %c0_62 = arith.constant 0 : index
      %c0_63 = arith.constant 0 : index
      %146 = vector.load %arg10[%c4, %c0_62, %c0_63] : memref<8x8x96xf32, #tpu.memory_space<vmem>>, vector<1x8x96xf32>
      %147 = vector.shape_cast %146 : vector<1x8x96xf32> to vector<8x96xf32>
      %148 = arith.truncf %141 : vector<8x32xf32> to vector<8x32xbf16>
      %cst_64 = arith.constant dense<0.000000e+00> : vector<8x96xf32>
      %149 = tpu.matmul %148, %15, %cst_64 {dimension_numbers = #tpu.dot_dimension_numbers<[1], [0], [0], [1], [0, 0, 1, 1], [], []>} : vector<8x32xbf16>, vector<32x96xbf16>, vector<8x96xf32> -> vector<8x96xf32>
      %150 = vector.extract_strided_slice %147 {offsets = [0, 0], sizes = [8, 64], strides = [1, 1]} : vector<8x96xf32> to vector<8x64xf32>
      %151 = vector.extract_strided_slice %149 {offsets = [0, 0], sizes = [8, 64], strides = [1, 1]} : vector<8x96xf32> to vector<8x64xf32>
      %152 = arith.addf %150, %151 : vector<8x64xf32>
      %153 = arith.negf %152 : vector<8x64xf32>
      %154 = math.exp %153 : vector<8x64xf32>
      %cst_65 = arith.constant 1.000000e+00 : f32
      %155 = vector.broadcast %cst_65 : f32 to vector<8x64xf32>
      %156 = arith.addf %155, %154 : vector<8x64xf32>
      %157 = arith.divf %155, %156 : vector<8x64xf32>
      %158 = vector.extract_strided_slice %157 {offsets = [0, 0], sizes = [8, 32], strides = [1, 1]} : vector<8x64xf32> to vector<8x32xf32>
      %159 = vector.extract_strided_slice %157 {offsets = [0, 32], sizes = [8, 32], strides = [1, 1]} : vector<8x64xf32> to vector<8x32xf32>
      %160 = vector.extract_strided_slice %147 {offsets = [0, 64], sizes = [8, 32], strides = [1, 1]} : vector<8x96xf32> to vector<8x32xf32>
      %161 = vector.extract_strided_slice %149 {offsets = [0, 64], sizes = [8, 32], strides = [1, 1]} : vector<8x96xf32> to vector<8x32xf32>
      %162 = arith.addf %161, %19 : vector<8x32xf32>
      %163 = arith.mulf %158, %162 : vector<8x32xf32>
      %164 = arith.addf %160, %163 : vector<8x32xf32>
      %165 = math.tanh %164 : vector<8x32xf32>
      %cst_66 = arith.constant 1.000000e+00 : f32
      %166 = vector.broadcast %cst_66 : f32 to vector<8x32xf32>
      %167 = arith.subf %166, %159 : vector<8x32xf32>
      %168 = arith.mulf %167, %165 : vector<8x32xf32>
      %169 = arith.mulf %159, %141 : vector<8x32xf32>
      %170 = arith.addf %168, %169 : vector<8x32xf32>
      %171 = arith.truncf %170 : vector<8x32xf32> to vector<8x32xbf16>
      %c0_67 = arith.constant 0 : index
      %c4_68 = arith.constant 4 : index
      %c0_69 = arith.constant 0 : index
      %c0_70 = arith.constant 0 : index
      %172 = vector.load %arg8[%c0_67, %c4_68, %c0_69, %c0_70] : memref<1x8x8x32xbf16, #tpu.memory_space<vmem>>, vector<1x1x8x32xbf16>
      %173 = vector.shape_cast %172 : vector<1x1x8x32xbf16> to vector<8x32xbf16>
      %174 = vector.shape_cast %171 : vector<8x32xbf16> to vector<1x1x8x32xbf16>
      tpu.vector_store %arg8[%c0_67, %c4_68, %c0_69, %c0_70], %174 {strides = array<i32>} : memref<1x8x8x32xbf16, #tpu.memory_space<vmem>>, vector<1x1x8x32xbf16>,
      %c5 = arith.constant 5 : index
      %c0_71 = arith.constant 0 : index
      %c0_72 = arith.constant 0 : index
      %175 = vector.load %arg10[%c5, %c0_71, %c0_72] : memref<8x8x96xf32, #tpu.memory_space<vmem>>, vector<1x8x96xf32>
      %176 = vector.shape_cast %175 : vector<1x8x96xf32> to vector<8x96xf32>
      %177 = arith.truncf %170 : vector<8x32xf32> to vector<8x32xbf16>
      %cst_73 = arith.constant dense<0.000000e+00> : vector<8x96xf32>
      %178 = tpu.matmul %177, %15, %cst_73 {dimension_numbers = #tpu.dot_dimension_numbers<[1], [0], [0], [1], [0, 0, 1, 1], [], []>} : vector<8x32xbf16>, vector<32x96xbf16>, vector<8x96xf32> -> vector<8x96xf32>
      %179 = vector.extract_strided_slice %176 {offsets = [0, 0], sizes = [8, 64], strides = [1, 1]} : vector<8x96xf32> to vector<8x64xf32>
      %180 = vector.extract_strided_slice %178 {offsets = [0, 0], sizes = [8, 64], strides = [1, 1]} : vector<8x96xf32> to vector<8x64xf32>
      %181 = arith.addf %179, %180 : vector<8x64xf32>
      %182 = arith.negf %181 : vector<8x64xf32>
      %183 = math.exp %182 : vector<8x64xf32>
      %cst_74 = arith.constant 1.000000e+00 : f32
      %184 = vector.broadcast %cst_74 : f32 to vector<8x64xf32>
      %185 = arith.addf %184, %183 : vector<8x64xf32>
      %186 = arith.divf %184, %185 : vector<8x64xf32>
      %187 = vector.extract_strided_slice %186 {offsets = [0, 0], sizes = [8, 32], strides = [1, 1]} : vector<8x64xf32> to vector<8x32xf32>
      %188 = vector.extract_strided_slice %186 {offsets = [0, 32], sizes = [8, 32], strides = [1, 1]} : vector<8x64xf32> to vector<8x32xf32>
      %189 = vector.extract_strided_slice %176 {offsets = [0, 64], sizes = [8, 32], strides = [1, 1]} : vector<8x96xf32> to vector<8x32xf32>
      %190 = vector.extract_strided_slice %178 {offsets = [0, 64], sizes = [8, 32], strides = [1, 1]} : vector<8x96xf32> to vector<8x32xf32>
      %191 = arith.addf %190, %19 : vector<8x32xf32>
      %192 = arith.mulf %187, %191 : vector<8x32xf32>
      %193 = arith.addf %189, %192 : vector<8x32xf32>
      %194 = math.tanh %193 : vector<8x32xf32>
      %cst_75 = arith.constant 1.000000e+00 : f32
      %195 = vector.broadcast %cst_75 : f32 to vector<8x32xf32>
      %196 = arith.subf %195, %188 : vector<8x32xf32>
      %197 = arith.mulf %196, %194 : vector<8x32xf32>
      %198 = arith.mulf %188, %170 : vector<8x32xf32>
      %199 = arith.addf %197, %198 : vector<8x32xf32>
      %200 = arith.truncf %199 : vector<8x32xf32> to vector<8x32xbf16>
      %c0_76 = arith.constant 0 : index
      %c5_77 = arith.constant 5 : index
      %c0_78 = arith.constant 0 : index
      %c0_79 = arith.constant 0 : index
      %201 = vector.load %arg8[%c0_76, %c5_77, %c0_78, %c0_79] : memref<1x8x8x32xbf16, #tpu.memory_space<vmem>>, vector<1x1x8x32xbf16>
      %202 = vector.shape_cast %201 : vector<1x1x8x32xbf16> to vector<8x32xbf16>
      %203 = vector.shape_cast %200 : vector<8x32xbf16> to vector<1x1x8x32xbf16>
      tpu.vector_store %arg8[%c0_76, %c5_77, %c0_78, %c0_79], %203 {strides = array<i32>} : memref<1x8x8x32xbf16, #tpu.memory_space<vmem>>, vector<1x1x8x32xbf16>,
      %c6 = arith.constant 6 : index
      %c0_80 = arith.constant 0 : index
      %c0_81 = arith.constant 0 : index
      %204 = vector.load %arg10[%c6, %c0_80, %c0_81] : memref<8x8x96xf32, #tpu.memory_space<vmem>>, vector<1x8x96xf32>
      %205 = vector.shape_cast %204 : vector<1x8x96xf32> to vector<8x96xf32>
      %206 = arith.truncf %199 : vector<8x32xf32> to vector<8x32xbf16>
      %cst_82 = arith.constant dense<0.000000e+00> : vector<8x96xf32>
      %207 = tpu.matmul %206, %15, %cst_82 {dimension_numbers = #tpu.dot_dimension_numbers<[1], [0], [0], [1], [0, 0, 1, 1], [], []>} : vector<8x32xbf16>, vector<32x96xbf16>, vector<8x96xf32> -> vector<8x96xf32>
      %208 = vector.extract_strided_slice %205 {offsets = [0, 0], sizes = [8, 64], strides = [1, 1]} : vector<8x96xf32> to vector<8x64xf32>
      %209 = vector.extract_strided_slice %207 {offsets = [0, 0], sizes = [8, 64], strides = [1, 1]} : vector<8x96xf32> to vector<8x64xf32>
      %210 = arith.addf %208, %209 : vector<8x64xf32>
      %211 = arith.negf %210 : vector<8x64xf32>
      %212 = math.exp %211 : vector<8x64xf32>
      %cst_83 = arith.constant 1.000000e+00 : f32
      %213 = vector.broadcast %cst_83 : f32 to vector<8x64xf32>
      %214 = arith.addf %213, %212 : vector<8x64xf32>
      %215 = arith.divf %213, %214 : vector<8x64xf32>
      %216 = vector.extract_strided_slice %215 {offsets = [0, 0], sizes = [8, 32], strides = [1, 1]} : vector<8x64xf32> to vector<8x32xf32>
      %217 = vector.extract_strided_slice %215 {offsets = [0, 32], sizes = [8, 32], strides = [1, 1]} : vector<8x64xf32> to vector<8x32xf32>
      %218 = vector.extract_strided_slice %205 {offsets = [0, 64], sizes = [8, 32], strides = [1, 1]} : vector<8x96xf32> to vector<8x32xf32>
      %219 = vector.extract_strided_slice %207 {offsets = [0, 64], sizes = [8, 32], strides = [1, 1]} : vector<8x96xf32> to vector<8x32xf32>
      %220 = arith.addf %219, %19 : vector<8x32xf32>
      %221 = arith.mulf %216, %220 : vector<8x32xf32>
      %222 = arith.addf %218, %221 : vector<8x32xf32>
      %223 = math.tanh %222 : vector<8x32xf32>
      %cst_84 = arith.constant 1.000000e+00 : f32
      %224 = vector.broadcast %cst_84 : f32 to vector<8x32xf32>
      %225 = arith.subf %224, %217 : vector<8x32xf32>
      %226 = arith.mulf %225, %223 : vector<8x32xf32>
      %227 = arith.mulf %217, %199 : vector<8x32xf32>
      %228 = arith.addf %226, %227 : vector<8x32xf32>
      %229 = arith.truncf %228 : vector<8x32xf32> to vector<8x32xbf16>
      %c0_85 = arith.constant 0 : index
      %c6_86 = arith.constant 6 : index
      %c0_87 = arith.constant 0 : index
      %c0_88 = arith.constant 0 : index
      %230 = vector.load %arg8[%c0_85, %c6_86, %c0_87, %c0_88] : memref<1x8x8x32xbf16, #tpu.memory_space<vmem>>, vector<1x1x8x32xbf16>
      %231 = vector.shape_cast %230 : vector<1x1x8x32xbf16> to vector<8x32xbf16>
      %232 = vector.shape_cast %229 : vector<8x32xbf16> to vector<1x1x8x32xbf16>
      tpu.vector_store %arg8[%c0_85, %c6_86, %c0_87, %c0_88], %232 {strides = array<i32>} : memref<1x8x8x32xbf16, #tpu.memory_space<vmem>>, vector<1x1x8x32xbf16>,
      %c7 = arith.constant 7 : index
      %c0_89 = arith.constant 0 : index
      %c0_90 = arith.constant 0 : index
      %233 = vector.load %arg10[%c7, %c0_89, %c0_90] : memref<8x8x96xf32, #tpu.memory_space<vmem>>, vector<1x8x96xf32>
      %234 = vector.shape_cast %233 : vector<1x8x96xf32> to vector<8x96xf32>
      %235 = arith.truncf %228 : vector<8x32xf32> to vector<8x32xbf16>
      %cst_91 = arith.constant dense<0.000000e+00> : vector<8x96xf32>
      %236 = tpu.matmul %235, %15, %cst_91 {dimension_numbers = #tpu.dot_dimension_numbers<[1], [0], [0], [1], [0, 0, 1, 1], [], []>} : vector<8x32xbf16>, vector<32x96xbf16>, vector<8x96xf32> -> vector<8x96xf32>
      %237 = vector.extract_strided_slice %234 {offsets = [0, 0], sizes = [8, 64], strides = [1, 1]} : vector<8x96xf32> to vector<8x64xf32>
      %238 = vector.extract_strided_slice %236 {offsets = [0, 0], sizes = [8, 64], strides = [1, 1]} : vector<8x96xf32> to vector<8x64xf32>
      %239 = arith.addf %237, %238 : vector<8x64xf32>
      %240 = arith.negf %239 : vector<8x64xf32>
      %241 = math.exp %240 : vector<8x64xf32>
      %cst_92 = arith.constant 1.000000e+00 : f32
      %242 = vector.broadcast %cst_92 : f32 to vector<8x64xf32>
      %243 = arith.addf %242, %241 : vector<8x64xf32>
      %244 = arith.divf %242, %243 : vector<8x64xf32>
      %245 = vector.extract_strided_slice %244 {offsets = [0, 0], sizes = [8, 32], strides = [1, 1]} : vector<8x64xf32> to vector<8x32xf32>
      %246 = vector.extract_strided_slice %244 {offsets = [0, 32], sizes = [8, 32], strides = [1, 1]} : vector<8x64xf32> to vector<8x32xf32>
      %247 = vector.extract_strided_slice %234 {offsets = [0, 64], sizes = [8, 32], strides = [1, 1]} : vector<8x96xf32> to vector<8x32xf32>
      %248 = vector.extract_strided_slice %236 {offsets = [0, 64], sizes = [8, 32], strides = [1, 1]} : vector<8x96xf32> to vector<8x32xf32>
      %249 = arith.addf %248, %19 : vector<8x32xf32>
      %250 = arith.mulf %245, %249 : vector<8x32xf32>
      %251 = arith.addf %247, %250 : vector<8x32xf32>
      %252 = math.tanh %251 : vector<8x32xf32>
      %cst_93 = arith.constant 1.000000e+00 : f32
      %253 = vector.broadcast %cst_93 : f32 to vector<8x32xf32>
      %254 = arith.subf %253, %246 : vector<8x32xf32>
      %255 = arith.mulf %254, %252 : vector<8x32xf32>
      %256 = arith.mulf %246, %228 : vector<8x32xf32>
      %257 = arith.addf %255, %256 : vector<8x32xf32>
      %258 = arith.truncf %257 : vector<8x32xf32> to vector<8x32xbf16>
      %c0_94 = arith.constant 0 : index
      %c7_95 = arith.constant 7 : index
      %c0_96 = arith.constant 0 : index
      %c0_97 = arith.constant 0 : index
      %259 = vector.load %arg8[%c0_94, %c7_95, %c0_96, %c0_97] : memref<1x8x8x32xbf16, #tpu.memory_space<vmem>>, vector<1x1x8x32xbf16>
      %260 = vector.shape_cast %259 : vector<1x1x8x32xbf16> to vector<8x32xbf16>
      %261 = vector.shape_cast %258 : vector<8x32xbf16> to vector<1x1x8x32xbf16>
      tpu.vector_store %arg8[%c0_94, %c7_95, %c0_96, %c0_97], %261 {strides = array<i32>} : memref<1x8x8x32xbf16, #tpu.memory_space<vmem>>, vector<1x1x8x32xbf16>,
      %c0_98 = arith.constant 0 : index
      %c0_99 = arith.constant 0 : index
      %262 = vector.load %arg11[%c0_98, %c0_99] : memref<8x32xf32, #tpu.memory_space<vmem>>, vector<8x32xf32>
      tpu.vector_store %arg11[%c0_98, %c0_99], %257 {strides = array<i32>} : memref<8x32xf32, #tpu.memory_space<vmem>>, vector<8x32xf32>,
    } else {
    }
    %c1_i32 = arith.constant 1 : i32
    %23 = arith.cmpi eq, %arg0, %c1_i32 : i32
    %24 = arith.extui %23 : i1 to i32
    %c0_i32_20 = arith.constant 0 : i32
    %25 = arith.cmpi ne, %24, %c0_i32_20 : i32
    scf.if %25 {
      %c0_23 = arith.constant 0 : index
      %c0_24 = arith.constant 0 : index
      %29 = vector.load %arg11[%c0_23, %c0_24] : memref<8x32xf32, #tpu.memory_space<vmem>>, vector<8x32xf32>
      %c7 = arith.constant 7 : index
      %c0_25 = arith.constant 0 : index
      %c0_26 = arith.constant 0 : index
      %30 = vector.load %arg10[%c7, %c0_25, %c0_26] : memref<8x8x96xf32, #tpu.memory_space<vmem>>, vector<1x8x96xf32>
      %31 = vector.shape_cast %30 : vector<1x8x96xf32> to vector<8x96xf32>
      %32 = arith.truncf %29 : vector<8x32xf32> to vector<8x32xbf16>
      %cst_27 = arith.constant dense<0.000000e+00> : vector<8x96xf32>
      %33 = tpu.matmul %32, %15, %cst_27 {dimension_numbers = #tpu.dot_dimension_numbers<[1], [0], [0], [1], [0, 0, 1, 1], [], []>} : vector<8x32xbf16>, vector<32x96xbf16>, vector<8x96xf32> -> vector<8x96xf32>
      %34 = vector.extract_strided_slice %31 {offsets = [0, 0], sizes = [8, 64], strides = [1, 1]} : vector<8x96xf32> to vector<8x64xf32>
      %35 = vector.extract_strided_slice %33 {offsets = [0, 0], sizes = [8, 64], strides = [1, 1]} : vector<8x96xf32> to vector<8x64xf32>
      %36 = arith.addf %34, %35 : vector<8x64xf32>
      %37 = arith.negf %36 : vector<8x64xf32>
      %38 = math.exp %37 : vector<8x64xf32>
      %cst_28 = arith.constant 1.000000e+00 : f32
      %39 = vector.broadcast %cst_28 : f32 to vector<8x64xf32>
      %40 = arith.addf %39, %38 : vector<8x64xf32>
      %41 = arith.divf %39, %40 : vector<8x64xf32>
      %42 = vector.extract_strided_slice %41 {offsets = [0, 0], sizes = [8, 32], strides = [1, 1]} : vector<8x64xf32> to vector<8x32xf32>
      %43 = vector.extract_strided_slice %41 {offsets = [0, 32], sizes = [8, 32], strides = [1, 1]} : vector<8x64xf32> to vector<8x32xf32>
      %44 = vector.extract_strided_slice %31 {offsets = [0, 64], sizes = [8, 32], strides = [1, 1]} : vector<8x96xf32> to vector<8x32xf32>
      %45 = vector.extract_strided_slice %33 {offsets = [0, 64], sizes = [8, 32], strides = [1, 1]} : vector<8x96xf32> to vector<8x32xf32>
      %46 = arith.addf %45, %19 : vector<8x32xf32>
      %47 = arith.mulf %42, %46 : vector<8x32xf32>
      %48 = arith.addf %44, %47 : vector<8x32xf32>
      %49 = math.tanh %48 : vector<8x32xf32>
      %cst_29 = arith.constant 1.000000e+00 : f32
      %50 = vector.broadcast %cst_29 : f32 to vector<8x32xf32>
      %51 = arith.subf %50, %43 : vector<8x32xf32>
      %52 = arith.mulf %51, %49 : vector<8x32xf32>
      %53 = arith.mulf %43, %29 : vector<8x32xf32>
      %54 = arith.addf %52, %53 : vector<8x32xf32>
      %55 = arith.truncf %54 : vector<8x32xf32> to vector<8x32xbf16>
      %c0_30 = arith.constant 0 : index
      %c7_31 = arith.constant 7 : index
      %c0_32 = arith.constant 0 : index
      %c0_33 = arith.constant 0 : index
      %56 = vector.load %arg8[%c0_30, %c7_31, %c0_32, %c0_33] : memref<1x8x8x32xbf16, #tpu.memory_space<vmem>>, vector<1x1x8x32xbf16>
      %57 = vector.shape_cast %56 : vector<1x1x8x32xbf16> to vector<8x32xbf16>
      %58 = vector.shape_cast %55 : vector<8x32xbf16> to vector<1x1x8x32xbf16>
      tpu.vector_store %arg8[%c0_30, %c7_31, %c0_32, %c0_33], %58 {strides = array<i32>} : memref<1x8x8x32xbf16, #tpu.memory_space<vmem>>, vector<1x1x8x32xbf16>,
      %c6 = arith.constant 6 : index
      %c0_34 = arith.constant 0 : index
      %c0_35 = arith.constant 0 : index
      %59 = vector.load %arg10[%c6, %c0_34, %c0_35] : memref<8x8x96xf32, #tpu.memory_space<vmem>>, vector<1x8x96xf32>
      %60 = vector.shape_cast %59 : vector<1x8x96xf32> to vector<8x96xf32>
      %61 = arith.truncf %54 : vector<8x32xf32> to vector<8x32xbf16>
      %cst_36 = arith.constant dense<0.000000e+00> : vector<8x96xf32>
      %62 = tpu.matmul %61, %15, %cst_36 {dimension_numbers = #tpu.dot_dimension_numbers<[1], [0], [0], [1], [0, 0, 1, 1], [], []>} : vector<8x32xbf16>, vector<32x96xbf16>, vector<8x96xf32> -> vector<8x96xf32>
      %63 = vector.extract_strided_slice %60 {offsets = [0, 0], sizes = [8, 64], strides = [1, 1]} : vector<8x96xf32> to vector<8x64xf32>
      %64 = vector.extract_strided_slice %62 {offsets = [0, 0], sizes = [8, 64], strides = [1, 1]} : vector<8x96xf32> to vector<8x64xf32>
      %65 = arith.addf %63, %64 : vector<8x64xf32>
      %66 = arith.negf %65 : vector<8x64xf32>
      %67 = math.exp %66 : vector<8x64xf32>
      %cst_37 = arith.constant 1.000000e+00 : f32
      %68 = vector.broadcast %cst_37 : f32 to vector<8x64xf32>
      %69 = arith.addf %68, %67 : vector<8x64xf32>
      %70 = arith.divf %68, %69 : vector<8x64xf32>
      %71 = vector.extract_strided_slice %70 {offsets = [0, 0], sizes = [8, 32], strides = [1, 1]} : vector<8x64xf32> to vector<8x32xf32>
      %72 = vector.extract_strided_slice %70 {offsets = [0, 32], sizes = [8, 32], strides = [1, 1]} : vector<8x64xf32> to vector<8x32xf32>
      %73 = vector.extract_strided_slice %60 {offsets = [0, 64], sizes = [8, 32], strides = [1, 1]} : vector<8x96xf32> to vector<8x32xf32>
      %74 = vector.extract_strided_slice %62 {offsets = [0, 64], sizes = [8, 32], strides = [1, 1]} : vector<8x96xf32> to vector<8x32xf32>
      %75 = arith.addf %74, %19 : vector<8x32xf32>
      %76 = arith.mulf %71, %75 : vector<8x32xf32>
      %77 = arith.addf %73, %76 : vector<8x32xf32>
      %78 = math.tanh %77 : vector<8x32xf32>
      %cst_38 = arith.constant 1.000000e+00 : f32
      %79 = vector.broadcast %cst_38 : f32 to vector<8x32xf32>
      %80 = arith.subf %79, %72 : vector<8x32xf32>
      %81 = arith.mulf %80, %78 : vector<8x32xf32>
      %82 = arith.mulf %72, %54 : vector<8x32xf32>
      %83 = arith.addf %81, %82 : vector<8x32xf32>
      %84 = arith.truncf %83 : vector<8x32xf32> to vector<8x32xbf16>
      %c0_39 = arith.constant 0 : index
      %c6_40 = arith.constant 6 : index
      %c0_41 = arith.constant 0 : index
      %c0_42 = arith.constant 0 : index
      %85 = vector.load %arg8[%c0_39, %c6_40, %c0_41, %c0_42] : memref<1x8x8x32xbf16, #tpu.memory_space<vmem>>, vector<1x1x8x32xbf16>
      %86 = vector.shape_cast %85 : vector<1x1x8x32xbf16> to vector<8x32xbf16>
      %87 = vector.shape_cast %84 : vector<8x32xbf16> to vector<1x1x8x32xbf16>
      tpu.vector_store %arg8[%c0_39, %c6_40, %c0_41, %c0_42], %87 {strides = array<i32>} : memref<1x8x8x32xbf16, #tpu.memory_space<vmem>>, vector<1x1x8x32xbf16>,
      %c5 = arith.constant 5 : index
      %c0_43 = arith.constant 0 : index
      %c0_44 = arith.constant 0 : index
      %88 = vector.load %arg10[%c5, %c0_43, %c0_44] : memref<8x8x96xf32, #tpu.memory_space<vmem>>, vector<1x8x96xf32>
      %89 = vector.shape_cast %88 : vector<1x8x96xf32> to vector<8x96xf32>
      %90 = arith.truncf %83 : vector<8x32xf32> to vector<8x32xbf16>
      %cst_45 = arith.constant dense<0.000000e+00> : vector<8x96xf32>
      %91 = tpu.matmul %90, %15, %cst_45 {dimension_numbers = #tpu.dot_dimension_numbers<[1], [0], [0], [1], [0, 0, 1, 1], [], []>} : vector<8x32xbf16>, vector<32x96xbf16>, vector<8x96xf32> -> vector<8x96xf32>
      %92 = vector.extract_strided_slice %89 {offsets = [0, 0], sizes = [8, 64], strides = [1, 1]} : vector<8x96xf32> to vector<8x64xf32>
      %93 = vector.extract_strided_slice %91 {offsets = [0, 0], sizes = [8, 64], strides = [1, 1]} : vector<8x96xf32> to vector<8x64xf32>
      %94 = arith.addf %92, %93 : vector<8x64xf32>
      %95 = arith.negf %94 : vector<8x64xf32>
      %96 = math.exp %95 : vector<8x64xf32>
      %cst_46 = arith.constant 1.000000e+00 : f32
      %97 = vector.broadcast %cst_46 : f32 to vector<8x64xf32>
      %98 = arith.addf %97, %96 : vector<8x64xf32>
      %99 = arith.divf %97, %98 : vector<8x64xf32>
      %100 = vector.extract_strided_slice %99 {offsets = [0, 0], sizes = [8, 32], strides = [1, 1]} : vector<8x64xf32> to vector<8x32xf32>
      %101 = vector.extract_strided_slice %99 {offsets = [0, 32], sizes = [8, 32], strides = [1, 1]} : vector<8x64xf32> to vector<8x32xf32>
      %102 = vector.extract_strided_slice %89 {offsets = [0, 64], sizes = [8, 32], strides = [1, 1]} : vector<8x96xf32> to vector<8x32xf32>
      %103 = vector.extract_strided_slice %91 {offsets = [0, 64], sizes = [8, 32], strides = [1, 1]} : vector<8x96xf32> to vector<8x32xf32>
      %104 = arith.addf %103, %19 : vector<8x32xf32>
      %105 = arith.mulf %100, %104 : vector<8x32xf32>
      %106 = arith.addf %102, %105 : vector<8x32xf32>
      %107 = math.tanh %106 : vector<8x32xf32>
      %cst_47 = arith.constant 1.000000e+00 : f32
      %108 = vector.broadcast %cst_47 : f32 to vector<8x32xf32>
      %109 = arith.subf %108, %101 : vector<8x32xf32>
      %110 = arith.mulf %109, %107 : vector<8x32xf32>
      %111 = arith.mulf %101, %83 : vector<8x32xf32>
      %112 = arith.addf %110, %111 : vector<8x32xf32>
      %113 = arith.truncf %112 : vector<8x32xf32> to vector<8x32xbf16>
      %c0_48 = arith.constant 0 : index
      %c5_49 = arith.constant 5 : index
      %c0_50 = arith.constant 0 : index
      %c0_51 = arith.constant 0 : index
      %114 = vector.load %arg8[%c0_48, %c5_49, %c0_50, %c0_51] : memref<1x8x8x32xbf16, #tpu.memory_space<vmem>>, vector<1x1x8x32xbf16>
      %115 = vector.shape_cast %114 : vector<1x1x8x32xbf16> to vector<8x32xbf16>
      %116 = vector.shape_cast %113 : vector<8x32xbf16> to vector<1x1x8x32xbf16>
      tpu.vector_store %arg8[%c0_48, %c5_49, %c0_50, %c0_51], %116 {strides = array<i32>} : memref<1x8x8x32xbf16, #tpu.memory_space<vmem>>, vector<1x1x8x32xbf16>,
      %c4 = arith.constant 4 : index
      %c0_52 = arith.constant 0 : index
      %c0_53 = arith.constant 0 : index
      %117 = vector.load %arg10[%c4, %c0_52, %c0_53] : memref<8x8x96xf32, #tpu.memory_space<vmem>>, vector<1x8x96xf32>
      %118 = vector.shape_cast %117 : vector<1x8x96xf32> to vector<8x96xf32>
      %119 = arith.truncf %112 : vector<8x32xf32> to vector<8x32xbf16>
      %cst_54 = arith.constant dense<0.000000e+00> : vector<8x96xf32>
      %120 = tpu.matmul %119, %15, %cst_54 {dimension_numbers = #tpu.dot_dimension_numbers<[1], [0], [0], [1], [0, 0, 1, 1], [], []>} : vector<8x32xbf16>, vector<32x96xbf16>, vector<8x96xf32> -> vector<8x96xf32>
      %121 = vector.extract_strided_slice %118 {offsets = [0, 0], sizes = [8, 64], strides = [1, 1]} : vector<8x96xf32> to vector<8x64xf32>
      %122 = vector.extract_strided_slice %120 {offsets = [0, 0], sizes = [8, 64], strides = [1, 1]} : vector<8x96xf32> to vector<8x64xf32>
      %123 = arith.addf %121, %122 : vector<8x64xf32>
      %124 = arith.negf %123 : vector<8x64xf32>
      %125 = math.exp %124 : vector<8x64xf32>
      %cst_55 = arith.constant 1.000000e+00 : f32
      %126 = vector.broadcast %cst_55 : f32 to vector<8x64xf32>
      %127 = arith.addf %126, %125 : vector<8x64xf32>
      %128 = arith.divf %126, %127 : vector<8x64xf32>
      %129 = vector.extract_strided_slice %128 {offsets = [0, 0], sizes = [8, 32], strides = [1, 1]} : vector<8x64xf32> to vector<8x32xf32>
      %130 = vector.extract_strided_slice %128 {offsets = [0, 32], sizes = [8, 32], strides = [1, 1]} : vector<8x64xf32> to vector<8x32xf32>
      %131 = vector.extract_strided_slice %118 {offsets = [0, 64], sizes = [8, 32], strides = [1, 1]} : vector<8x96xf32> to vector<8x32xf32>
      %132 = vector.extract_strided_slice %120 {offsets = [0, 64], sizes = [8, 32], strides = [1, 1]} : vector<8x96xf32> to vector<8x32xf32>
      %133 = arith.addf %132, %19 : vector<8x32xf32>
      %134 = arith.mulf %129, %133 : vector<8x32xf32>
      %135 = arith.addf %131, %134 : vector<8x32xf32>
      %136 = math.tanh %135 : vector<8x32xf32>
      %cst_56 = arith.constant 1.000000e+00 : f32
      %137 = vector.broadcast %cst_56 : f32 to vector<8x32xf32>
      %138 = arith.subf %137, %130 : vector<8x32xf32>
      %139 = arith.mulf %138, %136 : vector<8x32xf32>
      %140 = arith.mulf %130, %112 : vector<8x32xf32>
      %141 = arith.addf %139, %140 : vector<8x32xf32>
      %142 = arith.truncf %141 : vector<8x32xf32> to vector<8x32xbf16>
      %c0_57 = arith.constant 0 : index
      %c4_58 = arith.constant 4 : index
      %c0_59 = arith.constant 0 : index
      %c0_60 = arith.constant 0 : index
      %143 = vector.load %arg8[%c0_57, %c4_58, %c0_59, %c0_60] : memref<1x8x8x32xbf16, #tpu.memory_space<vmem>>, vector<1x1x8x32xbf16>
      %144 = vector.shape_cast %143 : vector<1x1x8x32xbf16> to vector<8x32xbf16>
      %145 = vector.shape_cast %142 : vector<8x32xbf16> to vector<1x1x8x32xbf16>
      tpu.vector_store %arg8[%c0_57, %c4_58, %c0_59, %c0_60], %145 {strides = array<i32>} : memref<1x8x8x32xbf16, #tpu.memory_space<vmem>>, vector<1x1x8x32xbf16>,
      %c3 = arith.constant 3 : index
      %c0_61 = arith.constant 0 : index
      %c0_62 = arith.constant 0 : index
      %146 = vector.load %arg10[%c3, %c0_61, %c0_62] : memref<8x8x96xf32, #tpu.memory_space<vmem>>, vector<1x8x96xf32>
      %147 = vector.shape_cast %146 : vector<1x8x96xf32> to vector<8x96xf32>
      %148 = arith.truncf %141 : vector<8x32xf32> to vector<8x32xbf16>
      %cst_63 = arith.constant dense<0.000000e+00> : vector<8x96xf32>
      %149 = tpu.matmul %148, %15, %cst_63 {dimension_numbers = #tpu.dot_dimension_numbers<[1], [0], [0], [1], [0, 0, 1, 1], [], []>} : vector<8x32xbf16>, vector<32x96xbf16>, vector<8x96xf32> -> vector<8x96xf32>
      %150 = vector.extract_strided_slice %147 {offsets = [0, 0], sizes = [8, 64], strides = [1, 1]} : vector<8x96xf32> to vector<8x64xf32>
      %151 = vector.extract_strided_slice %149 {offsets = [0, 0], sizes = [8, 64], strides = [1, 1]} : vector<8x96xf32> to vector<8x64xf32>
      %152 = arith.addf %150, %151 : vector<8x64xf32>
      %153 = arith.negf %152 : vector<8x64xf32>
      %154 = math.exp %153 : vector<8x64xf32>
      %cst_64 = arith.constant 1.000000e+00 : f32
      %155 = vector.broadcast %cst_64 : f32 to vector<8x64xf32>
      %156 = arith.addf %155, %154 : vector<8x64xf32>
      %157 = arith.divf %155, %156 : vector<8x64xf32>
      %158 = vector.extract_strided_slice %157 {offsets = [0, 0], sizes = [8, 32], strides = [1, 1]} : vector<8x64xf32> to vector<8x32xf32>
      %159 = vector.extract_strided_slice %157 {offsets = [0, 32], sizes = [8, 32], strides = [1, 1]} : vector<8x64xf32> to vector<8x32xf32>
      %160 = vector.extract_strided_slice %147 {offsets = [0, 64], sizes = [8, 32], strides = [1, 1]} : vector<8x96xf32> to vector<8x32xf32>
      %161 = vector.extract_strided_slice %149 {offsets = [0, 64], sizes = [8, 32], strides = [1, 1]} : vector<8x96xf32> to vector<8x32xf32>
      %162 = arith.addf %161, %19 : vector<8x32xf32>
      %163 = arith.mulf %158, %162 : vector<8x32xf32>
      %164 = arith.addf %160, %163 : vector<8x32xf32>
      %165 = math.tanh %164 : vector<8x32xf32>
      %cst_65 = arith.constant 1.000000e+00 : f32
      %166 = vector.broadcast %cst_65 : f32 to vector<8x32xf32>
      %167 = arith.subf %166, %159 : vector<8x32xf32>
      %168 = arith.mulf %167, %165 : vector<8x32xf32>
      %169 = arith.mulf %159, %141 : vector<8x32xf32>
      %170 = arith.addf %168, %169 : vector<8x32xf32>
      %171 = arith.truncf %170 : vector<8x32xf32> to vector<8x32xbf16>
      %c0_66 = arith.constant 0 : index
      %c3_67 = arith.constant 3 : index
      %c0_68 = arith.constant 0 : index
      %c0_69 = arith.constant 0 : index
      %172 = vector.load %arg8[%c0_66, %c3_67, %c0_68, %c0_69] : memref<1x8x8x32xbf16, #tpu.memory_space<vmem>>, vector<1x1x8x32xbf16>
      %173 = vector.shape_cast %172 : vector<1x1x8x32xbf16> to vector<8x32xbf16>
      %174 = vector.shape_cast %171 : vector<8x32xbf16> to vector<1x1x8x32xbf16>
      tpu.vector_store %arg8[%c0_66, %c3_67, %c0_68, %c0_69], %174 {strides = array<i32>} : memref<1x8x8x32xbf16, #tpu.memory_space<vmem>>, vector<1x1x8x32xbf16>,
      %c2 = arith.constant 2 : index
      %c0_70 = arith.constant 0 : index
      %c0_71 = arith.constant 0 : index
      %175 = vector.load %arg10[%c2, %c0_70, %c0_71] : memref<8x8x96xf32, #tpu.memory_space<vmem>>, vector<1x8x96xf32>
      %176 = vector.shape_cast %175 : vector<1x8x96xf32> to vector<8x96xf32>
      %177 = arith.truncf %170 : vector<8x32xf32> to vector<8x32xbf16>
      %cst_72 = arith.constant dense<0.000000e+00> : vector<8x96xf32>
      %178 = tpu.matmul %177, %15, %cst_72 {dimension_numbers = #tpu.dot_dimension_numbers<[1], [0], [0], [1], [0, 0, 1, 1], [], []>} : vector<8x32xbf16>, vector<32x96xbf16>, vector<8x96xf32> -> vector<8x96xf32>
      %179 = vector.extract_strided_slice %176 {offsets = [0, 0], sizes = [8, 64], strides = [1, 1]} : vector<8x96xf32> to vector<8x64xf32>
      %180 = vector.extract_strided_slice %178 {offsets = [0, 0], sizes = [8, 64], strides = [1, 1]} : vector<8x96xf32> to vector<8x64xf32>
      %181 = arith.addf %179, %180 : vector<8x64xf32>
      %182 = arith.negf %181 : vector<8x64xf32>
      %183 = math.exp %182 : vector<8x64xf32>
      %cst_73 = arith.constant 1.000000e+00 : f32
      %184 = vector.broadcast %cst_73 : f32 to vector<8x64xf32>
      %185 = arith.addf %184, %183 : vector<8x64xf32>
      %186 = arith.divf %184, %185 : vector<8x64xf32>
      %187 = vector.extract_strided_slice %186 {offsets = [0, 0], sizes = [8, 32], strides = [1, 1]} : vector<8x64xf32> to vector<8x32xf32>
      %188 = vector.extract_strided_slice %186 {offsets = [0, 32], sizes = [8, 32], strides = [1, 1]} : vector<8x64xf32> to vector<8x32xf32>
      %189 = vector.extract_strided_slice %176 {offsets = [0, 64], sizes = [8, 32], strides = [1, 1]} : vector<8x96xf32> to vector<8x32xf32>
      %190 = vector.extract_strided_slice %178 {offsets = [0, 64], sizes = [8, 32], strides = [1, 1]} : vector<8x96xf32> to vector<8x32xf32>
      %191 = arith.addf %190, %19 : vector<8x32xf32>
      %192 = arith.mulf %187, %191 : vector<8x32xf32>
      %193 = arith.addf %189, %192 : vector<8x32xf32>
      %194 = math.tanh %193 : vector<8x32xf32>
      %cst_74 = arith.constant 1.000000e+00 : f32
      %195 = vector.broadcast %cst_74 : f32 to vector<8x32xf32>
      %196 = arith.subf %195, %188 : vector<8x32xf32>
      %197 = arith.mulf %196, %194 : vector<8x32xf32>
      %198 = arith.mulf %188, %170 : vector<8x32xf32>
      %199 = arith.addf %197, %198 : vector<8x32xf32>
      %200 = arith.truncf %199 : vector<8x32xf32> to vector<8x32xbf16>
      %c0_75 = arith.constant 0 : index
      %c2_76 = arith.constant 2 : index
      %c0_77 = arith.constant 0 : index
      %c0_78 = arith.constant 0 : index
      %201 = vector.load %arg8[%c0_75, %c2_76, %c0_77, %c0_78] : memref<1x8x8x32xbf16, #tpu.memory_space<vmem>>, vector<1x1x8x32xbf16>
      %202 = vector.shape_cast %201 : vector<1x1x8x32xbf16> to vector<8x32xbf16>
      %203 = vector.shape_cast %200 : vector<8x32xbf16> to vector<1x1x8x32xbf16>
      tpu.vector_store %arg8[%c0_75, %c2_76, %c0_77, %c0_78], %203 {strides = array<i32>} : memref<1x8x8x32xbf16, #tpu.memory_space<vmem>>, vector<1x1x8x32xbf16>,
      %c1 = arith.constant 1 : index
      %c0_79 = arith.constant 0 : index
      %c0_80 = arith.constant 0 : index
      %204 = vector.load %arg10[%c1, %c0_79, %c0_80] : memref<8x8x96xf32, #tpu.memory_space<vmem>>, vector<1x8x96xf32>
      %205 = vector.shape_cast %204 : vector<1x8x96xf32> to vector<8x96xf32>
      %206 = arith.truncf %199 : vector<8x32xf32> to vector<8x32xbf16>
      %cst_81 = arith.constant dense<0.000000e+00> : vector<8x96xf32>
      %207 = tpu.matmul %206, %15, %cst_81 {dimension_numbers = #tpu.dot_dimension_numbers<[1], [0], [0], [1], [0, 0, 1, 1], [], []>} : vector<8x32xbf16>, vector<32x96xbf16>, vector<8x96xf32> -> vector<8x96xf32>
      %208 = vector.extract_strided_slice %205 {offsets = [0, 0], sizes = [8, 64], strides = [1, 1]} : vector<8x96xf32> to vector<8x64xf32>
      %209 = vector.extract_strided_slice %207 {offsets = [0, 0], sizes = [8, 64], strides = [1, 1]} : vector<8x96xf32> to vector<8x64xf32>
      %210 = arith.addf %208, %209 : vector<8x64xf32>
      %211 = arith.negf %210 : vector<8x64xf32>
      %212 = math.exp %211 : vector<8x64xf32>
      %cst_82 = arith.constant 1.000000e+00 : f32
      %213 = vector.broadcast %cst_82 : f32 to vector<8x64xf32>
      %214 = arith.addf %213, %212 : vector<8x64xf32>
      %215 = arith.divf %213, %214 : vector<8x64xf32>
      %216 = vector.extract_strided_slice %215 {offsets = [0, 0], sizes = [8, 32], strides = [1, 1]} : vector<8x64xf32> to vector<8x32xf32>
      %217 = vector.extract_strided_slice %215 {offsets = [0, 32], sizes = [8, 32], strides = [1, 1]} : vector<8x64xf32> to vector<8x32xf32>
      %218 = vector.extract_strided_slice %205 {offsets = [0, 64], sizes = [8, 32], strides = [1, 1]} : vector<8x96xf32> to vector<8x32xf32>
      %219 = vector.extract_strided_slice %207 {offsets = [0, 64], sizes = [8, 32], strides = [1, 1]} : vector<8x96xf32> to vector<8x32xf32>
      %220 = arith.addf %219, %19 : vector<8x32xf32>
      %221 = arith.mulf %216, %220 : vector<8x32xf32>
      %222 = arith.addf %218, %221 : vector<8x32xf32>
      %223 = math.tanh %222 : vector<8x32xf32>
      %cst_83 = arith.constant 1.000000e+00 : f32
      %224 = vector.broadcast %cst_83 : f32 to vector<8x32xf32>
      %225 = arith.subf %224, %217 : vector<8x32xf32>
      %226 = arith.mulf %225, %223 : vector<8x32xf32>
      %227 = arith.mulf %217, %199 : vector<8x32xf32>
      %228 = arith.addf %226, %227 : vector<8x32xf32>
      %229 = arith.truncf %228 : vector<8x32xf32> to vector<8x32xbf16>
      %c0_84 = arith.constant 0 : index
      %c1_85 = arith.constant 1 : index
      %c0_86 = arith.constant 0 : index
      %c0_87 = arith.constant 0 : index
      %230 = vector.load %arg8[%c0_84, %c1_85, %c0_86, %c0_87] : memref<1x8x8x32xbf16, #tpu.memory_space<vmem>>, vector<1x1x8x32xbf16>
      %231 = vector.shape_cast %230 : vector<1x1x8x32xbf16> to vector<8x32xbf16>
      %232 = vector.shape_cast %229 : vector<8x32xbf16> to vector<1x1x8x32xbf16>
      tpu.vector_store %arg8[%c0_84, %c1_85, %c0_86, %c0_87], %232 {strides = array<i32>} : memref<1x8x8x32xbf16, #tpu.memory_space<vmem>>, vector<1x1x8x32xbf16>,
      %c0_88 = arith.constant 0 : index
      %c0_89 = arith.constant 0 : index
      %c0_90 = arith.constant 0 : index
      %233 = vector.load %arg10[%c0_88, %c0_89, %c0_90] : memref<8x8x96xf32, #tpu.memory_space<vmem>>, vector<1x8x96xf32>
      %234 = vector.shape_cast %233 : vector<1x8x96xf32> to vector<8x96xf32>
      %235 = arith.truncf %228 : vector<8x32xf32> to vector<8x32xbf16>
      %cst_91 = arith.constant dense<0.000000e+00> : vector<8x96xf32>
      %236 = tpu.matmul %235, %15, %cst_91 {dimension_numbers = #tpu.dot_dimension_numbers<[1], [0], [0], [1], [0, 0, 1, 1], [], []>} : vector<8x32xbf16>, vector<32x96xbf16>, vector<8x96xf32> -> vector<8x96xf32>
      %237 = vector.extract_strided_slice %234 {offsets = [0, 0], sizes = [8, 64], strides = [1, 1]} : vector<8x96xf32> to vector<8x64xf32>
      %238 = vector.extract_strided_slice %236 {offsets = [0, 0], sizes = [8, 64], strides = [1, 1]} : vector<8x96xf32> to vector<8x64xf32>
      %239 = arith.addf %237, %238 : vector<8x64xf32>
      %240 = arith.negf %239 : vector<8x64xf32>
      %241 = math.exp %240 : vector<8x64xf32>
      %cst_92 = arith.constant 1.000000e+00 : f32
      %242 = vector.broadcast %cst_92 : f32 to vector<8x64xf32>
      %243 = arith.addf %242, %241 : vector<8x64xf32>
      %244 = arith.divf %242, %243 : vector<8x64xf32>
      %245 = vector.extract_strided_slice %244 {offsets = [0, 0], sizes = [8, 32], strides = [1, 1]} : vector<8x64xf32> to vector<8x32xf32>
      %246 = vector.extract_strided_slice %244 {offsets = [0, 32], sizes = [8, 32], strides = [1, 1]} : vector<8x64xf32> to vector<8x32xf32>
      %247 = vector.extract_strided_slice %234 {offsets = [0, 64], sizes = [8, 32], strides = [1, 1]} : vector<8x96xf32> to vector<8x32xf32>
      %248 = vector.extract_strided_slice %236 {offsets = [0, 64], sizes = [8, 32], strides = [1, 1]} : vector<8x96xf32> to vector<8x32xf32>
      %249 = arith.addf %248, %19 : vector<8x32xf32>
      %250 = arith.mulf %245, %249 : vector<8x32xf32>
      %251 = arith.addf %247, %250 : vector<8x32xf32>
      %252 = math.tanh %251 : vector<8x32xf32>
      %cst_93 = arith.constant 1.000000e+00 : f32
      %253 = vector.broadcast %cst_93 : f32 to vector<8x32xf32>
      %254 = arith.subf %253, %246 : vector<8x32xf32>
      %255 = arith.mulf %254, %252 : vector<8x32xf32>
      %256 = arith.mulf %246, %228 : vector<8x32xf32>
      %257 = arith.addf %255, %256 : vector<8x32xf32>
      %258 = arith.truncf %257 : vector<8x32xf32> to vector<8x32xbf16>
      %c0_94 = arith.constant 0 : index
      %c0_95 = arith.constant 0 : index
      %c0_96 = arith.constant 0 : index
      %c0_97 = arith.constant 0 : index
      %259 = vector.load %arg8[%c0_94, %c0_95, %c0_96, %c0_97] : memref<1x8x8x32xbf16, #tpu.memory_space<vmem>>, vector<1x1x8x32xbf16>
      %260 = vector.shape_cast %259 : vector<1x1x8x32xbf16> to vector<8x32xbf16>
      %261 = vector.shape_cast %258 : vector<8x32xbf16> to vector<1x1x8x32xbf16>
      tpu.vector_store %arg8[%c0_94, %c0_95, %c0_96, %c0_97], %261 {strides = array<i32>} : memref<1x8x8x32xbf16, #tpu.memory_space<vmem>>, vector<1x1x8x32xbf16>,
      %c0_98 = arith.constant 0 : index
      %c0_99 = arith.constant 0 : index
      %262 = vector.load %arg11[%c0_98, %c0_99] : memref<8x32xf32, #tpu.memory_space<vmem>>, vector<8x32xf32>
      tpu.vector_store %arg11[%c0_98, %c0_99], %257 {strides = array<i32>} : memref<8x32xf32, #tpu.memory_space<vmem>>, vector<8x32xf32>,
    } else {
    }
    %c0_i32_21 = arith.constant 0 : i32
    %26 = arith.cmpi eq, %arg1, %c0_i32_21 : i32
    %27 = arith.extui %26 : i1 to i32
    %c0_i32_22 = arith.constant 0 : i32
    %28 = arith.cmpi ne, %27, %c0_i32_22 : i32
    scf.if %28 {
      %c0_23 = arith.constant 0 : index
      %c0_24 = arith.constant 0 : index
      %29 = vector.load %arg11[%c0_23, %c0_24] : memref<8x32xf32, #tpu.memory_space<vmem>>, vector<8x32xf32>
      %c0_25 = arith.constant 0 : index
      %c0_26 = arith.constant 0 : index
      %c0_27 = arith.constant 0 : index
      %30 = vector.load %arg9[%c0_25, %c0_26, %c0_27] : memref<1x8x32xf32, #tpu.memory_space<vmem>>, vector<1x8x32xf32>
      %31 = vector.shape_cast %30 : vector<1x8x32xf32> to vector<8x32xf32>
      %32 = vector.shape_cast %29 : vector<8x32xf32> to vector<1x8x32xf32>
      tpu.vector_store %arg9[%c0_25, %c0_26, %c0_27], %32 {strides = array<i32>} : memref<1x8x32xf32, #tpu.memory_space<vmem>>, vector<1x8x32xf32>,
    } else {
    }
    return
  }
  func.func @transform_0(%arg0: i32, %arg1: i32) -> (i32, i32, i32) {
    %c2_i32 = arith.constant 2 : i32
    %0 = arith.muli %c2_i32, %arg1 : i32
    %c0_i32 = arith.constant 0 : i32
    %1 = arith.subi %c0_i32, %0 : i32
    %2 = arith.muli %arg0, %1 : i32
    %3 = arith.addi %arg1, %2 : i32
    %c0_i32_0 = arith.constant 0 : i32
    %c0_i32_1 = arith.constant 0 : i32
    %c0_i32_2 = arith.constant 0 : i32
    return %3, %c0_i32_0, %c0_i32_1 : i32, i32, i32
  }
  func.func @transform_1(%arg0: i32, %arg1: i32) -> (i32, i32, i32) {
    %c0_i32 = arith.constant 0 : i32
    %c0_i32_0 = arith.constant 0 : i32
    %c0_i32_1 = arith.constant 0 : i32
    return %arg0, %c0_i32, %c0_i32_0 : i32, i32, i32
  }
  func.func @transform_2(%arg0: i32, %arg1: i32) -> (i32, i32, i32) {
    %c0_i32 = arith.constant 0 : i32
    %c0_i32_0 = arith.constant 0 : i32
    %c0_i32_1 = arith.constant 0 : i32
    return %arg0, %c0_i32, %c0_i32_0 : i32, i32, i32
  }
  func.func @transform_3(%arg0: i32, %arg1: i32) -> (i32, i32, i32) {
    %c0_i32 = arith.constant 0 : i32
    %c0_i32_0 = arith.constant 0 : i32
    %c0_i32_1 = arith.constant 0 : i32
    return %arg0, %c0_i32, %c0_i32_0 : i32, i32, i32
  }
  func.func @transform_4(%arg0: i32, %arg1: i32) -> (i32, i32, i32) {
    %c0_i32 = arith.constant 0 : i32
    %c0_i32_0 = arith.constant 0 : i32
    %c0_i32_1 = arith.constant 0 : i32
    return %arg0, %c0_i32, %c0_i32_0 : i32, i32, i32
  }
  func.func @transform_5(%arg0: i32, %arg1: i32) -> (i32, i32, i32) {
    %c0_i32 = arith.constant 0 : i32
    %c0_i32_0 = arith.constant 0 : i32
    %c0_i32_1 = arith.constant 0 : i32
    return %arg0, %c0_i32, %c0_i32_0 : i32, i32, i32
  }
  func.func @transform_6(%arg0: i32, %arg1: i32) -> (i32, i32, i32, i32) {
    %c2_i32 = arith.constant 2 : i32
    %0 = arith.muli %c2_i32, %arg1 : i32
    %c0_i32 = arith.constant 0 : i32
    %1 = arith.subi %c0_i32, %0 : i32
    %2 = arith.muli %arg0, %1 : i32
    %3 = arith.addi %arg1, %2 : i32
    %c0_i32_0 = arith.constant 0 : i32
    %c0_i32_1 = arith.constant 0 : i32
    %c0_i32_2 = arith.constant 0 : i32
    return %arg0, %3, %c0_i32_0, %c0_i32_1 : i32, i32, i32, i32
  }
  func.func @transform_7(%arg0: i32, %arg1: i32) -> (i32, i32, i32) {
    %c0_i32 = arith.constant 0 : i32
    %c0_i32_0 = arith.constant 0 : i32
    %c0_i32_1 = arith.constant 0 : i32
    return %arg0, %c0_i32, %c0_i32_0 : i32, i32, i32
  }
}

</mosaic_0001>

<bundles_post_ra>
// kernel: _lambda_.3
= control target key start
LH: loop header
LB: loop body
LE: loop exit
PB: predicated region body
PF: predicated region fallthrough
CT: control target
= control target key end

     0   :  { %s2725_s24 = smov 0   ;;  %s2727_s25 = smov 0   ;;  %s3141_s0 = inlined_call_operand.vmem [shape: bf16[8,8,64], index: 0, kind: input, shape index: {}]   ;;  %s3142_s1 = inlined_call_operand.vmem [shape: bf16[2,64,96], index: 1, kind: input, shape index: {}]   ;;  %s3143_s2 = inlined_call_operand.vmem [shape: bf16[2,32,96], index: 2, kind: input, shape index: {}]   ;;  %s3144_s3 = inlined_call_operand.vmem [shape: f32[2,1,96], index: 3, kind: input, shape index: {}]   ;;  %s3145_s4 = inlined_call_operand.vmem [shape: f32[2,1,32], index: 4, kind: input, shape index: {}]   ;;  %s3146_s5 = inlined_call_operand.vmem [shape: f32[2,8,32], index: 5, kind: input, shape index: {}]   ;;  %s3147_s6 = inlined_call_operand.vmem [shape: bf16[2,8,8,32], index: 6, kind: output, shape index: {0}]   ;;  %s3148_s7 = inlined_call_operand.vmem [shape: f32[2,8,32], index: 7, kind: output, shape index: {1}]  }
   0x1   :  { %s2729_s26 = smov 0  }
   0x2 LB: > { %s30_s27 = sadd.s32 1, %s2669_s25  ;;  %p2193_p0 = scmp.ge.s32.totalorder %s2673_s26, 1  ;;  %s2673_s26 = sphi %s2729_s26, %s18_s26   ;;  %s2669_s25 = sphi %s2727_s25, %s3150_s25   ;;  %s2665_s24 = sphi %s2725_s24, %s3149_s24  }
   0x3   : > { %p32_p1 = scmp.ge.s32.totalorder %s30_s27, 2  ;;  %p324_p2 = scmp.lt.s32.totalorder %s2673_s26, 3 }
   0x5   : > { %s3152_s27 = smov (%p32_p1, %s30_s27), 0  ;;  %p325_p3 = pnand %p2193_p0, %p324_p2 }
   0x6   : > { %p406_p4 = scmp.lt.s32.totalorder (!%p325_p3), %s2665_s24, 1  ;;  %p2216_p5 = scmp.ne.s32.totalorder (!%p325_p3), %s2665_s24, 0 }
   0x7   : > { %328 = sbr.rel (%p325_p3) target bundleno = 11132 (0x2b7c), region = 44 }
   0xc   : > { %v2551_v0 = vld [vmem:[%s3141_s0] sm:$0xff]   ;;  %vm523_vm0 = vcmask 523264   ;;  %s2750_s30 = scalar_select %p406_p4, %s2665_s24, 1  ;;  %v2552_v1 = vld [vmem:[%s3141_s0 + $0x10] sm:$0xff]   ;;  %vm454_vm1 = vcmask 261120   ;;  %v2553_v12 = vld [vmem:[%s3141_s0 + $0x8] sm:$0xff]  }
   0xd   : > { %2369 = vmatprep.mubr.msk.bf16.mxu0 %vm523_vm0, %v2551_v0  ;;  %2373 = vmatprep.mubr.msk.bf16.mxu1 %vm523_vm0, %v2552_v1  ;;  %v2554_v13 = vld [vmem:[%s3141_s0 + $0x18] sm:$0xff]   ;;  %vm601_vm2 = vcmask 785408  }
   0xe   : > { %s2286_s10 = sshll.u32 %s2750_s30, 5  ;;  %s2287_s11 = sshll.u32 %s2750_s30, 4 }
   0xf   : > { %s410_s14 = scalar_lea.vmem %s3142_s1, %s2286_s10  ;;  %s415_s17 = scalar_lea.vmem %s3143_s2, %s2287_s11 }
  0x10   : > { %s421_s20 = scalar_lea.vmem %s3145_s4, %s2750_s30  ;;  %s2198_s21 = sshll.u32 %s2750_s30, 3  ;;  %v2547_v2 = vld [vmem:[%s410_s14 + $0x18] sm:$0xff]   ;;  %v2778_v3 = vld [vmem:[%s415_s17] sm:$0xf]  ;;  %v2780_v4 = vld [vmem:[%s415_s17 + $0x4] sm:$0xf] }
  0x11   : > { %s425_s28 = scalar_lea.vmem %s3146_s5, %s2198_s21  ;;  %s2776_s9 = scalar_lea.vmem %s3147_s6, %s2286_s10  ;;  %v2782_v5 = vld [vmem:[%s415_s17 + $0x8] sm:$0xf]  ;;  %2361 = vmatprep.subr.bf16.mxu0 %v2547_v2  ;;  %v2789_v7 = vld [vmem:[%s415_s17 + $0xc] sm:$0xf]  ;;  %v2791_v8 = vld [vmem:[%s421_s20] ss:$0 sm:$0xff]  ;;  %2505 = vmatprep.subr.bf16.mxu1 %v2547_v2 }
  0x12   : > { %s2787_s13 = scalar_lea.vmem %s3148_s7, %s2198_s21  ;;  %v453_v6 = vld [vmem:[%s425_s28] sm:$0xff]  ;;  %2362 = vmatpush3.bf16.msra.mxu0 %v2547_v2  ;;  %2509 = vmatpush3.bf16.msra.mxu1 %v2547_v2  ;;  %v2548_v9 = vld [vmem:[%s410_s14 + $0x10] sm:$0xff]   ;;  %v2549_v10 = vld [vmem:[%s410_s14 + $0x8] sm:$0xff]   ;;  %s418_s19 = scalar_lea.vmem %s3144_s3, %s2750_s30 }
  0x13   : > { %455 = vst.msk [vmem:[#allocation3] sm:$0xff] %vm454_vm1, %v453_v6  ;;  %2363 = vmatprep.subr.bf16.mxu0 %v2548_v9  ;;  %2506 = vmatprep.subr.bf16.mxu1 %v2548_v9  ;;  %v2550_v11 = vld [vmem:[%s410_s14] sm:$0xff]   ;;  %s2677_s30 = smov (!%p2216_p5), 64   ;;  %s2678_s20 = smov (!%p2216_p5), 32  }
  0x14   : > { %v2202_v14 = vld [vmem:[%s418_s19] ss:$0 sm:$0xff]  ;;  %s2679_s21 = smov (!%p2216_p5), 96  }
  0x16   : > { %2364 = vmatpush3.bf16.msra.mxu0 %v2548_v9  ;;  %2510 = vmatpush3.bf16.msra.mxu1 %v2548_v9 }
  0x17   : > { %2365 = vmatprep.subr.bf16.mxu0 %v2549_v10  ;;  %2507 = vmatprep.subr.bf16.mxu1 %v2549_v10 }
  0x1a   : > { %2366 = vmatpush3.bf16.msra.mxu0 %v2549_v10  ;;  %2511 = vmatpush3.bf16.msra.mxu1 %v2549_v10 }
  0x1b   : > { %2367 = vmatprep.subr.bf16.mxu0 %v2550_v11  ;;  %2508 = vmatprep.subr.bf16.mxu1 %v2550_v11 }
  0x1e   : > { %2368 = vmatpush3.bf16.msra.mxu0 %v2550_v11  ;;  %2512 = vmatpush3.bf16.msra.mxu1 %v2550_v11 }
  0x21   : > { %2370 = vmatmul.mubr.msk.bf16.vlgmr.msra.gmra.mxu0 %vm523_vm0, %v2553_v12  ;;  %2374 = vmatmul.mubr.msk.bf16.vlgmr.msra.gmra.mxu1 %vm523_vm0, %v2554_v13 }
  0xe1   : > { %v2371_v15 = vpop.f32.mrf.mxu0  ;;  %v2375_v16 = vpop.f32.mrf.mxu1 }
  0xe2   : > { %v579_v17 = vadd.f32 %v2371_v15, %v2202_v14  ;;  %v595_v18 = vadd.f32 %v2375_v16, %v2202_v14 }
  0xe3   : > { %v570_v19 = vpop.f32.mrf.mxu0  ;;  %v586_v20 = vpop.f32.mrf.mxu1 }
  0xe4   : > { %604 = vst.msk [vmem:[#allocation2 + $0x10] sm:$0xff] %vm601_vm2, %v579_v17  ;;  %608 = vst.msk [vmem:[#allocation2 + $0x30] sm:$0xff] %vm601_vm2, %v595_v18  ;;  %v571_v21 = vadd.f32 %v2202_v14, %v570_v19  ;;  %v587_v22 = vadd.f32 %v2202_v14, %v586_v20 }
  0xe5   : > { %v2372_v23 = vpop.f32.mrf.mxu0  ;;  %v2376_v24 = vpop.f32.mrf.mxu1 }
  0xe6   : > { %602 = vst.msk [vmem:[#allocation2] sm:$0xff] %vm601_vm2, %v571_v21  ;;  %606 = vst.msk [vmem:[#allocation2 + $0x20] sm:$0xff] %vm601_vm2, %v587_v22  ;;  %v582_v25 = vadd.f32 %v2372_v23, %v2202_v14  ;;  %v598_v26 = vadd.f32 %v2376_v24, %v2202_v14  ;;  %623 = sbr.rel (%p2216_p5) target bundleno = 5677 (0x162d), region = 52 }
  0xe7   : > { %v573_v27 = vpop.f32.mrf.mxu0  ;;  %v589_v28 = vpop.f32.mrf.mxu1 }
  0xe8   : > { %605 = vst.msk [vmem:[#allocation2 + $0x18] sm:$0xff] %vm601_vm2, %v582_v25  ;;  %609 = vst.msk [vmem:[#allocation2 + $0x38] sm:$0xff] %vm601_vm2, %v598_v26  ;;  %v574_v29 = vadd.f32 %v2202_v14, %v573_v27  ;;  %v590_v30 = vadd.f32 %v2202_v14, %v589_v28 }
  0xea   : > { %603 = vst.msk [vmem:[#allocation2 + $0x8] sm:$0xff] %vm601_vm2, %v574_v29  ;;  %607 = vst.msk [vmem:[#allocation2 + $0x28] sm:$0xff] %vm601_vm2, %v590_v30 }
  0xeb   : > { %v2817_v31 = vcombine.low %v2782_v5, %v2789_v7  ;;  %v2675_v32 = vmov 0.0   ;;  %vm2676_vm3 = vmmov 0   ;;  %v2825_v33 = vcombine.low %v2778_v3, %v2780_v4  ;;  %v624_v34 = vld [vmem:[#allocation3] sm:$0xff]  ;;  %690 = vrot.lane.b32.xlu0 %v2791_v8, %s2677_s30  ;;  %v810_v30 = vld [vmem:[#allocation2 + $0x10] sm:$0xff] }
  0xec   : > { %2377 = vmatprep.subr.bf16.mxu0 %v2675_v32  ;;  %2381 = vmatprep.mubr.msk.bf16.mxu0 %vm2676_vm3, %v2675_v32  ;;  %v626_v35 = vpack.c.bf16 %v624_v34, %v624_v34  ;;  %vm724_vm4 = vcmask 257024  }
  0xed   : > { %2378 = vmatpush3.bf16.msra.mxu0 %v2817_v31  ;;  %2385 = vmatprep.subr.bf16.mxu1 %v2675_v32  ;;  %v625_v42 = vld [vmem:[#allocation2] sm:$0xff] }
  0xee   : > { %2379 = vmatprep.subr.bf16.mxu0 %v2675_v32  ;;  %2386 = vmatpush3.bf16.msra.mxu1 %v2817_v31 }
  0xef   : > { %2389 = vmatprep.mubr.msk.bf16.mxu1 %vm2676_vm3, %v2675_v32  ;;  %2387 = vmatprep.subr.bf16.mxu1 %v2675_v32 }
  0xf1   : > { %2380 = vmatpush3.bf16.msra.mxu0 %v2825_v33  ;;  %v727_v2 = vld [vmem:[#allocation2 + $0x8] sm:$0xff] }
  0xf2   : > { %2393 = vmatprep.subr.bf16.mxu0 %v2675_v32  ;;  %2388 = vmatpush3.bf16.msra.mxu1 %v2825_v33 }
  0xf3   : > { %2401 = vmatprep.subr.bf16.mxu1 %v2675_v32 }
  0xf4   : > { %2382 = vmatmul.mubr.msk.bf16.vlgmr.msra.gmra.mxu0 %vm454_vm1, %v626_v35 }
  0xf5   : > { %2394 = vmatpush3.bf16.msra.mxu0 %v2817_v31  ;;  %2397 = vmatprep.mubr.msk.bf16.mxu0 %vm2676_vm3, %v2675_v32 }
  0xf6   : > { %2395 = vmatprep.subr.bf16.mxu0 %v2675_v32 }
  0xf9   : > { %2396 = vmatpush3.bf16.msra.mxu0 %v2825_v33 }
  0xfa   : > { %2409 = vmatprep.subr.bf16.mxu0 %v2675_v32 }
 0x15d   : > { %v2846_v36 = vpop.permute.xlu0 %690 }
 0x1b4   : > { %v677_v37 = vpop.f32.mrf.mxu0 }
 0x1b5   : > { %v693_v38 = vadd.f32 %v2846_v36, %v677_v37  ;;  %v683_v43 = vadd.f32 %v677_v37, %v625_v42 }
 0x1b6   : > { %v2383_v39 = vpop.f32.mrf.mxu0 }
 0x1b7   : > { %695 = vrot.lane.b32.xlu0 %v693_v38, %s2677_s30  ;;  %v2220_v44 = vmul.f32 -1.442695, %v683_v43 }
 0x1b8   : > { %v680_v40 = vpop.f32.mrf.mxu0 }
 0x1b9   : > { %2555 = vpow2.f32 %v2220_v44 }
 0x1ba   : > { %v2384_v41 = vpop.f32.mrf.mxu0 }
 0x1bb   : > { %712 = vrot.lane.b32.xlu0 %v624_v34, %s2678_s20 }
 0x1c6   : > { %v2556_v45 = vpop.eup %2555 }
 0x1c7   : > { %v687_v46 = vadd.f32 1.0, %v2556_v45 }
 0x1c9   : > { %2557 = vrcp.f32 %v687_v46 }
 0x1d6   : > { %v2558_v47 = vpop.eup %2557 }
 0x1d7   : > { %v705_v54 = vsub.f32 1.0, %v2558_v47 }
 0x229   : > { %v696_v48 = vpop.permute.xlu0 %695 }
 0x22a   : > { %v698_v49 = vmul.f32 %v2558_v47, %v696_v48 }
 0x22c   : > { %700 = vrot.lane.b32.xlu1 %v698_v49, %s2677_s30 }
 0x22d   : > { %v713_v53 = vpop.permute.xlu0 %712 }
 0x22e   : > { %v715_v56 = vmul.f32 %v2558_v47, %v713_v53 }
 0x29e   : > { %v701_v50 = vpop.permute.xlu1 %700 }
 0x29f   : > { %v703_v51 = vadd.f32 %v701_v50, %v625_v42 }
 0x2a1   : > { %2559 = vtanh.f32 %v703_v51 }
 0x2ae   : > { %v2560_v52 = vpop.eup %2559 }
 0x2af   : > { %707 = vrot.lane.b32.xlu1 %v2560_v52, %s2679_s21 }
 0x321   : > { %v708_v55 = vpop.permute.xlu1 %707 }
 0x322   : > { %v710_v57 = vmul.f32 %v708_v55, %v705_v54 }
 0x324   : > { %v716_v58 = vadd.f32 %v715_v56, %v710_v57  ;;  %v893_v57 = vld [vmem:[#allocation2 + $0x18] sm:$0xff] }
 0x326   : > { %v2852_v59 = vpack.c.bf16 %v716_v58, %v716_v58 }
 0x328   : > { %728 = vrot.lane.b32.xlu1 %v2852_v59, %s2679_s21 }
 0x39a   : > { %v729_v60 = vpop.permute.xlu1 %728 }
 0x39b   : > { %2390 = vmatmul.mubr.msk.bf16.vlgmr.msra.gmra.mxu1 %vm454_vm1, %v729_v60 }
 0x39c   : > { %2402 = vmatpush3.bf16.msra.mxu1 %v2817_v31  ;;  %2405 = vmatprep.mubr.msk.bf16.mxu1 %vm2676_vm3, %v2675_v32 }
 0x39d   : > { %2403 = vmatprep.subr.bf16.mxu1 %v2675_v32 }
 0x3a0   : > { %2404 = vmatpush3.bf16.msra.mxu1 %v2825_v33 }
 0x3a1   : > { %2417 = vmatprep.subr.bf16.mxu1 %v2675_v32 }
 0x45b   : > { %v767_v61 = vpop.f32.mrf.mxu1 }
 0x45c   : > { %v780_v62 = vadd.f32 %v767_v61, %v2846_v36  ;;  %v773_v6 = vadd.f32 %v767_v61, %v727_v2 }
 0x45d   : > { %v2391_v63 = vpop.f32.mrf.mxu1 }
 0x45e   : > { %782 = vrot.lane.b32.xlu0 %v780_v62, %s2677_s30  ;;  %v2223_v9 = vmul.f32 -1.442695, %v773_v6 }
 0x45f   : > { %v770_v0 = vpop.f32.mrf.mxu1 }
 0x460   : > { %2561 = vpow2.f32 %v2223_v9 }
 0x461   : > { %v2392_v1 = vpop.f32.mrf.mxu1 }
 0x46d   : > { %v2562_v10 = vpop.eup %2561 }
 0x46e   : > { %v777_v11 = vadd.f32 1.0, %v2562_v10 }
 0x470   : > { %2563 = vrcp.f32 %v777_v11 }
 0x47d   : > { %v2564_v12 = vpop.eup %2563 }
 0x47e   : > { %v792_v18 = vsub.f32 1.0, %v2564_v12  ;;  %v798_v20 = vmul.f32 %v2564_v12, %v716_v58 }
 0x4d0   : > { %v783_v13 = vpop.permute.xlu0 %782 }
 0x4d1   : > { %v785_v14 = vmul.f32 %v2564_v12, %v783_v13 }
 0x4d3   : > { %787 = vrot.lane.b32.xlu1 %v785_v14, %s2677_s30 }
 0x545   : > { %v788_v15 = vpop.permute.xlu1 %787 }
 0x546   : > { %v790_v16 = vadd.f32 %v788_v15, %v727_v2 }
 0x548   : > { %2565 = vtanh.f32 %v790_v16 }
 0x555   : > { %v2566_v17 = vpop.eup %2565 }
 0x556   : > { %794 = vrot.lane.b32.xlu0 %v2566_v17, %s2679_s21 }
 0x5c8   : > { %v795_v19 = vpop.permute.xlu0 %794 }
 0x5c9   : > { %v797_v21 = vmul.f32 %v795_v19, %v792_v18 }
 0x5cb   : > { %v799_v22 = vadd.f32 %v798_v20, %v797_v21 }
 0x5cd   : > { %v2867_v23 = vpack.c.bf16 %v799_v22, %v799_v22 }
 0x5cf   : > { %811 = vrot.lane.b32.xlu1 %v2867_v23, %s2679_s21 }
 0x641   : > { %v812_v24 = vpop.permute.xlu1 %811 }
 0x642   : > { %2398 = vmatmul.mubr.msk.bf16.vlgmr.msra.gmra.mxu0 %vm454_vm1, %v812_v24 }
 0x643   : > { %2410 = vmatpush3.bf16.msra.mxu0 %v2817_v31  ;;  %2413 = vmatprep.mubr.msk.bf16.mxu0 %vm2676_vm3, %v2675_v32 }
 0x644   : > { %2411 = vmatprep.subr.bf16.mxu0 %v2675_v32 }
 0x647   : > { %2412 = vmatpush3.bf16.msra.mxu0 %v2825_v33 }
 0x648   : > { %2425 = vmatprep.subr.bf16.mxu0 %v2675_v32 }
 0x702   : > { %v850_v25 = vpop.f32.mrf.mxu0 }
 0x703   : > { %v863_v26 = vadd.f32 %v850_v25, %v2846_v36  ;;  %v856_v34 = vadd.f32 %v850_v25, %v810_v30 }
 0x704   : > { %v2399_v27 = vpop.f32.mrf.mxu0 }
 0x705   : > { %865 = vrot.lane.b32.xlu0 %v863_v26, %s2677_s30  ;;  %v2227_v35 = vmul.f32 -1.442695, %v856_v34 }
 0x706   : > { %v853_v28 = vpop.f32.mrf.mxu0 }
 0x707   : > { %2567 = vpow2.f32 %v2227_v35 }
 0x708   : > { %v2400_v29 = vpop.f32.mrf.mxu0 }
 0x714   : > { %v2568_v37 = vpop.eup %2567 }
 0x715   : > { %v860_v38 = vadd.f32 1.0, %v2568_v37 }
 0x717   : > { %2569 = vrcp.f32 %v860_v38 }
 0x724   : > { %v2570_v39 = vpop.eup %2569 }
 0x725   : > { %v875_v45 = vsub.f32 1.0, %v2570_v39  ;;  %v881_v47 = vmul.f32 %v2570_v39, %v799_v22  ;;  %v976_v22 = vld [vmem:[#allocation2 + $0x20] sm:$0xff] }
 0x777   : > { %v866_v40 = vpop.permute.xlu0 %865 }
 0x778   : > { %v868_v41 = vmul.f32 %v2570_v39, %v866_v40 }
 0x77a   : > { %870 = vrot.lane.b32.xlu1 %v868_v41, %s2677_s30 }
 0x7ec   : > { %v871_v42 = vpop.permute.xlu1 %870 }
 0x7ed   : > { %v873_v43 = vadd.f32 %v871_v42, %v810_v30 }
 0x7ef   : > { %2571 = vtanh.f32 %v873_v43 }
 0x7fc   : > { %v2572_v44 = vpop.eup %2571 }
 0x7fd   : > { %877 = vrot.lane.b32.xlu0 %v2572_v44, %s2679_s21 }
 0x86f   : > { %v878_v46 = vpop.permute.xlu0 %877 }
 0x870   : > { %v880_v48 = vmul.f32 %v878_v46, %v875_v45 }
 0x872   : > { %v882_v49 = vadd.f32 %v881_v47, %v880_v48 }
 0x874   : > { %v2882_v50 = vpack.c.bf16 %v882_v49, %v882_v49 }
 0x876   : > { %894 = vrot.lane.b32.xlu1 %v2882_v50, %s2679_s21 }
 0x8e8   : > { %v895_v51 = vpop.permute.xlu1 %894 }
 0x8e9   : > { %2406 = vmatmul.mubr.msk.bf16.vlgmr.msra.gmra.mxu1 %vm454_vm1, %v895_v51  ;;  %v1059_v51 = vld [vmem:[#allocation2 + $0x28] sm:$0xff] }
 0x8ea   : > { %2418 = vmatpush3.bf16.msra.mxu1 %v2817_v31  ;;  %2421 = vmatprep.mubr.msk.bf16.mxu1 %vm2676_vm3, %v2675_v32 }
 0x8eb   : > { %2419 = vmatprep.subr.bf16.mxu1 %v2675_v32 }
 0x8ee   : > { %2420 = vmatpush3.bf16.msra.mxu1 %v2825_v33 }
 0x8ef   : > { %2433 = vmatprep.subr.bf16.mxu1 %v2675_v32 }
 0x9a9   : > { %v933_v52 = vpop.f32.mrf.mxu1 }
 0x9aa   : > { %v946_v53 = vadd.f32 %v933_v52, %v2846_v36  ;;  %v939_v58 = vadd.f32 %v933_v52, %v893_v57 }
 0x9ab   : > { %v2407_v54 = vpop.f32.mrf.mxu1 }
 0x9ac   : > { %948 = vrot.lane.b32.xlu0 %v946_v53, %s2677_s30  ;;  %v2231_v60 = vmul.f32 -1.442695, %v939_v58 }
 0x9ad   : > { %v936_v55 = vpop.f32.mrf.mxu1 }
 0x9ae   : > { %2573 = vpow2.f32 %v2231_v60 }
 0x9af   : > { %v2408_v56 = vpop.f32.mrf.mxu1 }
 0x9bb   : > { %v2574_v61 = vpop.eup %2573 }
 0x9bc   : > { %v943_v62 = vadd.f32 1.0, %v2574_v61 }
 0x9be   : > { %2575 = vrcp.f32 %v943_v62 }
 0x9cb   : > { %v2576_v63 = vpop.eup %2575 }
 0x9cc   : > { %v958_v10 = vsub.f32 1.0, %v2576_v63  ;;  %v964_v12 = vmul.f32 %v2576_v63, %v882_v49 }
 0xa1e   : > { %v949_v0 = vpop.permute.xlu0 %948 }
 0xa1f   : > { %v951_v1 = vmul.f32 %v2576_v63, %v949_v0 }
 0xa21   : > { %953 = vrot.lane.b32.xlu1 %v951_v1, %s2677_s30 }
 0xa93   : > { %v954_v2 = vpop.permute.xlu1 %953 }
 0xa94   : > { %v956_v6 = vadd.f32 %v954_v2, %v893_v57 }
 0xa96   : > { %2577 = vtanh.f32 %v956_v6 }
 0xaa3   : > { %v2578_v9 = vpop.eup %2577 }
 0xaa4   : > { %960 = vrot.lane.b32.xlu0 %v2578_v9, %s2679_s21 }
 0xb16   : > { %v961_v11 = vpop.permute.xlu0 %960 }
 0xb17   : > { %v963_v13 = vmul.f32 %v961_v11, %v958_v10 }
 0xb19   : > { %v965_v14 = vadd.f32 %v964_v12, %v963_v13  ;;  %v1142_v13 = vld [vmem:[#allocation2 + $0x30] sm:$0xff] }
 0xb1b   : > { %v2897_v15 = vpack.c.bf16 %v965_v14, %v965_v14 }
 0xb1d   : > { %977 = vrot.lane.b32.xlu1 %v2897_v15, %s2679_s21 }
 0xb8f   : > { %v978_v16 = vpop.permute.xlu1 %977 }
 0xb90   : > { %2414 = vmatmul.mubr.msk.bf16.vlgmr.msra.gmra.mxu0 %vm454_vm1, %v978_v16 }
 0xb91   : > { %2426 = vmatpush3.bf16.msra.mxu0 %v2817_v31  ;;  %2429 = vmatprep.mubr.msk.bf16.mxu0 %vm2676_vm3, %v2675_v32 }
 0xb92   : > { %2427 = vmatprep.subr.bf16.mxu0 %v2675_v32 }
 0xb95   : > { %2428 = vmatpush3.bf16.msra.mxu0 %v2825_v33 }
 0xc50   : > { %v1016_v17 = vpop.f32.mrf.mxu0 }
 0xc51   : > { %v1029_v18 = vadd.f32 %v1016_v17, %v2846_v36  ;;  %v1022_v24 = vadd.f32 %v1016_v17, %v976_v22 }
 0xc52   : > { %v2415_v19 = vpop.f32.mrf.mxu0 }
 0xc53   : > { %1031 = vrot.lane.b32.xlu0 %v1029_v18, %s2677_s30  ;;  %v2235_v25 = vmul.f32 -1.442695, %v1022_v24 }
 0xc54   : > { %v1019_v20 = vpop.f32.mrf.mxu0 }
 0xc55   : > { %2579 = vpow2.f32 %v2235_v25 }
 0xc56   : > { %v2416_v21 = vpop.f32.mrf.mxu0 }
 0xc62   : > { %v2580_v26 = vpop.eup %2579 }
 0xc63   : > { %v1026_v27 = vadd.f32 1.0, %v2580_v26 }
 0xc65   : > { %2581 = vrcp.f32 %v1026_v27 }
 0xc72   : > { %v2582_v28 = vpop.eup %2581 }
 0xc73   : > { %v1041_v38 = vsub.f32 1.0, %v2582_v28  ;;  %v1047_v40 = vmul.f32 %v2582_v28, %v965_v14 }
 0xcc5   : > { %v1032_v29 = vpop.permute.xlu0 %1031 }
 0xcc6   : > { %v1034_v30 = vmul.f32 %v2582_v28, %v1032_v29 }
 0xcc8   : > { %1036 = vrot.lane.b32.xlu1 %v1034_v30, %s2677_s30 }
 0xd3a   : > { %v1037_v34 = vpop.permute.xlu1 %1036 }
 0xd3b   : > { %v1039_v35 = vadd.f32 %v1037_v34, %v976_v22 }
 0xd3d   : > { %2583 = vtanh.f32 %v1039_v35 }
 0xd4a   : > { %v2584_v37 = vpop.eup %2583 }
 0xd4b   : > { %1043 = vrot.lane.b32.xlu0 %v2584_v37, %s2679_s21 }
 0xdbd   : > { %v1044_v39 = vpop.permute.xlu0 %1043 }
 0xdbe   : > { %v1046_v41 = vmul.f32 %v1044_v39, %v1041_v38 }
 0xdc0   : > { %v1048_v42 = vadd.f32 %v1047_v40, %v1046_v41 }
 0xdc2   : > { %v2911_v43 = vpack.c.bf16 %v1048_v42, %v1048_v42 }
 0xdc4   : > { %1060 = vrot.lane.b32.xlu1 %v2911_v43, %s2679_s21 }
 0xe36   : > { %v1061_v44 = vpop.permute.xlu1 %1060 }
 0xe37   : > { %2422 = vmatmul.mubr.msk.bf16.vlgmr.msra.gmra.mxu1 %vm454_vm1, %v1061_v44 }
 0xe38   : > { %2434 = vmatpush3.bf16.msra.mxu1 %v2817_v31  ;;  %2437 = vmatprep.mubr.msk.bf16.mxu1 %vm2676_vm3, %v2675_v32 }
 0xe39   : > { %2435 = vmatprep.subr.bf16.mxu1 %v2675_v32 }
 0xe3c   : > { %2436 = vmatpush3.bf16.msra.mxu1 %v2825_v33 }
 0xef7   : > { %v1099_v45 = vpop.f32.mrf.mxu1 }
 0xef8   : > { %v1112_v46 = vadd.f32 %v1099_v45, %v2846_v36  ;;  %v1105_v52 = vadd.f32 %v1099_v45, %v1059_v51 }
 0xef9   : > { %v2423_v47 = vpop.f32.mrf.mxu1 }
 0xefa   : > { %1114 = vrot.lane.b32.xlu0 %v1112_v46, %s2677_s30  ;;  %v2239_v53 = vmul.f32 -1.442695, %v1105_v52 }
 0xefb   : > { %v1102_v48 = vpop.f32.mrf.mxu1 }
 0xefc   : > { %2585 = vpow2.f32 %v2239_v53 }
 0xefd   : > { %v2424_v49 = vpop.f32.mrf.mxu1 }
 0xf09   : > { %v2586_v31 = vpop.eup %2585 }
 0xf0a   : > { %v1109_v54 = vadd.f32 1.0, %v2586_v31 }
 0xf0c   : > { %2587 = vrcp.f32 %v1109_v54 }
 0xf19   : > { %v2588_v55 = vpop.eup %2587 }
 0xf1a   : > { %v1124_v60 = vsub.f32 1.0, %v2588_v55  ;;  %v1130_v62 = vmul.f32 %v2588_v55, %v1048_v42  ;;  %v1225_v42 = vld [vmem:[#allocation2 + $0x38] sm:$0xff] }
 0xf6c   : > { %v1115_v56 = vpop.permute.xlu0 %1114 }
 0xf6d   : > { %v1117_v32 = vmul.f32 %v2588_v55, %v1115_v56 }
 0xf6f   : > { %1119 = vrot.lane.b32.xlu1 %v1117_v32, %s2677_s30 }
 0xfe1   : > { %v1120_v33 = vpop.permute.xlu1 %1119 }
 0xfe2   : > { %v1122_v57 = vadd.f32 %v1120_v33, %v1059_v51 }
 0xfe4   : > { %2589 = vtanh.f32 %v1122_v57 }
 0xff1   : > { %v2590_v58 = vpop.eup %2589 }
 0xff2   : > { %1126 = vrot.lane.b32.xlu0 %v2590_v58, %s2679_s21 }
0x1064   : > { %v1127_v61 = vpop.permute.xlu0 %1126 }
0x1065   : > { %v1129_v63 = vmul.f32 %v1127_v61, %v1124_v60 }
0x1067   : > { %v1131_v0 = vadd.f32 %v1130_v62, %v1129_v63 }
0x1069   : > { %v2925_v1 = vpack.c.bf16 %v1131_v0, %v1131_v0 }
0x106b   : > { %1143 = vrot.lane.b32.xlu1 %v2925_v1, %s2679_s21 }
0x10dd   : > { %v1144_v2 = vpop.permute.xlu1 %1143 }
0x10de   : > { %2430 = vmatmul.mubr.msk.bf16.vlgmr.msra.gmra.mxu0 %vm454_vm1, %v1144_v2 }
0x119e   : > { %v1182_v6 = vpop.f32.mrf.mxu0 }
0x119f   : > { %v1195_v9 = vadd.f32 %v1182_v6, %v2846_v36  ;;  %v1188_v14 = vadd.f32 %v1182_v6, %v1142_v13 }
0x11a0   : > { %v2431_v10 = vpop.f32.mrf.mxu0 }
0x11a1   : > { %1197 = vrot.lane.b32.xlu0 %v1195_v9, %s2677_s30  ;;  %v2243_v16 = vmul.f32 -1.442695, %v1188_v14 }
0x11a2   : > { %v1185_v11 = vpop.f32.mrf.mxu0 }
0x11a3   : > { %2591 = vpow2.f32 %v2243_v16 }
0x11a4   : > { %v2432_v12 = vpop.f32.mrf.mxu0 }
0x11b0   : > { %v2592_v17 = vpop.eup %2591 }
0x11b1   : > { %v1192_v18 = vadd.f32 1.0, %v2592_v17 }
0x11b3   : > { %2593 = vrcp.f32 %v1192_v18 }
0x11c0   : > { %v2594_v19 = vpop.eup %2593 }
0x11c1   : > { %v1207_v26 = vsub.f32 1.0, %v2594_v19  ;;  %v1213_v28 = vmul.f32 %v2594_v19, %v1131_v0 }
0x1213   : > { %v1198_v20 = vpop.permute.xlu0 %1197 }
0x1214   : > { %v1200_v21 = vmul.f32 %v2594_v19, %v1198_v20 }
0x1216   : > { %1202 = vrot.lane.b32.xlu1 %v1200_v21, %s2677_s30 }
0x1288   : > { %v1203_v22 = vpop.permute.xlu1 %1202 }
0x1289   : > { %v1205_v24 = vadd.f32 %v1203_v22, %v1142_v13 }
0x128b   : > { %2595 = vtanh.f32 %v1205_v24 }
0x1298   : > { %v2596_v25 = vpop.eup %2595 }
0x1299   : > { %1209 = vrot.lane.b32.xlu0 %v2596_v25, %s2679_s21 }
0x130b   : > { %v1210_v27 = vpop.permute.xlu0 %1209 }
0x130c   : > { %v1212_v29 = vmul.f32 %v1210_v27, %v1207_v26 }
0x130e   : > { %v1214_v30 = vadd.f32 %v1213_v28, %v1212_v29 }
0x1310   : > { %v1215_v34 = vpack.c.bf16 %v1214_v30, %v1214_v30 }
0x1312   : > { %1226 = vrot.lane.b32.xlu1 %v1215_v34, %s2679_s21 }
0x1384   : > { %v1227_v35 = vpop.permute.xlu1 %1226 }
0x1385   : > { %2438 = vmatmul.mubr.msk.bf16.vlgmr.msra.gmra.mxu1 %vm454_vm1, %v1227_v35 }
0x1445   : > { %v1265_v37 = vpop.f32.mrf.mxu1 }
0x1446   : > { %v1278_v38 = vadd.f32 %v1265_v37, %v2846_v36  ;;  %v1271_v44 = vadd.f32 %v1265_v37, %v1225_v42 }
0x1447   : > { %v2439_v39 = vpop.f32.mrf.mxu1 }
0x1448   : > { %1280 = vrot.lane.b32.xlu0 %v1278_v38, %s2677_s30  ;;  %v2247_v45 = vmul.f32 -1.442695, %v1271_v44 }
0x1449   : > { %v1268_v40 = vpop.f32.mrf.mxu1 }
0x144a   : > { %2597 = vpow2.f32 %v2247_v45 }
0x144b   : > { %v2440_v41 = vpop.f32.mrf.mxu1 }
0x1457   : > { %v2598_v46 = vpop.eup %2597 }
0x1458   : > { %v1275_v47 = vadd.f32 1.0, %v2598_v46 }
0x145a   : > { %2599 = vrcp.f32 %v1275_v47 }
0x1467   : > { %v2600_v48 = vpop.eup %2599 }
0x1468   : > { %v1296_v56 = vmul.f32 %v2600_v48, %v1214_v30 }
0x14ba   : > { %v1281_v49 = vpop.permute.xlu0 %1280 }
0x14bb   : > { %v1283_v51 = vmul.f32 %v2600_v48, %v1281_v49 }
0x14bd   : > { %1285 = vrot.lane.b32.xlu1 %v1283_v51, %s2677_s30 }
0x14c1   : > { %721 = vrot.lane.b32.xlu1 %v2852_v59, %s2679_s21 }
0x14c5   : > { %887 = vrot.lane.b32.xlu1 %v2882_v50, %s2679_s21 }
0x14c9   : > { %1053 = vrot.lane.b32.xlu1 %v2911_v43, %s2679_s21  ;;  %v1290_v43 = vsub.f32 1.0, %v2600_v48 }
0x14cd   : > { %1219 = vrot.lane.b32.xlu1 %v1215_v34, %s2679_s21 }
0x152f   : > { %v1286_v36 = vpop.permute.xlu1 %1285 }
0x1530   : > { %v1288_v52 = vadd.f32 %v1286_v36, %v1225_v42 }
0x1532   : > { %2601 = vtanh.f32 %v1288_v52 }
0x1533   : > { %v722_v53 = vpop.permute.xlu1 %721 }
0x1534   : > { %725 = vst.msk [vmem:[%s2776_s9] sm:$0xf] %vm724_vm4, %v722_v53 }
0x1537   : > { %v888_v31 = vpop.permute.xlu1 %887 }
0x1538   : > { %2229 = vst.msk [vmem:[%s2776_s9 + $0x8] sm:$0xf] %vm724_vm4, %v888_v31 }
0x153b   : > { %v1054_v59 = vpop.permute.xlu1 %1053 }
0x153c   : > { %2237 = vst.msk [vmem:[%s2776_s9 + $0x10] sm:$0xf] %vm724_vm4, %v1054_v59 }
0x153f   : > { %v2602_v50 = vpop.eup %2601  ;;  %v1220_v54 = vpop.permute.xlu1 %1219 }
0x1540   : > { %2245 = vst.msk [vmem:[%s2776_s9 + $0x18] sm:$0xf] %vm724_vm4, %v1220_v54  ;;  %1292 = vrot.lane.b32.xlu0 %v2602_v50, %s2679_s21 }
0x1544   : > { %804 = vrot.lane.b32.xlu0 %v2867_v23, %s2679_s21 }
0x1548   : > { %970 = vrot.lane.b32.xlu0 %v2897_v15, %s2679_s21 }
0x154c   : > { %1136 = vrot.lane.b32.xlu0 %v2925_v1, %s2679_s21 }
0x15b2   : > { %v1293_v55 = vpop.permute.xlu0 %1292 }
0x15b3   : > { %v1295_v32 = vmul.f32 %v1293_v55, %v1290_v43 }
0x15b5   : > { %v1297_v33 = vadd.f32 %v1296_v56, %v1295_v32 }
0x15b6   : > { %v805_v57 = vpop.permute.xlu0 %804 }
0x15b7   : > { %2225 = vst.msk [vmem:[%s2776_s9 + $0x4] sm:$0xf] %vm724_vm4, %v805_v57  ;;  %1308 = vrot.lane.b32.xlu1 %v1297_v33, %s2679_s21  ;;  %v2296_v58 = vpack.c.bf16 %v1297_v33, %v1297_v33 }
0x15b9   : > { %1302 = vrot.lane.b32.xlu0 %v2296_v58, %s2679_s21 }
0x15ba   : > { %v971_v23 = vpop.permute.xlu0 %970 }
0x15bb   : > { %2233 = vst.msk [vmem:[%s2776_s9 + $0xc] sm:$0xf] %vm724_vm4, %v971_v23 }
0x15be   : > { %v1137_v15 = vpop.permute.xlu0 %1136 }
0x15bf   : > { %2241 = vst.msk [vmem:[%s2776_s9 + $0x14] sm:$0xf] %vm724_vm4, %v1137_v15 }
0x1629   : > { %v1309_v60 = vpop.permute.xlu1 %1308 }
0x162a   : > { %1311 = vst.msk [vmem:[#allocation3] sm:$0xff] %vm454_vm1, %v1309_v60 }
0x162b   : > { %v1303_v61 = vpop.permute.xlu0 %1302 }
0x162c   : > { %2249 = vst.msk [vmem:[%s2776_s9 + $0x1c] sm:$0xf] %vm724_vm4, %v1303_v61 }
0x162d PF: > { %p2250_p6 = scmp.ne.s32.totalorder %s2665_s24, 1 }
0x162e   : > { %s2682_s24 = smov (!%p2250_p6), 64   ;;  %s2683_s22 = smov (!%p2250_p6), 32  }
0x162f   : > { %1315 = sbr.rel (%p2250_p6) target bundleno = 11126 (0x2b76), region = 56  ;;  %s2684_s23 = smov (!%p2250_p6), 96  }
0x1634   : > { %v2975_v62 = vcombine.low %v2782_v5, %v2789_v7  ;;  %v2680_v63 = vmov 0.0   ;;  %vm2681_vm5 = vmmov 0   ;;  %v2983_v0 = vcombine.low %v2778_v3, %v2780_v4  ;;  %v1316_v1 = vld [vmem:[#allocation3] sm:$0xff]  ;;  %1383 = vrot.lane.b32.xlu0 %v2791_v8, %s2682_s24  ;;  %v1318_v9 = vld [vmem:[#allocation2 + $0x38] sm:$0xff]  ;;  %v1421_v39 = vld [vmem:[#allocation2 + $0x30] sm:$0xff] }
0x1635   : > { %2441 = vmatprep.subr.bf16.mxu0 %v2680_v63  ;;  %2445 = vmatprep.mubr.msk.bf16.mxu0 %vm2681_vm5, %v2680_v63  ;;  %v1319_v5 = vpack.c.bf16 %v1316_v1, %v1316_v1  ;;  %v1504_v57 = vld [vmem:[#allocation2 + $0x28] sm:$0xff]  ;;  %vm1418_vm6 = vcmask 257024  }
0x1636   : > { %2442 = vmatpush3.bf16.msra.mxu0 %v2975_v62  ;;  %2449 = vmatprep.subr.bf16.mxu1 %v2680_v63 }
0x1637   : > { %2443 = vmatprep.subr.bf16.mxu0 %v2680_v63  ;;  %2450 = vmatpush3.bf16.msra.mxu1 %v2975_v62 }
0x1638   : > { %2453 = vmatprep.mubr.msk.bf16.mxu1 %vm2681_vm5, %v2680_v63  ;;  %2451 = vmatprep.subr.bf16.mxu1 %v2680_v63 }
0x163a   : > { %2444 = vmatpush3.bf16.msra.mxu0 %v2983_v0 }
0x163b   : > { %2457 = vmatprep.subr.bf16.mxu0 %v2680_v63  ;;  %2452 = vmatpush3.bf16.msra.mxu1 %v2983_v0 }
0x163c   : > { %2465 = vmatprep.subr.bf16.mxu1 %v2680_v63 }
0x163d   : > { %2446 = vmatmul.mubr.msk.bf16.vlgmr.msra.gmra.mxu0 %vm454_vm1, %v1319_v5 }
0x163e   : > { %2458 = vmatpush3.bf16.msra.mxu0 %v2975_v62  ;;  %2461 = vmatprep.mubr.msk.bf16.mxu0 %vm2681_vm5, %v2680_v63 }
0x163f   : > { %2459 = vmatprep.subr.bf16.mxu0 %v2680_v63 }
0x1642   : > { %2460 = vmatpush3.bf16.msra.mxu0 %v2983_v0 }
0x1643   : > { %2473 = vmatprep.subr.bf16.mxu0 %v2680_v63 }
0x16a6   : > { %v3004_v3 = vpop.permute.xlu0 %1383 }
0x16fd   : > { %v1370_v4 = vpop.f32.mrf.mxu0 }
0x16fe   : > { %v1386_v7 = vadd.f32 %v3004_v3, %v1370_v4  ;;  %v1376_v10 = vadd.f32 %v1370_v4, %v1318_v9 }
0x16ff   : > { %v2447_v8 = vpop.f32.mrf.mxu0 }
0x1700   : > { %1388 = vrot.lane.b32.xlu0 %v1386_v7, %s2682_s24  ;;  %v2254_v11 = vmul.f32 -1.442695, %v1376_v10 }
0x1701   : > { %v1373_v2 = vpop.f32.mrf.mxu0 }
0x1702   : > { %2603 = vpow2.f32 %v2254_v11 }
0x1703   : > { %v2448_v6 = vpop.f32.mrf.mxu0 }
0x1704   : > { %1405 = vrot.lane.b32.xlu0 %v1316_v1, %s2683_s22 }
0x170f   : > { %v2604_v12 = vpop.eup %2603 }
0x1710   : > { %v1380_v13 = vadd.f32 1.0, %v2604_v12 }
0x1712   : > { %2605 = vrcp.f32 %v1380_v13 }
0x171f   : > { %v2606_v14 = vpop.eup %2605 }
0x1720   : > { %v1398_v22 = vsub.f32 1.0, %v2606_v14 }
0x1772   : > { %v1389_v16 = vpop.permute.xlu0 %1388 }
0x1773   : > { %v1391_v17 = vmul.f32 %v2606_v14, %v1389_v16 }
0x1775   : > { %1393 = vrot.lane.b32.xlu1 %v1391_v17, %s2682_s24 }
0x1776   : > { %v1406_v21 = vpop.permute.xlu0 %1405 }
0x1777   : > { %v1408_v25 = vmul.f32 %v2606_v14, %v1406_v21 }
0x17e7   : > { %v1394_v18 = vpop.permute.xlu1 %1393 }
0x17e8   : > { %v1396_v19 = vadd.f32 %v1394_v18, %v1318_v9 }
0x17ea   : > { %2607 = vtanh.f32 %v1396_v19 }
0x17f7   : > { %v2608_v20 = vpop.eup %2607 }
0x17f8   : > { %1400 = vrot.lane.b32.xlu1 %v2608_v20, %s2684_s23  ;;  %v1587_v20 = vld [vmem:[#allocation2 + $0x20] sm:$0xff] }
0x186a   : > { %v1401_v24 = vpop.permute.xlu1 %1400 }
0x186b   : > { %v1403_v26 = vmul.f32 %v1401_v24, %v1398_v22 }
0x186d   : > { %v1409_v27 = vadd.f32 %v1408_v25, %v1403_v26 }
0x186f   : > { %v3010_v28 = vpack.c.bf16 %v1409_v27, %v1409_v27 }
0x1871   : > { %1422 = vrot.lane.b32.xlu1 %v3010_v28, %s2684_s23 }
0x18e3   : > { %v1423_v29 = vpop.permute.xlu1 %1422 }
0x18e4   : > { %2454 = vmatmul.mubr.msk.bf16.vlgmr.msra.gmra.mxu1 %vm454_vm1, %v1423_v29 }
0x18e5   : > { %2466 = vmatpush3.bf16.msra.mxu1 %v2975_v62  ;;  %2469 = vmatprep.mubr.msk.bf16.mxu1 %vm2681_vm5, %v2680_v63 }
0x18e6   : > { %2467 = vmatprep.subr.bf16.mxu1 %v2680_v63 }
0x18e9   : > { %2468 = vmatpush3.bf16.msra.mxu1 %v2983_v0 }
0x18ea   : > { %2481 = vmatprep.subr.bf16.mxu1 %v2680_v63 }
0x19a4   : > { %v1461_v30 = vpop.f32.mrf.mxu1 }
0x19a5   : > { %v1474_v34 = vadd.f32 %v1461_v30, %v3004_v3  ;;  %v1467_v40 = vadd.f32 %v1461_v30, %v1421_v39 }
0x19a6   : > { %v2455_v35 = vpop.f32.mrf.mxu1 }
0x19a7   : > { %1476 = vrot.lane.b32.xlu0 %v1474_v34, %s2682_s24  ;;  %v2258_v41 = vmul.f32 -1.442695, %v1467_v40 }
0x19a8   : > { %v1464_v37 = vpop.f32.mrf.mxu1 }
0x19a9   : > { %2609 = vpow2.f32 %v2258_v41 }
0x19aa   : > { %v2456_v38 = vpop.f32.mrf.mxu1 }
0x19b6   : > { %v2610_v42 = vpop.eup %2609 }
0x19b7   : > { %v1471_v44 = vadd.f32 1.0, %v2610_v42 }
0x19b9   : > { %2611 = vrcp.f32 %v1471_v44 }
0x19c6   : > { %v2612_v45 = vpop.eup %2611 }
0x19c7   : > { %v1486_v36 = vsub.f32 1.0, %v2612_v45  ;;  %v1492_v53 = vmul.f32 %v2612_v45, %v1409_v27 }
0x1a19   : > { %v1477_v46 = vpop.permute.xlu0 %1476 }
0x1a1a   : > { %v1479_v47 = vmul.f32 %v2612_v45, %v1477_v46 }
0x1a1c   : > { %1481 = vrot.lane.b32.xlu1 %v1479_v47, %s2682_s24 }
0x1a8e   : > { %v1482_v48 = vpop.permute.xlu1 %1481 }
0x1a8f   : > { %v1484_v49 = vadd.f32 %v1482_v48, %v1421_v39 }
0x1a91   : > { %2613 = vtanh.f32 %v1484_v49 }
0x1a9e   : > { %v2614_v51 = vpop.eup %2613 }
0x1a9f   : > { %1488 = vrot.lane.b32.xlu0 %v2614_v51, %s2684_s23  ;;  %v1670_v51 = vld [vmem:[#allocation2 + $0x18] sm:$0xff] }
0x1b11   : > { %v1489_v52 = vpop.permute.xlu0 %1488 }
0x1b12   : > { %v1491_v31 = vmul.f32 %v1489_v52, %v1486_v36 }
0x1b14   : > { %v1493_v59 = vadd.f32 %v1492_v53, %v1491_v31 }
0x1b16   : > { %v3025_v50 = vpack.c.bf16 %v1493_v59, %v1493_v59 }
0x1b18   : > { %1505 = vrot.lane.b32.xlu1 %v3025_v50, %s2684_s23 }
0x1b8a   : > { %v1506_v54 = vpop.permute.xlu1 %1505 }
0x1b8b   : > { %2462 = vmatmul.mubr.msk.bf16.vlgmr.msra.gmra.mxu0 %vm454_vm1, %v1506_v54 }
0x1b8c   : > { %2474 = vmatpush3.bf16.msra.mxu0 %v2975_v62  ;;  %2477 = vmatprep.mubr.msk.bf16.mxu0 %vm2681_vm5, %v2680_v63 }
0x1b8d   : > { %2475 = vmatprep.subr.bf16.mxu0 %v2680_v63 }
0x1b90   : > { %2476 = vmatpush3.bf16.msra.mxu0 %v2983_v0 }
0x1b91   : > { %2489 = vmatprep.subr.bf16.mxu0 %v2680_v63 }
0x1c4b   : > { %v1544_v43 = vpop.f32.mrf.mxu0 }
0x1c4c   : > { %v1557_v55 = vadd.f32 %v1544_v43, %v3004_v3  ;;  %v1550_v58 = vadd.f32 %v1544_v43, %v1504_v57 }
0x1c4d   : > { %v2463_v56 = vpop.f32.mrf.mxu0 }
0x1c4e   : > { %1559 = vrot.lane.b32.xlu0 %v1557_v55, %s2682_s24  ;;  %v2262_v23 = vmul.f32 -1.442695, %v1550_v58 }
0x1c4f   : > { %v1547_v32 = vpop.f32.mrf.mxu0 }
0x1c50   : > { %2615 = vpow2.f32 %v2262_v23 }
0x1c51   : > { %v2464_v33 = vpop.f32.mrf.mxu0 }
0x1c5d   : > { %v2616_v15 = vpop.eup %2615 }
0x1c5e   : > { %v1554_v60 = vadd.f32 1.0, %v2616_v15 }
0x1c60   : > { %2617 = vrcp.f32 %v1554_v60 }
0x1c6d   : > { %v2618_v61 = vpop.eup %2617 }
0x1c6e   : > { %v1569_v2 = vsub.f32 1.0, %v2618_v61  ;;  %v1575_v9 = vmul.f32 %v2618_v61, %v1493_v59 }
0x1cc0   : > { %v1560_v1 = vpop.permute.xlu0 %1559 }
0x1cc1   : > { %v1562_v5 = vmul.f32 %v2618_v61, %v1560_v1 }
0x1cc3   : > { %1564 = vrot.lane.b32.xlu1 %v1562_v5, %s2682_s24 }
0x1d35   : > { %v1565_v4 = vpop.permute.xlu1 %1564 }
0x1d36   : > { %v1567_v7 = vadd.f32 %v1565_v4, %v1504_v57 }
0x1d38   : > { %2619 = vtanh.f32 %v1567_v7 }
0x1d45   : > { %v2620_v8 = vpop.eup %2619 }
0x1d46   : > { %1571 = vrot.lane.b32.xlu0 %v2620_v8, %s2684_s23 }
0x1db8   : > { %v1572_v6 = vpop.permute.xlu0 %1571 }
0x1db9   : > { %v1574_v10 = vmul.f32 %v1572_v6, %v1569_v2  ;;  %v1753_v2 = vld [vmem:[#allocation2 + $0x10] sm:$0xff] }
0x1dbb   : > { %v1576_v11 = vadd.f32 %v1575_v9, %v1574_v10 }
0x1dbd   : > { %v3040_v12 = vpack.c.bf16 %v1576_v11, %v1576_v11 }
0x1dbf   : > { %1588 = vrot.lane.b32.xlu1 %v3040_v12, %s2684_s23 }
0x1e31   : > { %v1589_v13 = vpop.permute.xlu1 %1588 }
0x1e32   : > { %2470 = vmatmul.mubr.msk.bf16.vlgmr.msra.gmra.mxu1 %vm454_vm1, %v1589_v13 }
0x1e33   : > { %2482 = vmatpush3.bf16.msra.mxu1 %v2975_v62  ;;  %2485 = vmatprep.mubr.msk.bf16.mxu1 %vm2681_vm5, %v2680_v63 }
0x1e34   : > { %2483 = vmatprep.subr.bf16.mxu1 %v2680_v63 }
0x1e37   : > { %2484 = vmatpush3.bf16.msra.mxu1 %v2983_v0 }
0x1e38   : > { %2497 = vmatprep.subr.bf16.mxu1 %v2680_v63 }
0x1ef2   : > { %v1627_v14 = vpop.f32.mrf.mxu1 }
0x1ef3   : > { %v1640_v16 = vadd.f32 %v1627_v14, %v3004_v3  ;;  %v1633_v21 = vadd.f32 %v1627_v14, %v1587_v20 }
0x1ef4   : > { %v2471_v17 = vpop.f32.mrf.mxu1 }
0x1ef5   : > { %1642 = vrot.lane.b32.xlu0 %v1640_v16, %s2682_s24  ;;  %v2266_v22 = vmul.f32 -1.442695, %v1633_v21 }
0x1ef6   : > { %v1630_v18 = vpop.f32.mrf.mxu1 }
0x1ef7   : > { %2621 = vpow2.f32 %v2266_v22 }
0x1ef8   : > { %v2472_v19 = vpop.f32.mrf.mxu1 }
0x1f04   : > { %v2622_v24 = vpop.eup %2621 }
0x1f05   : > { %v1637_v25 = vadd.f32 1.0, %v2622_v24 }
0x1f07   : > { %2623 = vrcp.f32 %v1637_v25 }
0x1f14   : > { %v2624_v26 = vpop.eup %2623 }
0x1f15   : > { %v1652_v37 = vsub.f32 1.0, %v2624_v26  ;;  %v1658_v39 = vmul.f32 %v2624_v26, %v1576_v11 }
0x1f67   : > { %v1643_v27 = vpop.permute.xlu0 %1642 }
0x1f68   : > { %v1645_v29 = vmul.f32 %v2624_v26, %v1643_v27 }
0x1f6a   : > { %1647 = vrot.lane.b32.xlu1 %v1645_v29, %s2682_s24 }
0x1fdc   : > { %v1648_v30 = vpop.permute.xlu1 %1647 }
0x1fdd   : > { %v1650_v34 = vadd.f32 %v1648_v30, %v1587_v20 }
0x1fdf   : > { %2625 = vtanh.f32 %v1650_v34  ;;  %v1836_v34 = vld [vmem:[#allocation2 + $0x8] sm:$0xff] }
0x1fec   : > { %v2626_v35 = vpop.eup %2625 }
0x1fed   : > { %1654 = vrot.lane.b32.xlu0 %v2626_v35, %s2684_s23 }
0x205f   : > { %v1655_v38 = vpop.permute.xlu0 %1654 }
0x2060   : > { %v1657_v40 = vmul.f32 %v1655_v38, %v1652_v37 }
0x2062   : > { %v1659_v41 = vadd.f32 %v1658_v39, %v1657_v40 }
0x2064   : > { %v3055_v42 = vpack.c.bf16 %v1659_v41, %v1659_v41 }
0x2066   : > { %1671 = vrot.lane.b32.xlu1 %v3055_v42, %s2684_s23 }
0x20d8   : > { %v1672_v44 = vpop.permute.xlu1 %1671 }
0x20d9   : > { %2478 = vmatmul.mubr.msk.bf16.vlgmr.msra.gmra.mxu0 %vm454_vm1, %v1672_v44 }
0x20da   : > { %2490 = vmatpush3.bf16.msra.mxu0 %v2975_v62  ;;  %2493 = vmatprep.mubr.msk.bf16.mxu0 %vm2681_vm5, %v2680_v63 }
0x20db   : > { %2491 = vmatprep.subr.bf16.mxu0 %v2680_v63 }
0x20de   : > { %2492 = vmatpush3.bf16.msra.mxu0 %v2983_v0 }
0x2199   : > { %v1710_v45 = vpop.f32.mrf.mxu0 }
0x219a   : > { %v1723_v46 = vadd.f32 %v1710_v45, %v3004_v3  ;;  %v1716_v36 = vadd.f32 %v1710_v45, %v1670_v51 }
0x219b   : > { %v2479_v47 = vpop.f32.mrf.mxu0 }
0x219c   : > { %1725 = vrot.lane.b32.xlu0 %v1723_v46, %s2682_s24  ;;  %v2270_v52 = vmul.f32 -1.442695, %v1716_v36 }
0x219d   : > { %v1713_v48 = vpop.f32.mrf.mxu0 }
0x219e   : > { %2627 = vpow2.f32 %v2270_v52 }
0x219f   : > { %v2480_v49 = vpop.f32.mrf.mxu0 }
0x21ab   : > { %v2628_v53 = vpop.eup %2627 }
0x21ac   : > { %v1720_v31 = vadd.f32 1.0, %v2628_v53 }
0x21ae   : > { %2629 = vrcp.f32 %v1720_v31 }
0x21bb   : > { %v2630_v59 = vpop.eup %2629 }
0x21bc   : > { %v1735_v33 = vsub.f32 1.0, %v2630_v59  ;;  %v1741_v58 = vmul.f32 %v2630_v59, %v1659_v41 }
0x220e   : > { %v1726_v54 = vpop.permute.xlu0 %1725 }
0x220f   : > { %v1728_v43 = vmul.f32 %v2630_v59, %v1726_v54 }
0x2211   : > { %1730 = vrot.lane.b32.xlu1 %v1728_v43, %s2682_s24 }
0x2283   : > { %v1731_v55 = vpop.permute.xlu1 %1730 }
0x2284   : > { %v1733_v56 = vadd.f32 %v1731_v55, %v1670_v51 }
0x2286   : > { %2631 = vtanh.f32 %v1733_v56 }
0x2293   : > { %v2632_v32 = vpop.eup %2631 }
0x2294   : > { %1737 = vrot.lane.b32.xlu0 %v2632_v32, %s2684_s23  ;;  %v1918_v32 = vld [vmem:[#allocation2] sm:$0xff] }
0x2306   : > { %v1738_v57 = vpop.permute.xlu0 %1737 }
0x2307   : > { %v1740_v23 = vmul.f32 %v1738_v57, %v1735_v33 }
0x2309   : > { %v1742_v15 = vadd.f32 %v1741_v58, %v1740_v23 }
0x230b   : > { %v3069_v60 = vpack.c.bf16 %v1742_v15, %v1742_v15 }
0x230d   : > { %1754 = vrot.lane.b32.xlu1 %v3069_v60, %s2684_s23 }
0x237f   : > { %v1755_v61 = vpop.permute.xlu1 %1754 }
0x2380   : > { %2486 = vmatmul.mubr.msk.bf16.vlgmr.msra.gmra.mxu1 %vm454_vm1, %v1755_v61 }
0x2381   : > { %2498 = vmatpush3.bf16.msra.mxu1 %v2975_v62  ;;  %2501 = vmatprep.mubr.msk.bf16.mxu1 %vm2681_vm5, %v2680_v63 }
0x2382   : > { %2499 = vmatprep.subr.bf16.mxu1 %v2680_v63 }
0x2385   : > { %2500 = vmatpush3.bf16.msra.mxu1 %v2983_v0 }
0x2440   : > { %v1793_v1 = vpop.f32.mrf.mxu1 }
0x2441   : > { %v1806_v5 = vadd.f32 %v1793_v1, %v3004_v3  ;;  %v1799_v6 = vadd.f32 %v1793_v1, %v1753_v2 }
0x2442   : > { %v2487_v4 = vpop.f32.mrf.mxu1 }
0x2443   : > { %1808 = vrot.lane.b32.xlu0 %v1806_v5, %s2682_s24  ;;  %v2274_v9 = vmul.f32 -1.442695, %v1799_v6 }
0x2444   : > { %v1796_v7 = vpop.f32.mrf.mxu1 }
0x2445   : > { %2633 = vpow2.f32 %v2274_v9 }
0x2446   : > { %v2488_v8 = vpop.f32.mrf.mxu1 }
0x2452   : > { %v2634_v62 = vpop.eup %2633 }
0x2453   : > { %v1803_v10 = vadd.f32 1.0, %v2634_v62 }
0x2455   : > { %2635 = vrcp.f32 %v1803_v10 }
0x2462   : > { %v2636_v11 = vpop.eup %2635 }
0x2463   : > { %v1818_v17 = vsub.f32 1.0, %v2636_v11  ;;  %v1824_v19 = vmul.f32 %v2636_v11, %v1742_v15 }
0x24b5   : > { %v1809_v13 = vpop.permute.xlu0 %1808 }
0x24b6   : > { %v1811_v63 = vmul.f32 %v2636_v11, %v1809_v13 }
0x24b8   : > { %1813 = vrot.lane.b32.xlu1 %v1811_v63, %s2682_s24 }
0x252a   : > { %v1814_v0 = vpop.permute.xlu1 %1813 }
0x252b   : > { %v1816_v14 = vadd.f32 %v1814_v0, %v1753_v2 }
0x252d   : > { %2637 = vtanh.f32 %v1816_v14 }
0x253a   : > { %v2638_v16 = vpop.eup %2637 }
0x253b   : > { %1820 = vrot.lane.b32.xlu0 %v2638_v16, %s2684_s23 }
0x25ad   : > { %v1821_v18 = vpop.permute.xlu0 %1820 }
0x25ae   : > { %v1823_v20 = vmul.f32 %v1821_v18, %v1818_v17 }
0x25b0   : > { %v1825_v21 = vadd.f32 %v1824_v19, %v1823_v20 }
0x25b2   : > { %v3083_v22 = vpack.c.bf16 %v1825_v21, %v1825_v21 }
0x25b4   : > { %1837 = vrot.lane.b32.xlu1 %v3083_v22, %s2684_s23 }
0x2626   : > { %v1838_v24 = vpop.permute.xlu1 %1837 }
0x2627   : > { %2494 = vmatmul.mubr.msk.bf16.vlgmr.msra.gmra.mxu0 %vm454_vm1, %v1838_v24 }
0x26e7   : > { %v1876_v25 = vpop.f32.mrf.mxu0 }
0x26e8   : > { %v1889_v26 = vadd.f32 %v1876_v25, %v3004_v3  ;;  %v1882_v35 = vadd.f32 %v1876_v25, %v1836_v34 }
0x26e9   : > { %v2495_v27 = vpop.f32.mrf.mxu0 }
0x26ea   : > { %1891 = vrot.lane.b32.xlu0 %v1889_v26, %s2682_s24  ;;  %v2278_v37 = vmul.f32 -1.442695, %v1882_v35 }
0x26eb   : > { %v1879_v29 = vpop.f32.mrf.mxu0 }
0x26ec   : > { %2639 = vpow2.f32 %v2278_v37 }
0x26ed   : > { %v2496_v30 = vpop.f32.mrf.mxu0 }
0x26f9   : > { %v2640_v38 = vpop.eup %2639 }
0x26fa   : > { %v1886_v39 = vadd.f32 1.0, %v2640_v38 }
0x26fc   : > { %2641 = vrcp.f32 %v1886_v39 }
0x2709   : > { %v2642_v40 = vpop.eup %2641 }
0x270a   : > { %v1901_v48 = vsub.f32 1.0, %v2642_v40  ;;  %v1907_v51 = vmul.f32 %v2642_v40, %v1825_v21 }
0x275c   : > { %v1892_v41 = vpop.permute.xlu0 %1891 }
0x275d   : > { %v1894_v44 = vmul.f32 %v2642_v40, %v1892_v41 }
0x275f   : > { %1896 = vrot.lane.b32.xlu1 %v1894_v44, %s2682_s24 }
0x27d1   : > { %v1897_v45 = vpop.permute.xlu1 %1896 }
0x27d2   : > { %v1899_v46 = vadd.f32 %v1897_v45, %v1836_v34 }
0x27d4   : > { %2643 = vtanh.f32 %v1899_v46 }
0x27e1   : > { %v2644_v47 = vpop.eup %2643 }
0x27e2   : > { %1903 = vrot.lane.b32.xlu0 %v2644_v47, %s2684_s23 }
0x2854   : > { %v1904_v49 = vpop.permute.xlu0 %1903 }
0x2855   : > { %v1906_v36 = vmul.f32 %v1904_v49, %v1901_v48 }
0x2857   : > { %v1908_v52 = vadd.f32 %v1907_v51, %v1906_v36 }
0x2859   : > { %v1909_v53 = vpack.c.bf16 %v1908_v52, %v1908_v52 }
0x285b   : > { %1919 = vrot.lane.b32.xlu1 %v1909_v53, %s2684_s23 }
0x28cd   : > { %v1920_v31 = vpop.permute.xlu1 %1919 }
0x28ce   : > { %2502 = vmatmul.mubr.msk.bf16.vlgmr.msra.gmra.mxu1 %vm454_vm1, %v1920_v31 }
0x298e   : > { %v1958_v59 = vpop.f32.mrf.mxu1 }
0x298f   : > { %v1971_v54 = vadd.f32 %v1958_v59, %v3004_v3  ;;  %v1964_v33 = vadd.f32 %v1958_v59, %v1918_v32 }
0x2990   : > { %v2503_v43 = vpop.f32.mrf.mxu1 }
0x2991   : > { %1973 = vrot.lane.b32.xlu0 %v1971_v54, %s2682_s24  ;;  %v2282_v57 = vmul.f32 -1.442695, %v1964_v33 }
0x2992   : > { %v1961_v55 = vpop.f32.mrf.mxu1 }
0x2993   : > { %2645 = vpow2.f32 %v2282_v57 }
0x2994   : > { %v2504_v56 = vpop.f32.mrf.mxu1 }
0x29a0   : > { %v2646_v58 = vpop.eup %2645 }
0x29a1   : > { %v1968_v23 = vadd.f32 1.0, %v2646_v58 }
0x29a3   : > { %2647 = vrcp.f32 %v1968_v23 }
0x29b0   : > { %v2648_v15 = vpop.eup %2647 }
0x29b1   : > { %v1989_v6 = vmul.f32 %v2648_v15, %v1908_v52 }
0x2a03   : > { %v1974_v61 = vpop.permute.xlu0 %1973 }
0x2a04   : > { %v1976_v1 = vmul.f32 %v2648_v15, %v1974_v61 }
0x2a06   : > { %1978 = vrot.lane.b32.xlu1 %v1976_v1, %s2682_s24 }
0x2a0a   : > { %1414 = vrot.lane.b32.xlu1 %v3010_v28, %s2684_s23 }
0x2a0e   : > { %1581 = vrot.lane.b32.xlu1 %v3040_v12, %s2684_s23 }
0x2a12   : > { %1747 = vrot.lane.b32.xlu1 %v3069_v60, %s2684_s23  ;;  %v1983_v60 = vsub.f32 1.0, %v2648_v15 }
0x2a16   : > { %1913 = vrot.lane.b32.xlu1 %v1909_v53, %s2684_s23 }
0x2a78   : > { %v1979_v3 = vpop.permute.xlu1 %1978 }
0x2a79   : > { %v1981_v5 = vadd.f32 %v1979_v3, %v1918_v32 }
0x2a7b   : > { %2649 = vtanh.f32 %v1981_v5 }
0x2a7c   : > { %v1415_v4 = vpop.permute.xlu1 %1414 }
0x2a7d   : > { %2256 = vst.msk [vmem:[%s2776_s9 + $0x1c] sm:$0xf] %vm1418_vm6, %v1415_v4 }
0x2a80   : > { %v1582_v7 = vpop.permute.xlu1 %1581 }
0x2a81   : > { %2264 = vst.msk [vmem:[%s2776_s9 + $0x14] sm:$0xf] %vm1418_vm6, %v1582_v7 }
0x2a84   : > { %v1748_v28 = vpop.permute.xlu1 %1747 }
0x2a85   : > { %2272 = vst.msk [vmem:[%s2776_s9 + $0xc] sm:$0xf] %vm1418_vm6, %v1748_v28 }
0x2a88   : > { %v2650_v12 = vpop.eup %2649  ;;  %v1914_v8 = vpop.permute.xlu1 %1913 }
0x2a89   : > { %2280 = vst.msk [vmem:[%s2776_s9 + $0x4] sm:$0xf] %vm1418_vm6, %v1914_v8  ;;  %1985 = vrot.lane.b32.xlu0 %v2650_v12, %s2684_s23 }
0x2a8d   : > { %1498 = vrot.lane.b32.xlu0 %v3025_v50, %s2684_s23 }
0x2a91   : > { %1664 = vrot.lane.b32.xlu0 %v3055_v42, %s2684_s23 }
0x2a95   : > { %1830 = vrot.lane.b32.xlu0 %v3083_v22, %s2684_s23 }
0x2afb   : > { %v1986_v2 = vpop.permute.xlu0 %1985 }
0x2afc   : > { %v1988_v9 = vmul.f32 %v1986_v2, %v1983_v60 }
0x2afe   : > { %v1990_v62 = vadd.f32 %v1989_v6, %v1988_v9 }
0x2aff   : > { %v1499_v10 = vpop.permute.xlu0 %1498 }
0x2b00   : > { %2260 = vst.msk [vmem:[%s2776_s9 + $0x18] sm:$0xf] %vm1418_vm6, %v1499_v10  ;;  %2000 = vrot.lane.b32.xlu1 %v1990_v62, %s2684_s23  ;;  %v2304_v11 = vpack.c.bf16 %v1990_v62, %v1990_v62 }
0x2b02   : > { %1995 = vrot.lane.b32.xlu0 %v2304_v11, %s2684_s23 }
0x2b03   : > { %v1665_v50 = vpop.permute.xlu0 %1664 }
0x2b04   : > { %2268 = vst.msk [vmem:[%s2776_s9 + $0x10] sm:$0xf] %vm1418_vm6, %v1665_v50 }
0x2b07   : > { %v1831_v42 = vpop.permute.xlu0 %1830 }
0x2b08   : > { %2276 = vst.msk [vmem:[%s2776_s9 + $0x8] sm:$0xf] %vm1418_vm6, %v1831_v42 }
0x2b72   : > { %v2001_v13 = vpop.permute.xlu1 %2000 }
0x2b73   : > { %2003 = vst.msk [vmem:[#allocation3] sm:$0xff] %vm454_vm1, %v2001_v13 }
0x2b74   : > { %v1996_v63 = vpop.permute.xlu0 %1995 }
0x2b75   : > { %1998 = vst.msk [vmem:[%s2776_s9] sm:$0xf] %vm1418_vm6, %v1996_v63 }
0x2b76 PF:  {}
0x2b7a   : > { %v2007_v0 = vld [vmem:[#allocation3] sm:$0xff] }
0x2b7b   : > { %2009 = vst.msk [vmem:[%s2787_s13] sm:$0xff] %vm454_vm1, %v2007_v0 }
0x2b7c PF: > { %s18_s26 = sadd.s32 1, %s2673_s26   ;;  %s3149_s24 = smov %s2669_s25 }
0x2b7d   : > { %p15_p7 = scmp.ge.s32.totalorder %s18_s26, 4   ;;  %s3150_s25 = smov %s3152_s27 }
0x2b7f   :  { %17 = sbr.rel (!%p15_p7) target bundleno = 2 (0x2), region = 145 }

// kernel: _lambda_.2
= control target key start
LH: loop header
LB: loop body
LE: loop exit
PB: predicated region body
PF: predicated region fallthrough
CT: control target
= control target key end

     0   :  { %s2692_s24 = smov 0   ;;  %s2694_s25 = smov 0   ;;  %s3108_s0 = inlined_call_operand.vmem [shape: bf16[8,8,32], index: 0, kind: input, shape index: {}]   ;;  %s3109_s1 = inlined_call_operand.vmem [shape: bf16[2,32,96], index: 1, kind: input, shape index: {}]   ;;  %s3110_s2 = inlined_call_operand.vmem [shape: bf16[2,32,96], index: 2, kind: input, shape index: {}]   ;;  %s3111_s3 = inlined_call_operand.vmem [shape: f32[2,1,96], index: 3, kind: input, shape index: {}]   ;;  %s3112_s4 = inlined_call_operand.vmem [shape: f32[2,1,32], index: 4, kind: input, shape index: {}]   ;;  %s3113_s5 = inlined_call_operand.vmem [shape: f32[2,8,32], index: 5, kind: input, shape index: {}]   ;;  %s3114_s6 = inlined_call_operand.vmem [shape: bf16[2,8,8,32], index: 6, kind: output, shape index: {0}]   ;;  %s3115_s7 = inlined_call_operand.vmem [shape: f32[2,8,32], index: 7, kind: output, shape index: {1}]  }
   0x1   :  { %s2696_s26 = smov 0  }
   0x2 LB: > { %s30_s27 = sadd.s32 1, %s2636_s25  ;;  %p2174_p0 = scmp.ge.s32.totalorder %s2640_s26, 1  ;;  %s2640_s26 = sphi %s2696_s26, %s18_s26   ;;  %s2636_s25 = sphi %s2694_s25, %s3117_s25   ;;  %s2632_s24 = sphi %s2692_s24, %s3116_s24  }
   0x3   : > { %p32_p1 = scmp.ge.s32.totalorder %s30_s27, 2  ;;  %p324_p2 = scmp.lt.s32.totalorder %s2640_s26, 3 }
   0x5   : > { %s3119_s27 = smov (%p32_p1, %s30_s27), 0  ;;  %p325_p3 = pnand %p2174_p0, %p324_p2 }
   0x6   : > { %p406_p4 = scmp.lt.s32.totalorder (!%p325_p3), %s2632_s24, 1  ;;  %p2195_p5 = scmp.ne.s32.totalorder (!%p325_p3), %s2632_s24, 0 }
   0x7   : > { %328 = sbr.rel (%p325_p3) target bundleno = 11124 (0x2b74), region = 44 }
   0xc   : > { %vm454_vm0 = vcmask 261120   ;;  %v2518_v0 = vld [vmem:[%s3108_s0] sm:$0xff]   ;;  %s2717_s30 = scalar_select %p406_p4, %s2632_s24, 1  ;;  %v2519_v1 = vld [vmem:[%s3108_s0 + $0x10] sm:$0xff]   ;;  %v2520_v10 = vld [vmem:[%s3108_s0 + $0x8] sm:$0xff]   ;;  %vm585_vm1 = vcmask 785408  }
   0xd   : > { %2342 = vmatprep.mubr.msk.bf16.mxu0 %vm454_vm0, %v2518_v0  ;;  %2346 = vmatprep.mubr.msk.bf16.mxu1 %vm454_vm0, %v2519_v1  ;;  %v2521_v11 = vld [vmem:[%s3108_s0 + $0x18] sm:$0xff]   ;;  %s2646_s21 = smov (!%p2195_p5), 96  }
   0xe   : > { %s2265_s10 = sshll.u32 %s2717_s30, 4  ;;  %s421_s13 = scalar_lea.vmem %s3112_s4, %s2717_s30 }
   0xf   : > { %s410_s16 = scalar_lea.vmem %s3109_s1, %s2265_s10  ;;  %s415_s19 = scalar_lea.vmem %s3110_s2, %s2265_s10  ;;  %v2735_v2 = vld [vmem:[%s421_s13] ss:$0 sm:$0xff] }
  0x10   : > { %s2267_s20 = sshll.u32 %s2717_s30, 5  ;;  %v2516_v3 = vld [vmem:[%s410_s16 + $0x8] sm:$0xff]   ;;  %v2743_v4 = vld [vmem:[%s415_s19] sm:$0xf]  ;;  %v2745_v5 = vld [vmem:[%s415_s19 + $0x4] sm:$0xf] }
  0x11   : > { %s2741_s23 = scalar_lea.vmem %s3114_s6, %s2267_s20  ;;  %v2747_v6 = vld [vmem:[%s415_s19 + $0x8] sm:$0xf]  ;;  %2338 = vmatprep.subr.bf16.mxu0 %v2516_v3  ;;  %v2749_v7 = vld [vmem:[%s415_s19 + $0xc] sm:$0xf]  ;;  %2478 = vmatprep.subr.bf16.mxu1 %v2516_v3  ;;  %v2517_v8 = vld [vmem:[%s410_s16] sm:$0xff]   ;;  %s2179_s28 = sshll.u32 %s2717_s30, 3 }
  0x12   : > { %2339 = vmatpush3.bf16.msra.mxu0 %v2516_v3  ;;  %2480 = vmatpush3.bf16.msra.mxu1 %v2516_v3  ;;  %s425_s9 = scalar_lea.vmem %s3113_s5, %s2179_s28  ;;  %s2758_s12 = scalar_lea.vmem %s3115_s7, %s2179_s28 }
  0x13   : > { %2340 = vmatprep.subr.bf16.mxu0 %v2517_v8  ;;  %2479 = vmatprep.subr.bf16.mxu1 %v2517_v8  ;;  %v453_v9 = vld [vmem:[%s425_s9] sm:$0xff]  ;;  %s418_s19 = scalar_lea.vmem %s3111_s3, %s2717_s30  ;;  %s2644_s30 = smov (!%p2195_p5), 64  }
  0x14   : > { %455 = vst.msk [vmem:[#allocation3] sm:$0xff] %vm454_vm0, %v453_v9  ;;  %v2183_v12 = vld [vmem:[%s418_s19] ss:$0 sm:$0xff]  ;;  %s2645_s20 = smov (!%p2195_p5), 32  }
  0x16   : > { %2341 = vmatpush3.bf16.msra.mxu0 %v2517_v8  ;;  %2481 = vmatpush3.bf16.msra.mxu1 %v2517_v8 }
  0x19   : > { %2343 = vmatmul.mubr.msk.bf16.vlgmr.msra.gmra.mxu0 %vm454_vm0, %v2520_v10  ;;  %2347 = vmatmul.mubr.msk.bf16.vlgmr.msra.gmra.mxu1 %vm454_vm0, %v2521_v11 }
  0xd9   : > { %v2344_v13 = vpop.f32.mrf.mxu0  ;;  %v2348_v14 = vpop.f32.mrf.mxu1 }
  0xda   : > { %v563_v15 = vadd.f32 %v2344_v13, %v2183_v12  ;;  %v579_v16 = vadd.f32 %v2348_v14, %v2183_v12 }
  0xdb   : > { %v554_v17 = vpop.f32.mrf.mxu0  ;;  %v570_v18 = vpop.f32.mrf.mxu1 }
  0xdc   : > { %588 = vst.msk [vmem:[#allocation2 + $0x10] sm:$0xff] %vm585_vm1, %v563_v15  ;;  %592 = vst.msk [vmem:[#allocation2 + $0x30] sm:$0xff] %vm585_vm1, %v579_v16  ;;  %v555_v19 = vadd.f32 %v2183_v12, %v554_v17  ;;  %v571_v20 = vadd.f32 %v2183_v12, %v570_v18 }
  0xdd   : > { %v2345_v21 = vpop.f32.mrf.mxu0  ;;  %v2349_v22 = vpop.f32.mrf.mxu1 }
  0xde   : > { %586 = vst.msk [vmem:[#allocation2] sm:$0xff] %vm585_vm1, %v555_v19  ;;  %590 = vst.msk [vmem:[#allocation2 + $0x20] sm:$0xff] %vm585_vm1, %v571_v20  ;;  %v566_v23 = vadd.f32 %v2345_v21, %v2183_v12  ;;  %v582_v24 = vadd.f32 %v2349_v22, %v2183_v12  ;;  %607 = sbr.rel (%p2195_p5) target bundleno = 5669 (0x1625), region = 52 }
  0xdf   : > { %v557_v25 = vpop.f32.mrf.mxu0  ;;  %v573_v26 = vpop.f32.mrf.mxu1 }
  0xe0   : > { %589 = vst.msk [vmem:[#allocation2 + $0x18] sm:$0xff] %vm585_vm1, %v566_v23  ;;  %593 = vst.msk [vmem:[#allocation2 + $0x38] sm:$0xff] %vm585_vm1, %v582_v24  ;;  %v558_v27 = vadd.f32 %v2183_v12, %v557_v25  ;;  %v574_v28 = vadd.f32 %v2183_v12, %v573_v26 }
  0xe2   : > { %587 = vst.msk [vmem:[#allocation2 + $0x8] sm:$0xff] %vm585_vm1, %v558_v27  ;;  %591 = vst.msk [vmem:[#allocation2 + $0x28] sm:$0xff] %vm585_vm1, %v574_v28 }
  0xe3   : > { %v2784_v29 = vcombine.low %v2747_v6, %v2749_v7  ;;  %v2642_v30 = vmov 0.0   ;;  %vm2643_vm2 = vmmov 0   ;;  %v2792_v31 = vcombine.low %v2743_v4, %v2745_v5  ;;  %v608_v32 = vld [vmem:[#allocation3] sm:$0xff]  ;;  %673 = vrot.lane.b32.xlu0 %v2735_v2, %s2644_s30  ;;  %v793_v28 = vld [vmem:[#allocation2 + $0x10] sm:$0xff] }
  0xe4   : > { %2350 = vmatprep.subr.bf16.mxu0 %v2642_v30  ;;  %2354 = vmatprep.mubr.msk.bf16.mxu0 %vm2643_vm2, %v2642_v30  ;;  %v610_v33 = vpack.c.bf16 %v608_v32, %v608_v32  ;;  %vm707_vm3 = vcmask 257024  }
  0xe5   : > { %2351 = vmatpush3.bf16.msra.mxu0 %v2784_v29  ;;  %2358 = vmatprep.subr.bf16.mxu1 %v2642_v30  ;;  %v609_v40 = vld [vmem:[#allocation2] sm:$0xff] }
  0xe6   : > { %2352 = vmatprep.subr.bf16.mxu0 %v2642_v30  ;;  %2359 = vmatpush3.bf16.msra.mxu1 %v2784_v29 }
  0xe7   : > { %2362 = vmatprep.mubr.msk.bf16.mxu1 %vm2643_vm2, %v2642_v30  ;;  %2360 = vmatprep.subr.bf16.mxu1 %v2642_v30 }
  0xe9   : > { %2353 = vmatpush3.bf16.msra.mxu0 %v2792_v31  ;;  %v710_v0 = vld [vmem:[#allocation2 + $0x8] sm:$0xff] }
  0xea   : > { %2366 = vmatprep.subr.bf16.mxu0 %v2642_v30  ;;  %2361 = vmatpush3.bf16.msra.mxu1 %v2792_v31 }
  0xeb   : > { %2374 = vmatprep.subr.bf16.mxu1 %v2642_v30 }
  0xec   : > { %2355 = vmatmul.mubr.msk.bf16.vlgmr.msra.gmra.mxu0 %vm454_vm0, %v610_v33 }
  0xed   : > { %2367 = vmatpush3.bf16.msra.mxu0 %v2784_v29  ;;  %2370 = vmatprep.mubr.msk.bf16.mxu0 %vm2643_vm2, %v2642_v30 }
  0xee   : > { %2368 = vmatprep.subr.bf16.mxu0 %v2642_v30 }
  0xf1   : > { %2369 = vmatpush3.bf16.msra.mxu0 %v2792_v31 }
  0xf2   : > { %2382 = vmatprep.subr.bf16.mxu0 %v2642_v30 }
 0x155   : > { %v2813_v34 = vpop.permute.xlu0 %673 }
 0x1ac   : > { %v660_v35 = vpop.f32.mrf.mxu0 }
 0x1ad   : > { %v676_v36 = vadd.f32 %v2813_v34, %v660_v35  ;;  %v666_v41 = vadd.f32 %v660_v35, %v609_v40 }
 0x1ae   : > { %v2356_v37 = vpop.f32.mrf.mxu0 }
 0x1af   : > { %678 = vrot.lane.b32.xlu0 %v676_v36, %s2644_s30  ;;  %v2199_v42 = vmul.f32 -1.442695, %v666_v41 }
 0x1b0   : > { %v663_v38 = vpop.f32.mrf.mxu0 }
 0x1b1   : > { %2522 = vpow2.f32 %v2199_v42 }
 0x1b2   : > { %v2357_v39 = vpop.f32.mrf.mxu0 }
 0x1b3   : > { %695 = vrot.lane.b32.xlu0 %v608_v32, %s2645_s20 }
 0x1be   : > { %v2523_v43 = vpop.eup %2522 }
 0x1bf   : > { %v670_v44 = vadd.f32 1.0, %v2523_v43 }
 0x1c1   : > { %2524 = vrcp.f32 %v670_v44 }
 0x1ce   : > { %v2525_v45 = vpop.eup %2524 }
 0x1cf   : > { %v688_v52 = vsub.f32 1.0, %v2525_v45 }
 0x221   : > { %v679_v46 = vpop.permute.xlu0 %678 }
 0x222   : > { %v681_v47 = vmul.f32 %v2525_v45, %v679_v46 }
 0x224   : > { %683 = vrot.lane.b32.xlu1 %v681_v47, %s2644_s30 }
 0x225   : > { %v696_v51 = vpop.permute.xlu0 %695 }
 0x226   : > { %v698_v54 = vmul.f32 %v2525_v45, %v696_v51 }
 0x296   : > { %v684_v48 = vpop.permute.xlu1 %683 }
 0x297   : > { %v686_v49 = vadd.f32 %v684_v48, %v609_v40 }
 0x299   : > { %2526 = vtanh.f32 %v686_v49 }
 0x2a6   : > { %v2527_v50 = vpop.eup %2526 }
 0x2a7   : > { %690 = vrot.lane.b32.xlu1 %v2527_v50, %s2646_s21 }
 0x319   : > { %v691_v53 = vpop.permute.xlu1 %690 }
 0x31a   : > { %v693_v55 = vmul.f32 %v691_v53, %v688_v52 }
 0x31c   : > { %v699_v56 = vadd.f32 %v698_v54, %v693_v55  ;;  %v876_v55 = vld [vmem:[#allocation2 + $0x18] sm:$0xff] }
 0x31e   : > { %v2819_v57 = vpack.c.bf16 %v699_v56, %v699_v56 }
 0x320   : > { %711 = vrot.lane.b32.xlu1 %v2819_v57, %s2646_s21 }
 0x392   : > { %v712_v58 = vpop.permute.xlu1 %711 }
 0x393   : > { %2363 = vmatmul.mubr.msk.bf16.vlgmr.msra.gmra.mxu1 %vm454_vm0, %v712_v58 }
 0x394   : > { %2375 = vmatpush3.bf16.msra.mxu1 %v2784_v29  ;;  %2378 = vmatprep.mubr.msk.bf16.mxu1 %vm2643_vm2, %v2642_v30 }
 0x395   : > { %2376 = vmatprep.subr.bf16.mxu1 %v2642_v30 }
 0x398   : > { %2377 = vmatpush3.bf16.msra.mxu1 %v2792_v31 }
 0x399   : > { %2390 = vmatprep.subr.bf16.mxu1 %v2642_v30 }
 0x453   : > { %v750_v59 = vpop.f32.mrf.mxu1 }
 0x454   : > { %v763_v60 = vadd.f32 %v750_v59, %v2813_v34  ;;  %v756_v1 = vadd.f32 %v750_v59, %v710_v0 }
 0x455   : > { %v2364_v61 = vpop.f32.mrf.mxu1 }
 0x456   : > { %765 = vrot.lane.b32.xlu0 %v763_v60, %s2644_s30  ;;  %v2202_v3 = vmul.f32 -1.442695, %v756_v1 }
 0x457   : > { %v753_v62 = vpop.f32.mrf.mxu1 }
 0x458   : > { %2528 = vpow2.f32 %v2202_v3 }
 0x459   : > { %v2365_v63 = vpop.f32.mrf.mxu1 }
 0x465   : > { %v2529_v8 = vpop.eup %2528 }
 0x466   : > { %v760_v9 = vadd.f32 1.0, %v2529_v8 }
 0x468   : > { %2530 = vrcp.f32 %v760_v9 }
 0x475   : > { %v2531_v10 = vpop.eup %2530 }
 0x476   : > { %v775_v16 = vsub.f32 1.0, %v2531_v10  ;;  %v781_v18 = vmul.f32 %v2531_v10, %v699_v56 }
 0x4c8   : > { %v766_v11 = vpop.permute.xlu0 %765 }
 0x4c9   : > { %v768_v12 = vmul.f32 %v2531_v10, %v766_v11 }
 0x4cb   : > { %770 = vrot.lane.b32.xlu1 %v768_v12, %s2644_s30 }
 0x53d   : > { %v771_v13 = vpop.permute.xlu1 %770 }
 0x53e   : > { %v773_v14 = vadd.f32 %v771_v13, %v710_v0 }
 0x540   : > { %2532 = vtanh.f32 %v773_v14 }
 0x54d   : > { %v2533_v15 = vpop.eup %2532 }
 0x54e   : > { %777 = vrot.lane.b32.xlu0 %v2533_v15, %s2646_s21 }
 0x5c0   : > { %v778_v17 = vpop.permute.xlu0 %777 }
 0x5c1   : > { %v780_v19 = vmul.f32 %v778_v17, %v775_v16 }
 0x5c3   : > { %v782_v20 = vadd.f32 %v781_v18, %v780_v19 }
 0x5c5   : > { %v2834_v21 = vpack.c.bf16 %v782_v20, %v782_v20 }
 0x5c7   : > { %794 = vrot.lane.b32.xlu1 %v2834_v21, %s2646_s21 }
 0x639   : > { %v795_v22 = vpop.permute.xlu1 %794 }
 0x63a   : > { %2371 = vmatmul.mubr.msk.bf16.vlgmr.msra.gmra.mxu0 %vm454_vm0, %v795_v22 }
 0x63b   : > { %2383 = vmatpush3.bf16.msra.mxu0 %v2784_v29  ;;  %2386 = vmatprep.mubr.msk.bf16.mxu0 %vm2643_vm2, %v2642_v30 }
 0x63c   : > { %2384 = vmatprep.subr.bf16.mxu0 %v2642_v30 }
 0x63f   : > { %2385 = vmatpush3.bf16.msra.mxu0 %v2792_v31 }
 0x640   : > { %2398 = vmatprep.subr.bf16.mxu0 %v2642_v30 }
 0x6fa   : > { %v833_v23 = vpop.f32.mrf.mxu0 }
 0x6fb   : > { %v846_v24 = vadd.f32 %v833_v23, %v2813_v34  ;;  %v839_v32 = vadd.f32 %v833_v23, %v793_v28 }
 0x6fc   : > { %v2372_v25 = vpop.f32.mrf.mxu0 }
 0x6fd   : > { %848 = vrot.lane.b32.xlu0 %v846_v24, %s2644_s30  ;;  %v2206_v33 = vmul.f32 -1.442695, %v839_v32 }
 0x6fe   : > { %v836_v26 = vpop.f32.mrf.mxu0 }
 0x6ff   : > { %2534 = vpow2.f32 %v2206_v33 }
 0x700   : > { %v2373_v27 = vpop.f32.mrf.mxu0 }
 0x70c   : > { %v2535_v35 = vpop.eup %2534 }
 0x70d   : > { %v843_v36 = vadd.f32 1.0, %v2535_v35 }
 0x70f   : > { %2536 = vrcp.f32 %v843_v36 }
 0x71c   : > { %v2537_v37 = vpop.eup %2536 }
 0x71d   : > { %v858_v43 = vsub.f32 1.0, %v2537_v37  ;;  %v864_v45 = vmul.f32 %v2537_v37, %v782_v20  ;;  %v959_v20 = vld [vmem:[#allocation2 + $0x20] sm:$0xff] }
 0x76f   : > { %v849_v38 = vpop.permute.xlu0 %848 }
 0x770   : > { %v851_v39 = vmul.f32 %v2537_v37, %v849_v38 }
 0x772   : > { %853 = vrot.lane.b32.xlu1 %v851_v39, %s2644_s30 }
 0x7e4   : > { %v854_v40 = vpop.permute.xlu1 %853 }
 0x7e5   : > { %v856_v41 = vadd.f32 %v854_v40, %v793_v28 }
 0x7e7   : > { %2538 = vtanh.f32 %v856_v41 }
 0x7f4   : > { %v2539_v42 = vpop.eup %2538 }
 0x7f5   : > { %860 = vrot.lane.b32.xlu0 %v2539_v42, %s2646_s21 }
 0x867   : > { %v861_v44 = vpop.permute.xlu0 %860 }
 0x868   : > { %v863_v46 = vmul.f32 %v861_v44, %v858_v43 }
 0x86a   : > { %v865_v47 = vadd.f32 %v864_v45, %v863_v46 }
 0x86c   : > { %v2849_v48 = vpack.c.bf16 %v865_v47, %v865_v47 }
 0x86e   : > { %877 = vrot.lane.b32.xlu1 %v2849_v48, %s2646_s21 }
 0x8e0   : > { %v878_v49 = vpop.permute.xlu1 %877 }
 0x8e1   : > { %2379 = vmatmul.mubr.msk.bf16.vlgmr.msra.gmra.mxu1 %vm454_vm0, %v878_v49  ;;  %v1042_v49 = vld [vmem:[#allocation2 + $0x28] sm:$0xff] }
 0x8e2   : > { %2391 = vmatpush3.bf16.msra.mxu1 %v2784_v29  ;;  %2394 = vmatprep.mubr.msk.bf16.mxu1 %vm2643_vm2, %v2642_v30 }
 0x8e3   : > { %2392 = vmatprep.subr.bf16.mxu1 %v2642_v30 }
 0x8e6   : > { %2393 = vmatpush3.bf16.msra.mxu1 %v2792_v31 }
 0x8e7   : > { %2406 = vmatprep.subr.bf16.mxu1 %v2642_v30 }
 0x9a1   : > { %v916_v50 = vpop.f32.mrf.mxu1 }
 0x9a2   : > { %v929_v51 = vadd.f32 %v916_v50, %v2813_v34  ;;  %v922_v56 = vadd.f32 %v916_v50, %v876_v55 }
 0x9a3   : > { %v2380_v52 = vpop.f32.mrf.mxu1 }
 0x9a4   : > { %931 = vrot.lane.b32.xlu0 %v929_v51, %s2644_s30  ;;  %v2210_v58 = vmul.f32 -1.442695, %v922_v56 }
 0x9a5   : > { %v919_v53 = vpop.f32.mrf.mxu1 }
 0x9a6   : > { %2540 = vpow2.f32 %v2210_v58 }
 0x9a7   : > { %v2381_v54 = vpop.f32.mrf.mxu1 }
 0x9b3   : > { %v2541_v59 = vpop.eup %2540 }
 0x9b4   : > { %v926_v60 = vadd.f32 1.0, %v2541_v59 }
 0x9b6   : > { %2542 = vrcp.f32 %v926_v60 }
 0x9c3   : > { %v2543_v61 = vpop.eup %2542 }
 0x9c4   : > { %v941_v8 = vsub.f32 1.0, %v2543_v61  ;;  %v947_v10 = vmul.f32 %v2543_v61, %v865_v47 }
 0xa16   : > { %v932_v62 = vpop.permute.xlu0 %931 }
 0xa17   : > { %v934_v63 = vmul.f32 %v2543_v61, %v932_v62 }
 0xa19   : > { %936 = vrot.lane.b32.xlu1 %v934_v63, %s2644_s30 }
 0xa8b   : > { %v937_v0 = vpop.permute.xlu1 %936 }
 0xa8c   : > { %v939_v1 = vadd.f32 %v937_v0, %v876_v55 }
 0xa8e   : > { %2544 = vtanh.f32 %v939_v1 }
 0xa9b   : > { %v2545_v3 = vpop.eup %2544 }
 0xa9c   : > { %943 = vrot.lane.b32.xlu0 %v2545_v3, %s2646_s21 }
 0xb0e   : > { %v944_v9 = vpop.permute.xlu0 %943 }
 0xb0f   : > { %v946_v11 = vmul.f32 %v944_v9, %v941_v8 }
 0xb11   : > { %v948_v12 = vadd.f32 %v947_v10, %v946_v11  ;;  %v1125_v11 = vld [vmem:[#allocation2 + $0x30] sm:$0xff] }
 0xb13   : > { %v2864_v13 = vpack.c.bf16 %v948_v12, %v948_v12 }
 0xb15   : > { %960 = vrot.lane.b32.xlu1 %v2864_v13, %s2646_s21 }
 0xb87   : > { %v961_v14 = vpop.permute.xlu1 %960 }
 0xb88   : > { %2387 = vmatmul.mubr.msk.bf16.vlgmr.msra.gmra.mxu0 %vm454_vm0, %v961_v14 }
 0xb89   : > { %2399 = vmatpush3.bf16.msra.mxu0 %v2784_v29  ;;  %2402 = vmatprep.mubr.msk.bf16.mxu0 %vm2643_vm2, %v2642_v30 }
 0xb8a   : > { %2400 = vmatprep.subr.bf16.mxu0 %v2642_v30 }
 0xb8d   : > { %2401 = vmatpush3.bf16.msra.mxu0 %v2792_v31 }
 0xc48   : > { %v999_v15 = vpop.f32.mrf.mxu0 }
 0xc49   : > { %v1012_v16 = vadd.f32 %v999_v15, %v2813_v34  ;;  %v1005_v22 = vadd.f32 %v999_v15, %v959_v20 }
 0xc4a   : > { %v2388_v17 = vpop.f32.mrf.mxu0 }
 0xc4b   : > { %1014 = vrot.lane.b32.xlu0 %v1012_v16, %s2644_s30  ;;  %v2214_v23 = vmul.f32 -1.442695, %v1005_v22 }
 0xc4c   : > { %v1002_v18 = vpop.f32.mrf.mxu0 }
 0xc4d   : > { %2546 = vpow2.f32 %v2214_v23 }
 0xc4e   : > { %v2389_v19 = vpop.f32.mrf.mxu0 }
 0xc5a   : > { %v2547_v24 = vpop.eup %2546 }
 0xc5b   : > { %v1009_v25 = vadd.f32 1.0, %v2547_v24 }
 0xc5d   : > { %2548 = vrcp.f32 %v1009_v25 }
 0xc6a   : > { %v2549_v26 = vpop.eup %2548 }
 0xc6b   : > { %v1024_v36 = vsub.f32 1.0, %v2549_v26  ;;  %v1030_v38 = vmul.f32 %v2549_v26, %v948_v12 }
 0xcbd   : > { %v1015_v27 = vpop.permute.xlu0 %1014 }
 0xcbe   : > { %v1017_v28 = vmul.f32 %v2549_v26, %v1015_v27 }
 0xcc0   : > { %1019 = vrot.lane.b32.xlu1 %v1017_v28, %s2644_s30 }
 0xd32   : > { %v1020_v32 = vpop.permute.xlu1 %1019 }
 0xd33   : > { %v1022_v33 = vadd.f32 %v1020_v32, %v959_v20 }
 0xd35   : > { %2550 = vtanh.f32 %v1022_v33 }
 0xd42   : > { %v2551_v35 = vpop.eup %2550 }
 0xd43   : > { %1026 = vrot.lane.b32.xlu0 %v2551_v35, %s2646_s21 }
 0xdb5   : > { %v1027_v37 = vpop.permute.xlu0 %1026 }
 0xdb6   : > { %v1029_v39 = vmul.f32 %v1027_v37, %v1024_v36 }
 0xdb8   : > { %v1031_v40 = vadd.f32 %v1030_v38, %v1029_v39 }
 0xdba   : > { %v2878_v41 = vpack.c.bf16 %v1031_v40, %v1031_v40 }
 0xdbc   : > { %1043 = vrot.lane.b32.xlu1 %v2878_v41, %s2646_s21 }
 0xe2e   : > { %v1044_v42 = vpop.permute.xlu1 %1043 }
 0xe2f   : > { %2395 = vmatmul.mubr.msk.bf16.vlgmr.msra.gmra.mxu1 %vm454_vm0, %v1044_v42 }
 0xe30   : > { %2407 = vmatpush3.bf16.msra.mxu1 %v2784_v29  ;;  %2410 = vmatprep.mubr.msk.bf16.mxu1 %vm2643_vm2, %v2642_v30 }
 0xe31   : > { %2408 = vmatprep.subr.bf16.mxu1 %v2642_v30 }
 0xe34   : > { %2409 = vmatpush3.bf16.msra.mxu1 %v2792_v31 }
 0xeef   : > { %v1082_v43 = vpop.f32.mrf.mxu1 }
 0xef0   : > { %v1095_v44 = vadd.f32 %v1082_v43, %v2813_v34  ;;  %v1088_v50 = vadd.f32 %v1082_v43, %v1042_v49 }
 0xef1   : > { %v2396_v45 = vpop.f32.mrf.mxu1 }
 0xef2   : > { %1097 = vrot.lane.b32.xlu0 %v1095_v44, %s2644_s30  ;;  %v2218_v51 = vmul.f32 -1.442695, %v1088_v50 }
 0xef3   : > { %v1085_v46 = vpop.f32.mrf.mxu1 }
 0xef4   : > { %2552 = vpow2.f32 %v2218_v51 }
 0xef5   : > { %v2397_v47 = vpop.f32.mrf.mxu1 }
 0xf01   : > { %v2553_v29 = vpop.eup %2552 }
 0xf02   : > { %v1092_v52 = vadd.f32 1.0, %v2553_v29 }
 0xf04   : > { %2554 = vrcp.f32 %v1092_v52 }
 0xf11   : > { %v2555_v53 = vpop.eup %2554 }
 0xf12   : > { %v1107_v58 = vsub.f32 1.0, %v2555_v53  ;;  %v1113_v60 = vmul.f32 %v2555_v53, %v1031_v40  ;;  %v1208_v40 = vld [vmem:[#allocation2 + $0x38] sm:$0xff] }
 0xf64   : > { %v1098_v54 = vpop.permute.xlu0 %1097 }
 0xf65   : > { %v1100_v30 = vmul.f32 %v2555_v53, %v1098_v54 }
 0xf67   : > { %1102 = vrot.lane.b32.xlu1 %v1100_v30, %s2644_s30 }
 0xfd9   : > { %v1103_v31 = vpop.permute.xlu1 %1102 }
 0xfda   : > { %v1105_v55 = vadd.f32 %v1103_v31, %v1042_v49 }
 0xfdc   : > { %2556 = vtanh.f32 %v1105_v55 }
 0xfe9   : > { %v2557_v56 = vpop.eup %2556 }
 0xfea   : > { %1109 = vrot.lane.b32.xlu0 %v2557_v56, %s2646_s21 }
0x105c   : > { %v1110_v59 = vpop.permute.xlu0 %1109 }
0x105d   : > { %v1112_v61 = vmul.f32 %v1110_v59, %v1107_v58 }
0x105f   : > { %v1114_v62 = vadd.f32 %v1113_v60, %v1112_v61 }
0x1061   : > { %v2892_v63 = vpack.c.bf16 %v1114_v62, %v1114_v62 }
0x1063   : > { %1126 = vrot.lane.b32.xlu1 %v2892_v63, %s2646_s21 }
0x10d5   : > { %v1127_v0 = vpop.permute.xlu1 %1126 }
0x10d6   : > { %2403 = vmatmul.mubr.msk.bf16.vlgmr.msra.gmra.mxu0 %vm454_vm0, %v1127_v0 }
0x1196   : > { %v1165_v1 = vpop.f32.mrf.mxu0 }
0x1197   : > { %v1178_v3 = vadd.f32 %v1165_v1, %v2813_v34  ;;  %v1171_v12 = vadd.f32 %v1165_v1, %v1125_v11 }
0x1198   : > { %v2404_v8 = vpop.f32.mrf.mxu0 }
0x1199   : > { %1180 = vrot.lane.b32.xlu0 %v1178_v3, %s2644_s30  ;;  %v2222_v14 = vmul.f32 -1.442695, %v1171_v12 }
0x119a   : > { %v1168_v9 = vpop.f32.mrf.mxu0 }
0x119b   : > { %2558 = vpow2.f32 %v2222_v14 }
0x119c   : > { %v2405_v10 = vpop.f32.mrf.mxu0 }
0x11a8   : > { %v2559_v15 = vpop.eup %2558 }
0x11a9   : > { %v1175_v16 = vadd.f32 1.0, %v2559_v15 }
0x11ab   : > { %2560 = vrcp.f32 %v1175_v16 }
0x11b8   : > { %v2561_v17 = vpop.eup %2560 }
0x11b9   : > { %v1190_v24 = vsub.f32 1.0, %v2561_v17  ;;  %v1196_v26 = vmul.f32 %v2561_v17, %v1114_v62 }
0x120b   : > { %v1181_v18 = vpop.permute.xlu0 %1180 }
0x120c   : > { %v1183_v19 = vmul.f32 %v2561_v17, %v1181_v18 }
0x120e   : > { %1185 = vrot.lane.b32.xlu1 %v1183_v19, %s2644_s30 }
0x1280   : > { %v1186_v20 = vpop.permute.xlu1 %1185 }
0x1281   : > { %v1188_v22 = vadd.f32 %v1186_v20, %v1125_v11 }
0x1283   : > { %2562 = vtanh.f32 %v1188_v22 }
0x1290   : > { %v2563_v23 = vpop.eup %2562 }
0x1291   : > { %1192 = vrot.lane.b32.xlu0 %v2563_v23, %s2646_s21 }
0x1303   : > { %v1193_v25 = vpop.permute.xlu0 %1192 }
0x1304   : > { %v1195_v27 = vmul.f32 %v1193_v25, %v1190_v24 }
0x1306   : > { %v1197_v28 = vadd.f32 %v1196_v26, %v1195_v27 }
0x1308   : > { %v1198_v32 = vpack.c.bf16 %v1197_v28, %v1197_v28 }
0x130a   : > { %1209 = vrot.lane.b32.xlu1 %v1198_v32, %s2646_s21 }
0x137c   : > { %v1210_v33 = vpop.permute.xlu1 %1209 }
0x137d   : > { %2411 = vmatmul.mubr.msk.bf16.vlgmr.msra.gmra.mxu1 %vm454_vm0, %v1210_v33 }
0x143d   : > { %v1248_v35 = vpop.f32.mrf.mxu1 }
0x143e   : > { %v1261_v36 = vadd.f32 %v1248_v35, %v2813_v34  ;;  %v1254_v42 = vadd.f32 %v1248_v35, %v1208_v40 }
0x143f   : > { %v2412_v37 = vpop.f32.mrf.mxu1 }
0x1440   : > { %1263 = vrot.lane.b32.xlu0 %v1261_v36, %s2644_s30  ;;  %v2226_v43 = vmul.f32 -1.442695, %v1254_v42 }
0x1441   : > { %v1251_v38 = vpop.f32.mrf.mxu1 }
0x1442   : > { %2564 = vpow2.f32 %v2226_v43 }
0x1443   : > { %v2413_v39 = vpop.f32.mrf.mxu1 }
0x144f   : > { %v2565_v44 = vpop.eup %2564 }
0x1450   : > { %v1258_v45 = vadd.f32 1.0, %v2565_v44 }
0x1452   : > { %2566 = vrcp.f32 %v1258_v45 }
0x145f   : > { %v2567_v46 = vpop.eup %2566 }
0x1460   : > { %v1279_v54 = vmul.f32 %v2567_v46, %v1197_v28 }
0x14b2   : > { %v1264_v47 = vpop.permute.xlu0 %1263 }
0x14b3   : > { %v1266_v49 = vmul.f32 %v2567_v46, %v1264_v47 }
0x14b5   : > { %1268 = vrot.lane.b32.xlu1 %v1266_v49, %s2644_s30 }
0x14b9   : > { %704 = vrot.lane.b32.xlu1 %v2819_v57, %s2646_s21 }
0x14bd   : > { %870 = vrot.lane.b32.xlu1 %v2849_v48, %s2646_s21 }
0x14c1   : > { %1036 = vrot.lane.b32.xlu1 %v2878_v41, %s2646_s21  ;;  %v1273_v41 = vsub.f32 1.0, %v2567_v46 }
0x14c5   : > { %1202 = vrot.lane.b32.xlu1 %v1198_v32, %s2646_s21 }
0x1527   : > { %v1269_v34 = vpop.permute.xlu1 %1268 }
0x1528   : > { %v1271_v50 = vadd.f32 %v1269_v34, %v1208_v40 }
0x152a   : > { %2568 = vtanh.f32 %v1271_v50 }
0x152b   : > { %v705_v51 = vpop.permute.xlu1 %704 }
0x152c   : > { %708 = vst.msk [vmem:[%s2741_s23] sm:$0xf] %vm707_vm3, %v705_v51 }
0x152f   : > { %v871_v29 = vpop.permute.xlu1 %870 }
0x1530   : > { %2208 = vst.msk [vmem:[%s2741_s23 + $0x8] sm:$0xf] %vm707_vm3, %v871_v29 }
0x1533   : > { %v1037_v57 = vpop.permute.xlu1 %1036 }
0x1534   : > { %2216 = vst.msk [vmem:[%s2741_s23 + $0x10] sm:$0xf] %vm707_vm3, %v1037_v57 }
0x1537   : > { %v2569_v48 = vpop.eup %2568  ;;  %v1203_v52 = vpop.permute.xlu1 %1202 }
0x1538   : > { %2224 = vst.msk [vmem:[%s2741_s23 + $0x18] sm:$0xf] %vm707_vm3, %v1203_v52  ;;  %1275 = vrot.lane.b32.xlu0 %v2569_v48, %s2646_s21 }
0x153c   : > { %787 = vrot.lane.b32.xlu0 %v2834_v21, %s2646_s21 }
0x1540   : > { %953 = vrot.lane.b32.xlu0 %v2864_v13, %s2646_s21 }
0x1544   : > { %1119 = vrot.lane.b32.xlu0 %v2892_v63, %s2646_s21 }
0x15aa   : > { %v1276_v53 = vpop.permute.xlu0 %1275 }
0x15ab   : > { %v1278_v30 = vmul.f32 %v1276_v53, %v1273_v41 }
0x15ad   : > { %v1280_v31 = vadd.f32 %v1279_v54, %v1278_v30 }
0x15ae   : > { %v788_v55 = vpop.permute.xlu0 %787 }
0x15af   : > { %2204 = vst.msk [vmem:[%s2741_s23 + $0x4] sm:$0xf] %vm707_vm3, %v788_v55  ;;  %1291 = vrot.lane.b32.xlu1 %v1280_v31, %s2646_s21  ;;  %v2275_v56 = vpack.c.bf16 %v1280_v31, %v1280_v31 }
0x15b1   : > { %1285 = vrot.lane.b32.xlu0 %v2275_v56, %s2646_s21 }
0x15b2   : > { %v954_v21 = vpop.permute.xlu0 %953 }
0x15b3   : > { %2212 = vst.msk [vmem:[%s2741_s23 + $0xc] sm:$0xf] %vm707_vm3, %v954_v21 }
0x15b6   : > { %v1120_v13 = vpop.permute.xlu0 %1119 }
0x15b7   : > { %2220 = vst.msk [vmem:[%s2741_s23 + $0x14] sm:$0xf] %vm707_vm3, %v1120_v13 }
0x1621   : > { %v1292_v58 = vpop.permute.xlu1 %1291 }
0x1622   : > { %1294 = vst.msk [vmem:[#allocation3] sm:$0xff] %vm454_vm0, %v1292_v58 }
0x1623   : > { %v1286_v59 = vpop.permute.xlu0 %1285 }
0x1624   : > { %2228 = vst.msk [vmem:[%s2741_s23 + $0x1c] sm:$0xf] %vm707_vm3, %v1286_v59 }
0x1625 PF: > { %p2229_p6 = scmp.ne.s32.totalorder %s2632_s24, 1 }
0x1626   : > { %s2649_s24 = smov (!%p2229_p6), 64   ;;  %s2650_s22 = smov (!%p2229_p6), 32  }
0x1627   : > { %1298 = sbr.rel (%p2229_p6) target bundleno = 11118 (0x2b6e), region = 56  ;;  %s2651_s28 = smov (!%p2229_p6), 96  }
0x162c   : > { %v2942_v60 = vcombine.low %v2747_v6, %v2749_v7  ;;  %v2647_v61 = vmov 0.0   ;;  %vm2648_vm4 = vmmov 0   ;;  %v2950_v62 = vcombine.low %v2743_v4, %v2745_v5  ;;  %v1299_v63 = vld [vmem:[#allocation3] sm:$0xff]  ;;  %1365 = vrot.lane.b32.xlu0 %v2735_v2, %s2649_s24  ;;  %v1301_v3 = vld [vmem:[#allocation2 + $0x38] sm:$0xff]  ;;  %v1403_v37 = vld [vmem:[#allocation2 + $0x30] sm:$0xff] }
0x162d   : > { %2414 = vmatprep.subr.bf16.mxu0 %v2647_v61  ;;  %2418 = vmatprep.mubr.msk.bf16.mxu0 %vm2648_vm4, %v2647_v61  ;;  %v1302_v6 = vpack.c.bf16 %v1299_v63, %v1299_v63  ;;  %v1486_v55 = vld [vmem:[#allocation2 + $0x28] sm:$0xff]  ;;  %vm1400_vm5 = vcmask 257024  }
0x162e   : > { %2415 = vmatpush3.bf16.msra.mxu0 %v2942_v60  ;;  %2422 = vmatprep.subr.bf16.mxu1 %v2647_v61 }
0x162f   : > { %2416 = vmatprep.subr.bf16.mxu0 %v2647_v61  ;;  %2423 = vmatpush3.bf16.msra.mxu1 %v2942_v60 }
0x1630   : > { %2426 = vmatprep.mubr.msk.bf16.mxu1 %vm2648_vm4, %v2647_v61  ;;  %2424 = vmatprep.subr.bf16.mxu1 %v2647_v61 }
0x1632   : > { %2417 = vmatpush3.bf16.msra.mxu0 %v2950_v62 }
0x1633   : > { %2430 = vmatprep.subr.bf16.mxu0 %v2647_v61  ;;  %2425 = vmatpush3.bf16.msra.mxu1 %v2950_v62 }
0x1634   : > { %2438 = vmatprep.subr.bf16.mxu1 %v2647_v61 }
0x1635   : > { %2419 = vmatmul.mubr.msk.bf16.vlgmr.msra.gmra.mxu0 %vm454_vm0, %v1302_v6 }
0x1636   : > { %2431 = vmatpush3.bf16.msra.mxu0 %v2942_v60  ;;  %2434 = vmatprep.mubr.msk.bf16.mxu0 %vm2648_vm4, %v2647_v61 }
0x1637   : > { %2432 = vmatprep.subr.bf16.mxu0 %v2647_v61 }
0x163a   : > { %2433 = vmatpush3.bf16.msra.mxu0 %v2950_v62 }
0x163b   : > { %2446 = vmatprep.subr.bf16.mxu0 %v2647_v61 }
0x169e   : > { %v2971_v2 = vpop.permute.xlu0 %1365 }
0x16f5   : > { %v1352_v4 = vpop.f32.mrf.mxu0 }
0x16f6   : > { %v1368_v5 = vadd.f32 %v2971_v2, %v1352_v4  ;;  %v1358_v8 = vadd.f32 %v1352_v4, %v1301_v3 }
0x16f7   : > { %v2420_v7 = vpop.f32.mrf.mxu0 }
0x16f8   : > { %1370 = vrot.lane.b32.xlu0 %v1368_v5, %s2649_s24  ;;  %v2233_v9 = vmul.f32 -1.442695, %v1358_v8 }
0x16f9   : > { %v1355_v0 = vpop.f32.mrf.mxu0 }
0x16fa   : > { %2570 = vpow2.f32 %v2233_v9 }
0x16fb   : > { %v2421_v1 = vpop.f32.mrf.mxu0 }
0x16fc   : > { %1387 = vrot.lane.b32.xlu0 %v1299_v63, %s2650_s22 }
0x1707   : > { %v2571_v10 = vpop.eup %2570 }
0x1708   : > { %v1362_v11 = vadd.f32 1.0, %v2571_v10 }
0x170a   : > { %2572 = vrcp.f32 %v1362_v11 }
0x1717   : > { %v2573_v12 = vpop.eup %2572 }
0x1718   : > { %v1380_v20 = vsub.f32 1.0, %v2573_v12 }
0x176a   : > { %v1371_v14 = vpop.permute.xlu0 %1370 }
0x176b   : > { %v1373_v15 = vmul.f32 %v2573_v12, %v1371_v14 }
0x176d   : > { %1375 = vrot.lane.b32.xlu1 %v1373_v15, %s2649_s24 }
0x176e   : > { %v1388_v19 = vpop.permute.xlu0 %1387 }
0x176f   : > { %v1390_v23 = vmul.f32 %v2573_v12, %v1388_v19 }
0x17df   : > { %v1376_v16 = vpop.permute.xlu1 %1375 }
0x17e0   : > { %v1378_v17 = vadd.f32 %v1376_v16, %v1301_v3 }
0x17e2   : > { %2574 = vtanh.f32 %v1378_v17 }
0x17ef   : > { %v2575_v18 = vpop.eup %2574 }
0x17f0   : > { %1382 = vrot.lane.b32.xlu1 %v2575_v18, %s2651_s28  ;;  %v1569_v18 = vld [vmem:[#allocation2 + $0x20] sm:$0xff] }
0x1862   : > { %v1383_v22 = vpop.permute.xlu1 %1382 }
0x1863   : > { %v1385_v24 = vmul.f32 %v1383_v22, %v1380_v20 }
0x1865   : > { %v1391_v25 = vadd.f32 %v1390_v23, %v1385_v24 }
0x1867   : > { %v2977_v26 = vpack.c.bf16 %v1391_v25, %v1391_v25 }
0x1869   : > { %1404 = vrot.lane.b32.xlu1 %v2977_v26, %s2651_s28 }
0x18db   : > { %v1405_v27 = vpop.permute.xlu1 %1404 }
0x18dc   : > { %2427 = vmatmul.mubr.msk.bf16.vlgmr.msra.gmra.mxu1 %vm454_vm0, %v1405_v27 }
0x18dd   : > { %2439 = vmatpush3.bf16.msra.mxu1 %v2942_v60  ;;  %2442 = vmatprep.mubr.msk.bf16.mxu1 %vm2648_vm4, %v2647_v61 }
0x18de   : > { %2440 = vmatprep.subr.bf16.mxu1 %v2647_v61 }
0x18e1   : > { %2441 = vmatpush3.bf16.msra.mxu1 %v2950_v62 }
0x18e2   : > { %2454 = vmatprep.subr.bf16.mxu1 %v2647_v61 }
0x199c   : > { %v1443_v28 = vpop.f32.mrf.mxu1 }
0x199d   : > { %v1456_v32 = vadd.f32 %v1443_v28, %v2971_v2  ;;  %v1449_v38 = vadd.f32 %v1443_v28, %v1403_v37 }
0x199e   : > { %v2428_v33 = vpop.f32.mrf.mxu1 }
0x199f   : > { %1458 = vrot.lane.b32.xlu0 %v1456_v32, %s2649_s24  ;;  %v2237_v39 = vmul.f32 -1.442695, %v1449_v38 }
0x19a0   : > { %v1446_v35 = vpop.f32.mrf.mxu1 }
0x19a1   : > { %2576 = vpow2.f32 %v2237_v39 }
0x19a2   : > { %v2429_v36 = vpop.f32.mrf.mxu1 }
0x19ae   : > { %v2577_v40 = vpop.eup %2576 }
0x19af   : > { %v1453_v42 = vadd.f32 1.0, %v2577_v40 }
0x19b1   : > { %2578 = vrcp.f32 %v1453_v42 }
0x19be   : > { %v2579_v43 = vpop.eup %2578 }
0x19bf   : > { %v1468_v34 = vsub.f32 1.0, %v2579_v43  ;;  %v1474_v51 = vmul.f32 %v2579_v43, %v1391_v25 }
0x1a11   : > { %v1459_v44 = vpop.permute.xlu0 %1458 }
0x1a12   : > { %v1461_v45 = vmul.f32 %v2579_v43, %v1459_v44 }
0x1a14   : > { %1463 = vrot.lane.b32.xlu1 %v1461_v45, %s2649_s24 }
0x1a86   : > { %v1464_v46 = vpop.permute.xlu1 %1463 }
0x1a87   : > { %v1466_v47 = vadd.f32 %v1464_v46, %v1403_v37 }
0x1a89   : > { %2580 = vtanh.f32 %v1466_v47 }
0x1a96   : > { %v2581_v49 = vpop.eup %2580 }
0x1a97   : > { %1470 = vrot.lane.b32.xlu0 %v2581_v49, %s2651_s28  ;;  %v1652_v49 = vld [vmem:[#allocation2 + $0x18] sm:$0xff] }
0x1b09   : > { %v1471_v50 = vpop.permute.xlu0 %1470 }
0x1b0a   : > { %v1473_v29 = vmul.f32 %v1471_v50, %v1468_v34 }
0x1b0c   : > { %v1475_v57 = vadd.f32 %v1474_v51, %v1473_v29 }
0x1b0e   : > { %v2992_v48 = vpack.c.bf16 %v1475_v57, %v1475_v57 }
0x1b10   : > { %1487 = vrot.lane.b32.xlu1 %v2992_v48, %s2651_s28 }
0x1b82   : > { %v1488_v52 = vpop.permute.xlu1 %1487 }
0x1b83   : > { %2435 = vmatmul.mubr.msk.bf16.vlgmr.msra.gmra.mxu0 %vm454_vm0, %v1488_v52 }
0x1b84   : > { %2447 = vmatpush3.bf16.msra.mxu0 %v2942_v60  ;;  %2450 = vmatprep.mubr.msk.bf16.mxu0 %vm2648_vm4, %v2647_v61 }
0x1b85   : > { %2448 = vmatprep.subr.bf16.mxu0 %v2647_v61 }
0x1b88   : > { %2449 = vmatpush3.bf16.msra.mxu0 %v2950_v62 }
0x1b89   : > { %2462 = vmatprep.subr.bf16.mxu0 %v2647_v61 }
0x1c43   : > { %v1526_v41 = vpop.f32.mrf.mxu0 }
0x1c44   : > { %v1539_v53 = vadd.f32 %v1526_v41, %v2971_v2  ;;  %v1532_v56 = vadd.f32 %v1526_v41, %v1486_v55 }
0x1c45   : > { %v2436_v54 = vpop.f32.mrf.mxu0 }
0x1c46   : > { %1541 = vrot.lane.b32.xlu0 %v1539_v53, %s2649_s24  ;;  %v2241_v21 = vmul.f32 -1.442695, %v1532_v56 }
0x1c47   : > { %v1529_v30 = vpop.f32.mrf.mxu0 }
0x1c48   : > { %2582 = vpow2.f32 %v2241_v21 }
0x1c49   : > { %v2437_v31 = vpop.f32.mrf.mxu0 }
0x1c55   : > { %v2583_v13 = vpop.eup %2582 }
0x1c56   : > { %v1536_v58 = vadd.f32 1.0, %v2583_v13 }
0x1c58   : > { %2584 = vrcp.f32 %v1536_v58 }
0x1c65   : > { %v2585_v59 = vpop.eup %2584 }
0x1c66   : > { %v1551_v0 = vsub.f32 1.0, %v2585_v59  ;;  %v1557_v3 = vmul.f32 %v2585_v59, %v1475_v57 }
0x1cb8   : > { %v1542_v63 = vpop.permute.xlu0 %1541 }
0x1cb9   : > { %v1544_v6 = vmul.f32 %v2585_v59, %v1542_v63 }
0x1cbb   : > { %1546 = vrot.lane.b32.xlu1 %v1544_v6, %s2649_s24 }
0x1d2d   : > { %v1547_v4 = vpop.permute.xlu1 %1546 }
0x1d2e   : > { %v1549_v5 = vadd.f32 %v1547_v4, %v1486_v55 }
0x1d30   : > { %2586 = vtanh.f32 %v1549_v5 }
0x1d3d   : > { %v2587_v7 = vpop.eup %2586 }
0x1d3e   : > { %1553 = vrot.lane.b32.xlu0 %v2587_v7, %s2651_s28 }
0x1db0   : > { %v1554_v1 = vpop.permute.xlu0 %1553 }
0x1db1   : > { %v1556_v8 = vmul.f32 %v1554_v1, %v1551_v0  ;;  %v1735_v0 = vld [vmem:[#allocation2 + $0x10] sm:$0xff] }
0x1db3   : > { %v1558_v9 = vadd.f32 %v1557_v3, %v1556_v8 }
0x1db5   : > { %v3007_v10 = vpack.c.bf16 %v1558_v9, %v1558_v9 }
0x1db7   : > { %1570 = vrot.lane.b32.xlu1 %v3007_v10, %s2651_s28 }
0x1e29   : > { %v1571_v11 = vpop.permute.xlu1 %1570 }
0x1e2a   : > { %2443 = vmatmul.mubr.msk.bf16.vlgmr.msra.gmra.mxu1 %vm454_vm0, %v1571_v11 }
0x1e2b   : > { %2455 = vmatpush3.bf16.msra.mxu1 %v2942_v60  ;;  %2458 = vmatprep.mubr.msk.bf16.mxu1 %vm2648_vm4, %v2647_v61 }
0x1e2c   : > { %2456 = vmatprep.subr.bf16.mxu1 %v2647_v61 }
0x1e2f   : > { %2457 = vmatpush3.bf16.msra.mxu1 %v2950_v62 }
0x1e30   : > { %2470 = vmatprep.subr.bf16.mxu1 %v2647_v61 }
0x1eea   : > { %v1609_v12 = vpop.f32.mrf.mxu1 }
0x1eeb   : > { %v1622_v14 = vadd.f32 %v1609_v12, %v2971_v2  ;;  %v1615_v19 = vadd.f32 %v1609_v12, %v1569_v18 }
0x1eec   : > { %v2444_v15 = vpop.f32.mrf.mxu1 }
0x1eed   : > { %1624 = vrot.lane.b32.xlu0 %v1622_v14, %s2649_s24  ;;  %v2245_v20 = vmul.f32 -1.442695, %v1615_v19 }
0x1eee   : > { %v1612_v16 = vpop.f32.mrf.mxu1 }
0x1eef   : > { %2588 = vpow2.f32 %v2245_v20 }
0x1ef0   : > { %v2445_v17 = vpop.f32.mrf.mxu1 }
0x1efc   : > { %v2589_v22 = vpop.eup %2588 }
0x1efd   : > { %v1619_v23 = vadd.f32 1.0, %v2589_v22 }
0x1eff   : > { %2590 = vrcp.f32 %v1619_v23 }
0x1f0c   : > { %v2591_v24 = vpop.eup %2590 }
0x1f0d   : > { %v1634_v35 = vsub.f32 1.0, %v2591_v24  ;;  %v1640_v37 = vmul.f32 %v2591_v24, %v1558_v9 }
0x1f5f   : > { %v1625_v25 = vpop.permute.xlu0 %1624 }
0x1f60   : > { %v1627_v27 = vmul.f32 %v2591_v24, %v1625_v25 }
0x1f62   : > { %1629 = vrot.lane.b32.xlu1 %v1627_v27, %s2649_s24 }
0x1fd4   : > { %v1630_v28 = vpop.permute.xlu1 %1629 }
0x1fd5   : > { %v1632_v32 = vadd.f32 %v1630_v28, %v1569_v18 }
0x1fd7   : > { %2592 = vtanh.f32 %v1632_v32  ;;  %v1818_v32 = vld [vmem:[#allocation2 + $0x8] sm:$0xff] }
0x1fe4   : > { %v2593_v33 = vpop.eup %2592 }
0x1fe5   : > { %1636 = vrot.lane.b32.xlu0 %v2593_v33, %s2651_s28 }
0x2057   : > { %v1637_v36 = vpop.permute.xlu0 %1636 }
0x2058   : > { %v1639_v38 = vmul.f32 %v1637_v36, %v1634_v35 }
0x205a   : > { %v1641_v39 = vadd.f32 %v1640_v37, %v1639_v38 }
0x205c   : > { %v3022_v40 = vpack.c.bf16 %v1641_v39, %v1641_v39 }
0x205e   : > { %1653 = vrot.lane.b32.xlu1 %v3022_v40, %s2651_s28 }
0x20d0   : > { %v1654_v42 = vpop.permute.xlu1 %1653 }
0x20d1   : > { %2451 = vmatmul.mubr.msk.bf16.vlgmr.msra.gmra.mxu0 %vm454_vm0, %v1654_v42 }
0x20d2   : > { %2463 = vmatpush3.bf16.msra.mxu0 %v2942_v60  ;;  %2466 = vmatprep.mubr.msk.bf16.mxu0 %vm2648_vm4, %v2647_v61 }
0x20d3   : > { %2464 = vmatprep.subr.bf16.mxu0 %v2647_v61 }
0x20d6   : > { %2465 = vmatpush3.bf16.msra.mxu0 %v2950_v62 }
0x2191   : > { %v1692_v43 = vpop.f32.mrf.mxu0 }
0x2192   : > { %v1705_v44 = vadd.f32 %v1692_v43, %v2971_v2  ;;  %v1698_v34 = vadd.f32 %v1692_v43, %v1652_v49 }
0x2193   : > { %v2452_v45 = vpop.f32.mrf.mxu0 }
0x2194   : > { %1707 = vrot.lane.b32.xlu0 %v1705_v44, %s2649_s24  ;;  %v2249_v50 = vmul.f32 -1.442695, %v1698_v34 }
0x2195   : > { %v1695_v46 = vpop.f32.mrf.mxu0 }
0x2196   : > { %2594 = vpow2.f32 %v2249_v50 }
0x2197   : > { %v2453_v47 = vpop.f32.mrf.mxu0 }
0x21a3   : > { %v2595_v51 = vpop.eup %2594 }
0x21a4   : > { %v1702_v29 = vadd.f32 1.0, %v2595_v51 }
0x21a6   : > { %2596 = vrcp.f32 %v1702_v29 }
0x21b3   : > { %v2597_v57 = vpop.eup %2596 }
0x21b4   : > { %v1717_v31 = vsub.f32 1.0, %v2597_v57  ;;  %v1723_v56 = vmul.f32 %v2597_v57, %v1641_v39 }
0x2206   : > { %v1708_v52 = vpop.permute.xlu0 %1707 }
0x2207   : > { %v1710_v41 = vmul.f32 %v2597_v57, %v1708_v52 }
0x2209   : > { %1712 = vrot.lane.b32.xlu1 %v1710_v41, %s2649_s24 }
0x227b   : > { %v1713_v53 = vpop.permute.xlu1 %1712 }
0x227c   : > { %v1715_v54 = vadd.f32 %v1713_v53, %v1652_v49 }
0x227e   : > { %2598 = vtanh.f32 %v1715_v54 }
0x228b   : > { %v2599_v30 = vpop.eup %2598 }
0x228c   : > { %1719 = vrot.lane.b32.xlu0 %v2599_v30, %s2651_s28  ;;  %v1900_v30 = vld [vmem:[#allocation2] sm:$0xff] }
0x22fe   : > { %v1720_v55 = vpop.permute.xlu0 %1719 }
0x22ff   : > { %v1722_v21 = vmul.f32 %v1720_v55, %v1717_v31 }
0x2301   : > { %v1724_v13 = vadd.f32 %v1723_v56, %v1722_v21 }
0x2303   : > { %v3036_v58 = vpack.c.bf16 %v1724_v13, %v1724_v13 }
0x2305   : > { %1736 = vrot.lane.b32.xlu1 %v3036_v58, %s2651_s28 }
0x2377   : > { %v1737_v59 = vpop.permute.xlu1 %1736 }
0x2378   : > { %2459 = vmatmul.mubr.msk.bf16.vlgmr.msra.gmra.mxu1 %vm454_vm0, %v1737_v59 }
0x2379   : > { %2471 = vmatpush3.bf16.msra.mxu1 %v2942_v60  ;;  %2474 = vmatprep.mubr.msk.bf16.mxu1 %vm2648_vm4, %v2647_v61 }
0x237a   : > { %2472 = vmatprep.subr.bf16.mxu1 %v2647_v61 }
0x237d   : > { %2473 = vmatpush3.bf16.msra.mxu1 %v2950_v62 }
0x2438   : > { %v1775_v63 = vpop.f32.mrf.mxu1 }
0x2439   : > { %v1788_v6 = vadd.f32 %v1775_v63, %v2971_v2  ;;  %v1781_v1 = vadd.f32 %v1775_v63, %v1735_v0 }
0x243a   : > { %v2460_v4 = vpop.f32.mrf.mxu1 }
0x243b   : > { %1790 = vrot.lane.b32.xlu0 %v1788_v6, %s2649_s24  ;;  %v2253_v3 = vmul.f32 -1.442695, %v1781_v1 }
0x243c   : > { %v1778_v5 = vpop.f32.mrf.mxu1 }
0x243d   : > { %2600 = vpow2.f32 %v2253_v3 }
0x243e   : > { %v2461_v7 = vpop.f32.mrf.mxu1 }
0x244a   : > { %v2601_v60 = vpop.eup %2600 }
0x244b   : > { %v1785_v8 = vadd.f32 1.0, %v2601_v60 }
0x244d   : > { %2602 = vrcp.f32 %v1785_v8 }
0x245a   : > { %v2603_v9 = vpop.eup %2602 }
0x245b   : > { %v1800_v15 = vsub.f32 1.0, %v2603_v9  ;;  %v1806_v17 = vmul.f32 %v2603_v9, %v1724_v13 }
0x24ad   : > { %v1791_v11 = vpop.permute.xlu0 %1790 }
0x24ae   : > { %v1793_v61 = vmul.f32 %v2603_v9, %v1791_v11 }
0x24b0   : > { %1795 = vrot.lane.b32.xlu1 %v1793_v61, %s2649_s24 }
0x2522   : > { %v1796_v62 = vpop.permute.xlu1 %1795 }
0x2523   : > { %v1798_v12 = vadd.f32 %v1796_v62, %v1735_v0 }
0x2525   : > { %2604 = vtanh.f32 %v1798_v12 }
0x2532   : > { %v2605_v14 = vpop.eup %2604 }
0x2533   : > { %1802 = vrot.lane.b32.xlu0 %v2605_v14, %s2651_s28 }
0x25a5   : > { %v1803_v16 = vpop.permute.xlu0 %1802 }
0x25a6   : > { %v1805_v18 = vmul.f32 %v1803_v16, %v1800_v15 }
0x25a8   : > { %v1807_v19 = vadd.f32 %v1806_v17, %v1805_v18 }
0x25aa   : > { %v3050_v20 = vpack.c.bf16 %v1807_v19, %v1807_v19 }
0x25ac   : > { %1819 = vrot.lane.b32.xlu1 %v3050_v20, %s2651_s28 }
0x261e   : > { %v1820_v22 = vpop.permute.xlu1 %1819 }
0x261f   : > { %2467 = vmatmul.mubr.msk.bf16.vlgmr.msra.gmra.mxu0 %vm454_vm0, %v1820_v22 }
0x26df   : > { %v1858_v23 = vpop.f32.mrf.mxu0 }
0x26e0   : > { %v1871_v24 = vadd.f32 %v1858_v23, %v2971_v2  ;;  %v1864_v33 = vadd.f32 %v1858_v23, %v1818_v32 }
0x26e1   : > { %v2468_v25 = vpop.f32.mrf.mxu0 }
0x26e2   : > { %1873 = vrot.lane.b32.xlu0 %v1871_v24, %s2649_s24  ;;  %v2257_v35 = vmul.f32 -1.442695, %v1864_v33 }
0x26e3   : > { %v1861_v27 = vpop.f32.mrf.mxu0 }
0x26e4   : > { %2606 = vpow2.f32 %v2257_v35 }
0x26e5   : > { %v2469_v28 = vpop.f32.mrf.mxu0 }
0x26f1   : > { %v2607_v36 = vpop.eup %2606 }
0x26f2   : > { %v1868_v37 = vadd.f32 1.0, %v2607_v36 }
0x26f4   : > { %2608 = vrcp.f32 %v1868_v37 }
0x2701   : > { %v2609_v38 = vpop.eup %2608 }
0x2702   : > { %v1883_v46 = vsub.f32 1.0, %v2609_v38  ;;  %v1889_v49 = vmul.f32 %v2609_v38, %v1807_v19 }
0x2754   : > { %v1874_v39 = vpop.permute.xlu0 %1873 }
0x2755   : > { %v1876_v42 = vmul.f32 %v2609_v38, %v1874_v39 }
0x2757   : > { %1878 = vrot.lane.b32.xlu1 %v1876_v42, %s2649_s24 }
0x27c9   : > { %v1879_v43 = vpop.permute.xlu1 %1878 }
0x27ca   : > { %v1881_v44 = vadd.f32 %v1879_v43, %v1818_v32 }
0x27cc   : > { %2610 = vtanh.f32 %v1881_v44 }
0x27d9   : > { %v2611_v45 = vpop.eup %2610 }
0x27da   : > { %1885 = vrot.lane.b32.xlu0 %v2611_v45, %s2651_s28 }
0x284c   : > { %v1886_v47 = vpop.permute.xlu0 %1885 }
0x284d   : > { %v1888_v34 = vmul.f32 %v1886_v47, %v1883_v46 }
0x284f   : > { %v1890_v50 = vadd.f32 %v1889_v49, %v1888_v34 }
0x2851   : > { %v1891_v51 = vpack.c.bf16 %v1890_v50, %v1890_v50 }
0x2853   : > { %1901 = vrot.lane.b32.xlu1 %v1891_v51, %s2651_s28 }
0x28c5   : > { %v1902_v29 = vpop.permute.xlu1 %1901 }
0x28c6   : > { %2475 = vmatmul.mubr.msk.bf16.vlgmr.msra.gmra.mxu1 %vm454_vm0, %v1902_v29 }
0x2986   : > { %v1940_v57 = vpop.f32.mrf.mxu1 }
0x2987   : > { %v1953_v52 = vadd.f32 %v1940_v57, %v2971_v2  ;;  %v1946_v31 = vadd.f32 %v1940_v57, %v1900_v30 }
0x2988   : > { %v2476_v41 = vpop.f32.mrf.mxu1 }
0x2989   : > { %1955 = vrot.lane.b32.xlu0 %v1953_v52, %s2649_s24  ;;  %v2261_v55 = vmul.f32 -1.442695, %v1946_v31 }
0x298a   : > { %v1943_v53 = vpop.f32.mrf.mxu1 }
0x298b   : > { %2612 = vpow2.f32 %v2261_v55 }
0x298c   : > { %v2477_v54 = vpop.f32.mrf.mxu1 }
0x2998   : > { %v2613_v56 = vpop.eup %2612 }
0x2999   : > { %v1950_v21 = vadd.f32 1.0, %v2613_v56 }
0x299b   : > { %2614 = vrcp.f32 %v1950_v21 }
0x29a8   : > { %v2615_v13 = vpop.eup %2614 }
0x29a9   : > { %v1971_v1 = vmul.f32 %v2615_v13, %v1890_v50 }
0x29fb   : > { %v1956_v59 = vpop.permute.xlu0 %1955 }
0x29fc   : > { %v1958_v63 = vmul.f32 %v2615_v13, %v1956_v59 }
0x29fe   : > { %1960 = vrot.lane.b32.xlu1 %v1958_v63, %s2649_s24 }
0x2a02   : > { %1396 = vrot.lane.b32.xlu1 %v2977_v26, %s2651_s28 }
0x2a06   : > { %1563 = vrot.lane.b32.xlu1 %v3007_v10, %s2651_s28 }
0x2a0a   : > { %1729 = vrot.lane.b32.xlu1 %v3036_v58, %s2651_s28  ;;  %v1965_v58 = vsub.f32 1.0, %v2615_v13 }
0x2a0e   : > { %1895 = vrot.lane.b32.xlu1 %v1891_v51, %s2651_s28 }
0x2a70   : > { %v1961_v2 = vpop.permute.xlu1 %1960 }
0x2a71   : > { %v1963_v6 = vadd.f32 %v1961_v2, %v1900_v30 }
0x2a73   : > { %2616 = vtanh.f32 %v1963_v6 }
0x2a74   : > { %v1397_v4 = vpop.permute.xlu1 %1396 }
0x2a75   : > { %2235 = vst.msk [vmem:[%s2741_s23 + $0x1c] sm:$0xf] %vm1400_vm5, %v1397_v4 }
0x2a78   : > { %v1564_v5 = vpop.permute.xlu1 %1563 }
0x2a79   : > { %2243 = vst.msk [vmem:[%s2741_s23 + $0x14] sm:$0xf] %vm1400_vm5, %v1564_v5 }
0x2a7c   : > { %v1730_v26 = vpop.permute.xlu1 %1729 }
0x2a7d   : > { %2251 = vst.msk [vmem:[%s2741_s23 + $0xc] sm:$0xf] %vm1400_vm5, %v1730_v26 }
0x2a80   : > { %v2617_v10 = vpop.eup %2616  ;;  %v1896_v7 = vpop.permute.xlu1 %1895 }
0x2a81   : > { %2259 = vst.msk [vmem:[%s2741_s23 + $0x4] sm:$0xf] %vm1400_vm5, %v1896_v7  ;;  %1967 = vrot.lane.b32.xlu0 %v2617_v10, %s2651_s28 }
0x2a85   : > { %1480 = vrot.lane.b32.xlu0 %v2992_v48, %s2651_s28 }
0x2a89   : > { %1646 = vrot.lane.b32.xlu0 %v3022_v40, %s2651_s28 }
0x2a8d   : > { %1812 = vrot.lane.b32.xlu0 %v3050_v20, %s2651_s28 }
0x2af3   : > { %v1968_v0 = vpop.permute.xlu0 %1967 }
0x2af4   : > { %v1970_v3 = vmul.f32 %v1968_v0, %v1965_v58 }
0x2af6   : > { %v1972_v60 = vadd.f32 %v1971_v1, %v1970_v3 }
0x2af7   : > { %v1481_v8 = vpop.permute.xlu0 %1480 }
0x2af8   : > { %2239 = vst.msk [vmem:[%s2741_s23 + $0x18] sm:$0xf] %vm1400_vm5, %v1481_v8  ;;  %1982 = vrot.lane.b32.xlu1 %v1972_v60, %s2651_s28  ;;  %v2283_v9 = vpack.c.bf16 %v1972_v60, %v1972_v60 }
0x2afa   : > { %1977 = vrot.lane.b32.xlu0 %v2283_v9, %s2651_s28 }
0x2afb   : > { %v1647_v48 = vpop.permute.xlu0 %1646 }
0x2afc   : > { %2247 = vst.msk [vmem:[%s2741_s23 + $0x10] sm:$0xf] %vm1400_vm5, %v1647_v48 }
0x2aff   : > { %v1813_v40 = vpop.permute.xlu0 %1812 }
0x2b00   : > { %2255 = vst.msk [vmem:[%s2741_s23 + $0x8] sm:$0xf] %vm1400_vm5, %v1813_v40 }
0x2b6a   : > { %v1983_v11 = vpop.permute.xlu1 %1982 }
0x2b6b   : > { %1985 = vst.msk [vmem:[#allocation3] sm:$0xff] %vm454_vm0, %v1983_v11 }
0x2b6c   : > { %v1978_v61 = vpop.permute.xlu0 %1977 }
0x2b6d   : > { %1980 = vst.msk [vmem:[%s2741_s23] sm:$0xf] %vm1400_vm5, %v1978_v61 }
0x2b6e PF:  {}
0x2b72   : > { %v1989_v62 = vld [vmem:[#allocation3] sm:$0xff] }
0x2b73   : > { %1990 = vst.msk [vmem:[%s2758_s12] sm:$0xff] %vm454_vm0, %v1989_v62 }
0x2b74 PF: > { %s18_s26 = sadd.s32 1, %s2640_s26   ;;  %s3116_s24 = smov %s2636_s25 }
0x2b75   : > { %p15_p7 = scmp.ge.s32.totalorder %s18_s26, 4   ;;  %s3117_s25 = smov %s3119_s27 }
0x2b77   :  { %17 = sbr.rel (!%p15_p7) target bundleno = 2 (0x2), region = 145 }

</bundles_post_ra>
